<compile_context>
chip_gen: v5e
topology: v5e:2x2
jax: 0.10.0
libtpu: 0.0.40
codegen_flags: <defaults>
</compile_context>

<pallas_src>
import jax
import jax.numpy as jnp
from jax.experimental import pallas as pl
from jax.experimental.pallas import tpu as pltpu

# ------------------------- model hyper-parameters -------------------------
HIDDEN = 32          # hidden_channels
OUT_CH = 4           # out_channels
NUM_BLOCKS = 2       # num_blocks
INT_EMB = 16         # int_emb_size
BASIS_EMB = 8        # basis_emb_size
OUT_EMB = 32         # out_emb_channels
NUM_SPH = 4          # num_spherical
NUM_RAD = 8          # num_radial
NUM_BEFORE_SKIP = 1
NUM_AFTER_SKIP = 2
NUM_OUTPUT_LAYERS = 3
N_RES = 2 * NUM_BEFORE_SKIP + 1 + 2 * NUM_AFTER_SKIP   # residual + skip lin matrices

# problem sizes
N_NODES = 8
N_EDGES = 32
N_TRIPLETS = 64

F32 = jnp.float32


def _swish(v):
    return v * jax.nn.sigmoid(v)


# ------------------------------ fused Pallas kernel ------------------------------
def fused_dimenetpp_kernel(
        # data
        x_ref, rbf_ref, sbf_ref, ohkj_ref, ohjit_ref, ohi_ref,
        # stacked interaction-block params
        wi_rbf, wi_sbf, wi_jikj, bi_jikj, wi_down, wi_up, wi_res, bi_res,
        # stacked output-block params
        wo_rbf, wo_up, bo_up, wo_lins, bo_lins, wo_out,
        # output
        out_ref):
    dot = lambda a, b: jnp.dot(a, b, preferred_element_type=F32)

    x = x_ref[...]              # [E, H]   edge embeddings (kept VMEM-resident)
    rbf = rbf_ref[...]          # [E, R]
    sbf = sbf_ref[...]          # [T, S*R]
    oh_kj = ohkj_ref[...]       # [T, E]   gather matrix (x_kj[idx_kj])
    oh_ji_t = ohjit_ref[...]    # [E, T]   scatter-add matrix, pre-transposed
    oh_i = ohi_ref[...]         # [N, E]   edge -> node scatter-add matrix

    def output_block(b, x_edge):
        g = dot(rbf, wo_rbf[b]) * x_edge                     # [E, H]
        xn = dot(oh_i, g)                                    # [N, H]  scatter-add
        y = dot(xn, wo_up[b]) + bo_up[b]                     # [N, OUT_EMB]
        for l in range(NUM_OUTPUT_LAYERS):
            y = _swish(dot(y, wo_lins[b, l]) + bo_lins[b, l])
        return dot(y, wo_out[b])                             # [N, OUT_CH]

    out = output_block(0, x)

    for blk in range(NUM_BLOCKS):
        # --- InteractionPPBlock ---
        proj = _swish(dot(x, wi_jikj[blk]) + bi_jikj[blk])   # [E, 2H]  fused ji|kj
        x_ji = proj[:, :HIDDEN]
        x_kj = proj[:, HIDDEN:]

        x_kj = x_kj * dot(rbf, wi_rbf[blk])                  # [E, H]   (rbf proj precomposed)
        x_kj = _swish(dot(x_kj, wi_down[blk]))               # [E, INT]
        x_kj = dot(oh_kj, x_kj) * dot(sbf, wi_sbf[blk])      # [T, INT] gather * sbf
        x_kj = dot(oh_ji_t, x_kj)                            # [E, INT] scatter-add
        x_kj = _swish(dot(x_kj, wi_up[blk]))                 # [E, H]

        h = x_ji + x_kj
        li = 0
        for _ in range(NUM_BEFORE_SKIP):                     # residual layers before skip
            t = _swish(dot(h, wi_res[blk, li]) + bi_res[blk, li]); li += 1
            t = _swish(dot(t, wi_res[blk, li]) + bi_res[blk, li]); li += 1
            h = h + t
        h = _swish(dot(h, wi_res[blk, li]) + bi_res[blk, li]) + x; li += 1   # skip
        for _ in range(NUM_AFTER_SKIP):                      # residual layers after skip
            t = _swish(dot(h, wi_res[blk, li]) + bi_res[blk, li]); li += 1
            t = _swish(dot(t, wi_res[blk, li]) + bi_res[blk, li]); li += 1
            h = h + t
        x = h

        out = out + output_block(blk + 1, x)

    out_ref[...] = out


# ------------------------------ wrapper ------------------------------
_VMEM = pl.BlockSpec(memory_space=pltpu.MemorySpace.VMEM)


def pack_params(int_params, out_params):
    """Precompose basis projections, fuse ji|kj, and stack per-block params into slabs."""
    def istack(fn):
        return jnp.stack([fn(p) for p in int_params], axis=0)

    def res_w(p):
        mats = [p["w_bs"][l, i] for l in range(NUM_BEFORE_SKIP) for i in range(2)]
        mats.append(p["w_lin"])
        mats += [p["w_as"][l, i] for l in range(NUM_AFTER_SKIP) for i in range(2)]
        return jnp.stack(mats, axis=0)                           # [N_RES, H, H]

    def res_b(p):
        bs = [p["b_bs"][l, i] for l in range(NUM_BEFORE_SKIP) for i in range(2)]
        bs.append(p["b_lin"])
        bs += [p["b_as"][l, i] for l in range(NUM_AFTER_SKIP) for i in range(2)]
        return jnp.stack(bs, axis=0)                             # [N_RES, 1, H]

    wi_rbf = istack(lambda p: p["w_rbf1"] @ p["w_rbf2"])         # [B, R, H]      precomposed
    wi_sbf = istack(lambda p: p["w_sbf1"] @ p["w_sbf2"])         # [B, S*R, INT]  precomposed
    wi_jikj = istack(lambda p: jnp.concatenate([p["w_ji"], p["w_kj"]], axis=1))   # [B, H, 2H]
    bi_jikj = istack(lambda p: jnp.concatenate([p["b_ji"], p["b_kj"]], axis=1))   # [B, 1, 2H]
    wi_down = istack(lambda p: p["w_down"])                      # [B, H, INT]
    wi_up = istack(lambda p: p["w_up"])                          # [B, INT, H]
    wi_res = istack(res_w)                                       # [B, N_RES, H, H]
    bi_res = istack(res_b)                                       # [B, N_RES, 1, H]

    wo_rbf = jnp.stack([p["w_rbf"] for p in out_params])         # [B+1, R, H]
    wo_up = jnp.stack([p["w_up"] for p in out_params])           # [B+1, H, OUT_EMB]
    bo_up = jnp.stack([p["b_up"] for p in out_params])           # [B+1, 1, OUT_EMB]
    wo_lins = jnp.stack([p["w_lins"] for p in out_params])       # [B+1, L, OUT_EMB, OUT_EMB]
    bo_lins = jnp.stack([p["b_lins"] for p in out_params])       # [B+1, L, 1, OUT_EMB]
    wo_out = jnp.stack([p["w_out"] for p in out_params])         # [B+1, OUT_EMB, OUT_CH]

    return (wi_rbf, wi_sbf, wi_jikj, bi_jikj, wi_down, wi_up, wi_res, bi_res,
            wo_rbf, wo_up, bo_up, wo_lins, bo_lins, wo_out)


def dimenetpp_forward(int_params, out_params, x, rbf, sbf, idx_kj, idx_ji, edge_i):
    e = x.shape[0]
    # index preprocessing (glue): one-hot matrices for gather / scatter-add.
    # oh_ji is built already transposed so the kernel never transposes.
    oh_kj = (idx_kj[:, None] == jnp.arange(e)[None, :]).astype(F32)          # [T, E]
    oh_ji_t = (jnp.arange(e)[:, None] == idx_ji[None, :]).astype(F32)        # [E, T]
    oh_i = (edge_i[None, :] == jnp.arange(N_NODES)[:, None]).astype(F32)     # [N, E]

    packed = pack_params(int_params, out_params)
    n_in = 6 + len(packed)

    return pl.pallas_call(
        fused_dimenetpp_kernel,
        out_shape=jax.ShapeDtypeStruct((N_NODES, OUT_CH), F32),
        in_specs=[_VMEM] * n_in,
        out_specs=_VMEM,
    )(x, rbf, sbf, oh_kj, oh_ji_t, oh_i, *packed)


# ------------------------------ parameter init ------------------------------
def _glorot(key, shape):
    fan_in, fan_out = shape[-2], shape[-1]
    std = (2.0 / (fan_in + fan_out)) ** 0.5
    return std * jax.random.normal(key, shape, dtype=F32)


def make_interaction_params(key):
    ks = jax.random.split(key, 12)
    return dict(
        w_rbf1=_glorot(ks[0], (NUM_RAD, BASIS_EMB)),
        w_rbf2=_glorot(ks[1], (BASIS_EMB, HIDDEN)),
        w_sbf1=_glorot(ks[2], (NUM_SPH * NUM_RAD, BASIS_EMB)),
        w_sbf2=_glorot(ks[3], (BASIS_EMB, INT_EMB)),
        w_kj=_glorot(ks[4], (HIDDEN, HIDDEN)), b_kj=jnp.zeros((1, HIDDEN), F32),
        w_ji=_glorot(ks[5], (HIDDEN, HIDDEN)), b_ji=jnp.zeros((1, HIDDEN), F32),
        w_down=_glorot(ks[6], (HIDDEN, INT_EMB)),
        w_up=_glorot(ks[7], (INT_EMB, HIDDEN)),
        w_bs=_glorot(ks[8], (NUM_BEFORE_SKIP, 2, HIDDEN, HIDDEN)),
        b_bs=jnp.zeros((NUM_BEFORE_SKIP, 2, 1, HIDDEN), F32),
        w_lin=_glorot(ks[9], (HIDDEN, HIDDEN)), b_lin=jnp.zeros((1, HIDDEN), F32),
        w_as=_glorot(ks[10], (NUM_AFTER_SKIP, 2, HIDDEN, HIDDEN)),
        b_as=jnp.zeros((NUM_AFTER_SKIP, 2, 1, HIDDEN), F32),
    )


def make_output_params(key):
    ks = jax.random.split(key, 4)
    return dict(
        w_rbf=_glorot(ks[0], (NUM_RAD, HIDDEN)),
        w_up=_glorot(ks[1], (HIDDEN, OUT_EMB)), b_up=jnp.zeros((1, OUT_EMB), F32),
        w_lins=_glorot(ks[2], (NUM_OUTPUT_LAYERS, OUT_EMB, OUT_EMB)),
        b_lins=jnp.zeros((NUM_OUTPUT_LAYERS, 1, OUT_EMB), F32),
        # reference zero-inits the final lin; random here so the test is non-trivial.
        w_out=_glorot(ks[3], (OUT_EMB, OUT_CH)),
    )


# ------------------------------ pure-JAX reference ------------------------------
def interaction_ref(p, x, rbf, sbf, idx_kj, idx_ji):
    x_ji = _swish(x @ p["w_ji"] + p["b_ji"])
    x_kj = _swish(x @ p["w_kj"] + p["b_kj"])
    rbf = (rbf @ p["w_rbf1"]) @ p["w_rbf2"]
    x_kj = x_kj * rbf
    x_kj = _swish(x_kj @ p["w_down"])
    sbf = (sbf @ p["w_sbf1"]) @ p["w_sbf2"]
    x_kj = x_kj[idx_kj] * sbf
    x_kj = jax.ops.segment_sum(x_kj, idx_ji, num_segments=x.shape[0])
    x_kj = _swish(x_kj @ p["w_up"])
    h = x_ji + x_kj
    for l in range(NUM_BEFORE_SKIP):
        t = _swish(h @ p["w_bs"][l, 0] + p["b_bs"][l, 0])
        t = _swish(t @ p["w_bs"][l, 1] + p["b_bs"][l, 1])
        h = h + t
    h = _swish(h @ p["w_lin"] + p["b_lin"]) + x
    for l in range(NUM_AFTER_SKIP):
        t = _swish(h @ p["w_as"][l, 0] + p["b_as"][l, 0])
        t = _swish(t @ p["w_as"][l, 1] + p["b_as"][l, 1])
        h = h + t
    return h


def output_ref(p, x, rbf, edge_i):
    g = (rbf @ p["w_rbf"]) * x
    xn = jax.ops.segment_sum(g, edge_i, num_segments=N_NODES)
    y = xn @ p["w_up"] + p["b_up"]
    for l in range(NUM_OUTPUT_LAYERS):
        y = _swish(y @ p["w_lins"][l] + p["b_lins"][l])
    return y @ p["w_out"]


def dimenetpp_ref(int_params, out_params, x, rbf, sbf, idx_kj, idx_ji, edge_i):
    out = output_ref(out_params[0], x, rbf, edge_i)
    for b in range(NUM_BLOCKS):
        x = interaction_ref(int_params[b], x, rbf, sbf, idx_kj, idx_ji)
        out = out + output_ref(out_params[b + 1], x, rbf, edge_i)
    return out


# ------------------------------ main ------------------------------
if __name__ == "__main__":
    key = jax.random.PRNGKey(0)
    k_x, k_rbf, k_sbf, k_kj, k_ji, k_i, k_ip, k_op = jax.random.split(key, 8)

    x = jax.random.normal(k_x, (N_EDGES, HIDDEN), dtype=F32)
    rbf = jax.random.normal(k_rbf, (N_EDGES, NUM_RAD), dtype=F32)
    sbf = jax.random.normal(k_sbf, (N_TRIPLETS, NUM_SPH * NUM_RAD), dtype=F32)
    idx_kj = jax.random.randint(k_kj, (N_TRIPLETS,), 0, N_EDGES)
    idx_ji = jax.random.randint(k_ji, (N_TRIPLETS,), 0, N_EDGES)
    edge_i = jax.random.randint(k_i, (N_EDGES,), 0, N_NODES)

    int_keys = jax.random.split(k_ip, NUM_BLOCKS)
    out_keys = jax.random.split(k_op, NUM_BLOCKS + 1)
    int_params = [make_interaction_params(k) for k in int_keys]
    out_params = [make_output_params(k) for k in out_keys]

    out = dimenetpp_forward(int_params, out_params, x, rbf, sbf, idx_kj, idx_ji, edge_i)
    out = jax.block_until_ready(out)

    ref = dimenetpp_ref(int_params, out_params, x, rbf, sbf, idx_kj, idx_ji, edge_i)
    assert out.shape == (N_NODES, OUT_CH)
    assert jnp.allclose(out, ref, rtol=1e-4, atol=1e-4), "mismatch vs JAX reference"

    print("KERNEL_OK")
</pallas_src>

<mosaic_0001>
module attributes {stable_mosaic.version = 11 : i64} {
  func.func @fused_dimenetpp_kernel(%arg0: memref<32x32xf32, #tpu.memory_space<vmem>>, %arg1: memref<32x8xf32, #tpu.memory_space<vmem>>, %arg2: memref<64x32xf32, #tpu.memory_space<vmem>>, %arg3: memref<64x32xf32, #tpu.memory_space<vmem>>, %arg4: memref<32x64xf32, #tpu.memory_space<vmem>>, %arg5: memref<8x32xf32, #tpu.memory_space<vmem>>, %arg6: memref<2x8x32xf32, #tpu.memory_space<vmem>>, %arg7: memref<2x32x16xf32, #tpu.memory_space<vmem>>, %arg8: memref<2x32x64xf32, #tpu.memory_space<vmem>>, %arg9: memref<2x1x64xf32, #tpu.memory_space<vmem>>, %arg10: memref<2x32x16xf32, #tpu.memory_space<vmem>>, %arg11: memref<2x16x32xf32, #tpu.memory_space<vmem>>, %arg12: memref<2x7x32x32xf32, #tpu.memory_space<vmem>>, %arg13: memref<2x7x1x32xf32, #tpu.memory_space<vmem>>, %arg14: memref<3x8x32xf32, #tpu.memory_space<vmem>>, %arg15: memref<3x32x32xf32, #tpu.memory_space<vmem>>, %arg16: memref<3x1x32xf32, #tpu.memory_space<vmem>>, %arg17: memref<3x3x32x32xf32, #tpu.memory_space<vmem>>, %arg18: memref<3x3x1x32xf32, #tpu.memory_space<vmem>>, %arg19: memref<3x32x4xf32, #tpu.memory_space<vmem>>, %arg20: memref<8x4xf32, #tpu.memory_space<vmem>>) attributes {dimension_semantics = [], scalar_prefetch = 0 : i64, scratch_operands = 0 : i64, tpu.core_type = #tpu.core_type<tc>} {
    %c0 = arith.constant 0 : index
    %c0_0 = arith.constant 0 : index
    %0 = vector.load %arg0[%c0, %c0_0] : memref<32x32xf32, #tpu.memory_space<vmem>>, vector<32x32xf32>
    %c0_1 = arith.constant 0 : index
    %c0_2 = arith.constant 0 : index
    %1 = vector.load %arg1[%c0_1, %c0_2] : memref<32x8xf32, #tpu.memory_space<vmem>>, vector<32x8xf32>
    %c0_3 = arith.constant 0 : index
    %c0_4 = arith.constant 0 : index
    %2 = vector.load %arg2[%c0_3, %c0_4] : memref<64x32xf32, #tpu.memory_space<vmem>>, vector<64x32xf32>
    %c0_5 = arith.constant 0 : index
    %c0_6 = arith.constant 0 : index
    %3 = vector.load %arg3[%c0_5, %c0_6] : memref<64x32xf32, #tpu.memory_space<vmem>>, vector<64x32xf32>
    %c0_7 = arith.constant 0 : index
    %c0_8 = arith.constant 0 : index
    %4 = vector.load %arg4[%c0_7, %c0_8] : memref<32x64xf32, #tpu.memory_space<vmem>>, vector<32x64xf32>
    %c0_9 = arith.constant 0 : index
    %c0_10 = arith.constant 0 : index
    %5 = vector.load %arg5[%c0_9, %c0_10] : memref<8x32xf32, #tpu.memory_space<vmem>>, vector<8x32xf32>
    %c0_11 = arith.constant 0 : index
    %c0_12 = arith.constant 0 : index
    %c0_13 = arith.constant 0 : index
    %6 = vector.load %arg14[%c0_11, %c0_12, %c0_13] : memref<3x8x32xf32, #tpu.memory_space<vmem>>, vector<1x8x32xf32>
    %7 = vector.shape_cast %6 : vector<1x8x32xf32> to vector<8x32xf32>
    %cst = arith.constant dense<0.000000e+00> : vector<32x32xf32>
    %8 = tpu.matmul %1, %7, %cst {dimension_numbers = #tpu.dot_dimension_numbers<[1], [0], [0], [1], [0, 0, 1, 1], [], []>} : vector<32x8xf32>, vector<8x32xf32>, vector<32x32xf32> -> vector<32x32xf32>
    %9 = arith.mulf %8, %0 : vector<32x32xf32>
    %cst_14 = arith.constant dense<0.000000e+00> : vector<8x32xf32>
    %10 = tpu.matmul %5, %9, %cst_14 {dimension_numbers = #tpu.dot_dimension_numbers<[1], [0], [0], [1], [0, 0, 1, 1], [], []>} : vector<8x32xf32>, vector<32x32xf32>, vector<8x32xf32> -> vector<8x32xf32>
    %c0_15 = arith.constant 0 : index
    %c0_16 = arith.constant 0 : index
    %c0_17 = arith.constant 0 : index
    %11 = vector.load %arg15[%c0_15, %c0_16, %c0_17] : memref<3x32x32xf32, #tpu.memory_space<vmem>>, vector<1x32x32xf32>
    %12 = vector.shape_cast %11 : vector<1x32x32xf32> to vector<32x32xf32>
    %cst_18 = arith.constant dense<0.000000e+00> : vector<8x32xf32>
    %13 = tpu.matmul %10, %12, %cst_18 {dimension_numbers = #tpu.dot_dimension_numbers<[1], [0], [0], [1], [0, 0, 1, 1], [], []>} : vector<8x32xf32>, vector<32x32xf32>, vector<8x32xf32> -> vector<8x32xf32>
    %c0_19 = arith.constant 0 : index
    %c0_20 = arith.constant 0 : index
    %c0_21 = arith.constant 0 : index
    %14 = vector.load %arg16[%c0_19, %c0_20, %c0_21] : memref<3x1x32xf32, #tpu.memory_space<vmem>>, vector<1x1x32xf32>
    %15 = vector.shape_cast %14 : vector<1x1x32xf32> to vector<1x32xf32>
    %16 = vector.broadcast %15 : vector<1x32xf32> to vector<8x32xf32>
    %17 = arith.addf %13, %16 : vector<8x32xf32>
    %c0_22 = arith.constant 0 : index
    %c0_23 = arith.constant 0 : index
    %c0_24 = arith.constant 0 : index
    %c0_25 = arith.constant 0 : index
    %18 = vector.load %arg17[%c0_22, %c0_23, %c0_24, %c0_25] : memref<3x3x32x32xf32, #tpu.memory_space<vmem>>, vector<1x1x32x32xf32>
    %19 = vector.shape_cast %18 : vector<1x1x32x32xf32> to vector<32x32xf32>
    %cst_26 = arith.constant dense<0.000000e+00> : vector<8x32xf32>
    %20 = tpu.matmul %17, %19, %cst_26 {dimension_numbers = #tpu.dot_dimension_numbers<[1], [0], [0], [1], [0, 0, 1, 1], [], []>} : vector<8x32xf32>, vector<32x32xf32>, vector<8x32xf32> -> vector<8x32xf32>
    %c0_27 = arith.constant 0 : index
    %c0_28 = arith.constant 0 : index
    %c0_29 = arith.constant 0 : index
    %c0_30 = arith.constant 0 : index
    %21 = vector.load %arg18[%c0_27, %c0_28, %c0_29, %c0_30] : memref<3x3x1x32xf32, #tpu.memory_space<vmem>>, vector<1x1x1x32xf32>
    %22 = vector.shape_cast %21 : vector<1x1x1x32xf32> to vector<1x32xf32>
    %23 = vector.broadcast %22 : vector<1x32xf32> to vector<8x32xf32>
    %24 = arith.addf %20, %23 : vector<8x32xf32>
    %25 = arith.negf %24 : vector<8x32xf32>
    %26 = math.exp %25 : vector<8x32xf32>
    %cst_31 = arith.constant 1.000000e+00 : f32
    %27 = vector.broadcast %cst_31 : f32 to vector<8x32xf32>
    %28 = arith.addf %27, %26 : vector<8x32xf32>
    %29 = arith.divf %27, %28 : vector<8x32xf32>
    %30 = arith.mulf %24, %29 : vector<8x32xf32>
    %c0_32 = arith.constant 0 : index
    %c1 = arith.constant 1 : index
    %c0_33 = arith.constant 0 : index
    %c0_34 = arith.constant 0 : index
    %31 = vector.load %arg17[%c0_32, %c1, %c0_33, %c0_34] : memref<3x3x32x32xf32, #tpu.memory_space<vmem>>, vector<1x1x32x32xf32>
    %32 = vector.shape_cast %31 : vector<1x1x32x32xf32> to vector<32x32xf32>
    %cst_35 = arith.constant dense<0.000000e+00> : vector<8x32xf32>
    %33 = tpu.matmul %30, %32, %cst_35 {dimension_numbers = #tpu.dot_dimension_numbers<[1], [0], [0], [1], [0, 0, 1, 1], [], []>} : vector<8x32xf32>, vector<32x32xf32>, vector<8x32xf32> -> vector<8x32xf32>
    %c0_36 = arith.constant 0 : index
    %c1_37 = arith.constant 1 : index
    %c0_38 = arith.constant 0 : index
    %c0_39 = arith.constant 0 : index
    %34 = vector.load %arg18[%c0_36, %c1_37, %c0_38, %c0_39] : memref<3x3x1x32xf32, #tpu.memory_space<vmem>>, vector<1x1x1x32xf32>
    %35 = vector.shape_cast %34 : vector<1x1x1x32xf32> to vector<1x32xf32>
    %36 = vector.broadcast %35 : vector<1x32xf32> to vector<8x32xf32>
    %37 = arith.addf %33, %36 : vector<8x32xf32>
    %38 = arith.negf %37 : vector<8x32xf32>
    %39 = math.exp %38 : vector<8x32xf32>
    %cst_40 = arith.constant 1.000000e+00 : f32
    %40 = vector.broadcast %cst_40 : f32 to vector<8x32xf32>
    %41 = arith.addf %40, %39 : vector<8x32xf32>
    %42 = arith.divf %40, %41 : vector<8x32xf32>
    %43 = arith.mulf %37, %42 : vector<8x32xf32>
    %c0_41 = arith.constant 0 : index
    %c2 = arith.constant 2 : index
    %c0_42 = arith.constant 0 : index
    %c0_43 = arith.constant 0 : index
    %44 = vector.load %arg17[%c0_41, %c2, %c0_42, %c0_43] : memref<3x3x32x32xf32, #tpu.memory_space<vmem>>, vector<1x1x32x32xf32>
    %45 = vector.shape_cast %44 : vector<1x1x32x32xf32> to vector<32x32xf32>
    %cst_44 = arith.constant dense<0.000000e+00> : vector<8x32xf32>
    %46 = tpu.matmul %43, %45, %cst_44 {dimension_numbers = #tpu.dot_dimension_numbers<[1], [0], [0], [1], [0, 0, 1, 1], [], []>} : vector<8x32xf32>, vector<32x32xf32>, vector<8x32xf32> -> vector<8x32xf32>
    %c0_45 = arith.constant 0 : index
    %c2_46 = arith.constant 2 : index
    %c0_47 = arith.constant 0 : index
    %c0_48 = arith.constant 0 : index
    %47 = vector.load %arg18[%c0_45, %c2_46, %c0_47, %c0_48] : memref<3x3x1x32xf32, #tpu.memory_space<vmem>>, vector<1x1x1x32xf32>
    %48 = vector.shape_cast %47 : vector<1x1x1x32xf32> to vector<1x32xf32>
    %49 = vector.broadcast %48 : vector<1x32xf32> to vector<8x32xf32>
    %50 = arith.addf %46, %49 : vector<8x32xf32>
    %51 = arith.negf %50 : vector<8x32xf32>
    %52 = math.exp %51 : vector<8x32xf32>
    %cst_49 = arith.constant 1.000000e+00 : f32
    %53 = vector.broadcast %cst_49 : f32 to vector<8x32xf32>
    %54 = arith.addf %53, %52 : vector<8x32xf32>
    %55 = arith.divf %53, %54 : vector<8x32xf32>
    %56 = arith.mulf %50, %55 : vector<8x32xf32>
    %c0_50 = arith.constant 0 : index
    %c0_51 = arith.constant 0 : index
    %c0_52 = arith.constant 0 : index
    %57 = vector.load %arg19[%c0_50, %c0_51, %c0_52] : memref<3x32x4xf32, #tpu.memory_space<vmem>>, vector<1x32x4xf32>
    %58 = vector.shape_cast %57 : vector<1x32x4xf32> to vector<32x4xf32>
    %cst_53 = arith.constant dense<0.000000e+00> : vector<8x4xf32>
    %59 = tpu.matmul %56, %58, %cst_53 {dimension_numbers = #tpu.dot_dimension_numbers<[1], [0], [0], [1], [0, 0, 1, 1], [], []>} : vector<8x32xf32>, vector<32x4xf32>, vector<8x4xf32> -> vector<8x4xf32>
    %c0_54 = arith.constant 0 : index
    %c0_55 = arith.constant 0 : index
    %c0_56 = arith.constant 0 : index
    %60 = vector.load %arg8[%c0_54, %c0_55, %c0_56] : memref<2x32x64xf32, #tpu.memory_space<vmem>>, vector<1x32x64xf32>
    %61 = vector.shape_cast %60 : vector<1x32x64xf32> to vector<32x64xf32>
    %cst_57 = arith.constant dense<0.000000e+00> : vector<32x64xf32>
    %62 = tpu.matmul %0, %61, %cst_57 {dimension_numbers = #tpu.dot_dimension_numbers<[1], [0], [0], [1], [0, 0, 1, 1], [], []>} : vector<32x32xf32>, vector<32x64xf32>, vector<32x64xf32> -> vector<32x64xf32>
    %c0_58 = arith.constant 0 : index
    %c0_59 = arith.constant 0 : index
    %c0_60 = arith.constant 0 : index
    %63 = vector.load %arg9[%c0_58, %c0_59, %c0_60] : memref<2x1x64xf32, #tpu.memory_space<vmem>>, vector<1x1x64xf32>
    %64 = vector.shape_cast %63 : vector<1x1x64xf32> to vector<1x64xf32>
    %65 = vector.broadcast %64 : vector<1x64xf32> to vector<32x64xf32>
    %66 = arith.addf %62, %65 : vector<32x64xf32>
    %67 = arith.negf %66 : vector<32x64xf32>
    %68 = math.exp %67 : vector<32x64xf32>
    %cst_61 = arith.constant 1.000000e+00 : f32
    %69 = vector.broadcast %cst_61 : f32 to vector<32x64xf32>
    %70 = arith.addf %69, %68 : vector<32x64xf32>
    %71 = arith.divf %69, %70 : vector<32x64xf32>
    %72 = arith.mulf %66, %71 : vector<32x64xf32>
    %73 = vector.extract_strided_slice %72 {offsets = [0, 0], sizes = [32, 32], strides = [1, 1]} : vector<32x64xf32> to vector<32x32xf32>
    %74 = vector.extract_strided_slice %72 {offsets = [0, 32], sizes = [32, 32], strides = [1, 1]} : vector<32x64xf32> to vector<32x32xf32>
    %c0_62 = arith.constant 0 : index
    %c0_63 = arith.constant 0 : index
    %c0_64 = arith.constant 0 : index
    %75 = vector.load %arg6[%c0_62, %c0_63, %c0_64] : memref<2x8x32xf32, #tpu.memory_space<vmem>>, vector<1x8x32xf32>
    %76 = vector.shape_cast %75 : vector<1x8x32xf32> to vector<8x32xf32>
    %cst_65 = arith.constant dense<0.000000e+00> : vector<32x32xf32>
    %77 = tpu.matmul %1, %76, %cst_65 {dimension_numbers = #tpu.dot_dimension_numbers<[1], [0], [0], [1], [0, 0, 1, 1], [], []>} : vector<32x8xf32>, vector<8x32xf32>, vector<32x32xf32> -> vector<32x32xf32>
    %78 = arith.mulf %74, %77 : vector<32x32xf32>
    %c0_66 = arith.constant 0 : index
    %c0_67 = arith.constant 0 : index
    %c0_68 = arith.constant 0 : index
    %79 = vector.load %arg10[%c0_66, %c0_67, %c0_68] : memref<2x32x16xf32, #tpu.memory_space<vmem>>, vector<1x32x16xf32>
    %80 = vector.shape_cast %79 : vector<1x32x16xf32> to vector<32x16xf32>
    %cst_69 = arith.constant dense<0.000000e+00> : vector<32x16xf32>
    %81 = tpu.matmul %78, %80, %cst_69 {dimension_numbers = #tpu.dot_dimension_numbers<[1], [0], [0], [1], [0, 0, 1, 1], [], []>} : vector<32x32xf32>, vector<32x16xf32>, vector<32x16xf32> -> vector<32x16xf32>
    %82 = arith.negf %81 : vector<32x16xf32>
    %83 = math.exp %82 : vector<32x16xf32>
    %cst_70 = arith.constant 1.000000e+00 : f32
    %84 = vector.broadcast %cst_70 : f32 to vector<32x16xf32>
    %85 = arith.addf %84, %83 : vector<32x16xf32>
    %86 = arith.divf %84, %85 : vector<32x16xf32>
    %87 = arith.mulf %81, %86 : vector<32x16xf32>
    %cst_71 = arith.constant dense<0.000000e+00> : vector<64x16xf32>
    %88 = tpu.matmul %3, %87, %cst_71 {dimension_numbers = #tpu.dot_dimension_numbers<[1], [0], [0], [1], [0, 0, 1, 1], [], []>} : vector<64x32xf32>, vector<32x16xf32>, vector<64x16xf32> -> vector<64x16xf32>
    %c0_72 = arith.constant 0 : index
    %c0_73 = arith.constant 0 : index
    %c0_74 = arith.constant 0 : index
    %89 = vector.load %arg7[%c0_72, %c0_73, %c0_74] : memref<2x32x16xf32, #tpu.memory_space<vmem>>, vector<1x32x16xf32>
    %90 = vector.shape_cast %89 : vector<1x32x16xf32> to vector<32x16xf32>
    %cst_75 = arith.constant dense<0.000000e+00> : vector<64x16xf32>
    %91 = tpu.matmul %2, %90, %cst_75 {dimension_numbers = #tpu.dot_dimension_numbers<[1], [0], [0], [1], [0, 0, 1, 1], [], []>} : vector<64x32xf32>, vector<32x16xf32>, vector<64x16xf32> -> vector<64x16xf32>
    %92 = arith.mulf %88, %91 : vector<64x16xf32>
    %cst_76 = arith.constant dense<0.000000e+00> : vector<32x16xf32>
    %93 = tpu.matmul %4, %92, %cst_76 {dimension_numbers = #tpu.dot_dimension_numbers<[1], [0], [0], [1], [0, 0, 1, 1], [], []>} : vector<32x64xf32>, vector<64x16xf32>, vector<32x16xf32> -> vector<32x16xf32>
    %c0_77 = arith.constant 0 : index
    %c0_78 = arith.constant 0 : index
    %c0_79 = arith.constant 0 : index
    %94 = vector.load %arg11[%c0_77, %c0_78, %c0_79] : memref<2x16x32xf32, #tpu.memory_space<vmem>>, vector<1x16x32xf32>
    %95 = vector.shape_cast %94 : vector<1x16x32xf32> to vector<16x32xf32>
    %cst_80 = arith.constant dense<0.000000e+00> : vector<32x32xf32>
    %96 = tpu.matmul %93, %95, %cst_80 {dimension_numbers = #tpu.dot_dimension_numbers<[1], [0], [0], [1], [0, 0, 1, 1], [], []>} : vector<32x16xf32>, vector<16x32xf32>, vector<32x32xf32> -> vector<32x32xf32>
    %97 = arith.negf %96 : vector<32x32xf32>
    %98 = math.exp %97 : vector<32x32xf32>
    %cst_81 = arith.constant 1.000000e+00 : f32
    %99 = vector.broadcast %cst_81 : f32 to vector<32x32xf32>
    %100 = arith.addf %99, %98 : vector<32x32xf32>
    %101 = arith.divf %99, %100 : vector<32x32xf32>
    %102 = arith.mulf %96, %101 : vector<32x32xf32>
    %103 = arith.addf %73, %102 : vector<32x32xf32>
    %c0_82 = arith.constant 0 : index
    %c0_83 = arith.constant 0 : index
    %c0_84 = arith.constant 0 : index
    %c0_85 = arith.constant 0 : index
    %104 = vector.load %arg12[%c0_82, %c0_83, %c0_84, %c0_85] : memref<2x7x32x32xf32, #tpu.memory_space<vmem>>, vector<1x1x32x32xf32>
    %105 = vector.shape_cast %104 : vector<1x1x32x32xf32> to vector<32x32xf32>
    %cst_86 = arith.constant dense<0.000000e+00> : vector<32x32xf32>
    %106 = tpu.matmul %103, %105, %cst_86 {dimension_numbers = #tpu.dot_dimension_numbers<[1], [0], [0], [1], [0, 0, 1, 1], [], []>} : vector<32x32xf32>, vector<32x32xf32>, vector<32x32xf32> -> vector<32x32xf32>
    %c0_87 = arith.constant 0 : index
    %c0_88 = arith.constant 0 : index
    %c0_89 = arith.constant 0 : index
    %c0_90 = arith.constant 0 : index
    %107 = vector.load %arg13[%c0_87, %c0_88, %c0_89, %c0_90] : memref<2x7x1x32xf32, #tpu.memory_space<vmem>>, vector<1x1x1x32xf32>
    %108 = vector.shape_cast %107 : vector<1x1x1x32xf32> to vector<1x32xf32>
    %109 = vector.broadcast %108 : vector<1x32xf32> to vector<32x32xf32>
    %110 = arith.addf %106, %109 : vector<32x32xf32>
    %111 = arith.negf %110 : vector<32x32xf32>
    %112 = math.exp %111 : vector<32x32xf32>
    %cst_91 = arith.constant 1.000000e+00 : f32
    %113 = vector.broadcast %cst_91 : f32 to vector<32x32xf32>
    %114 = arith.addf %113, %112 : vector<32x32xf32>
    %115 = arith.divf %113, %114 : vector<32x32xf32>
    %116 = arith.mulf %110, %115 : vector<32x32xf32>
    %c0_92 = arith.constant 0 : index
    %c1_93 = arith.constant 1 : index
    %c0_94 = arith.constant 0 : index
    %c0_95 = arith.constant 0 : index
    %117 = vector.load %arg12[%c0_92, %c1_93, %c0_94, %c0_95] : memref<2x7x32x32xf32, #tpu.memory_space<vmem>>, vector<1x1x32x32xf32>
    %118 = vector.shape_cast %117 : vector<1x1x32x32xf32> to vector<32x32xf32>
    %cst_96 = arith.constant dense<0.000000e+00> : vector<32x32xf32>
    %119 = tpu.matmul %116, %118, %cst_96 {dimension_numbers = #tpu.dot_dimension_numbers<[1], [0], [0], [1], [0, 0, 1, 1], [], []>} : vector<32x32xf32>, vector<32x32xf32>, vector<32x32xf32> -> vector<32x32xf32>
    %c0_97 = arith.constant 0 : index
    %c1_98 = arith.constant 1 : index
    %c0_99 = arith.constant 0 : index
    %c0_100 = arith.constant 0 : index
    %120 = vector.load %arg13[%c0_97, %c1_98, %c0_99, %c0_100] : memref<2x7x1x32xf32, #tpu.memory_space<vmem>>, vector<1x1x1x32xf32>
    %121 = vector.shape_cast %120 : vector<1x1x1x32xf32> to vector<1x32xf32>
    %122 = vector.broadcast %121 : vector<1x32xf32> to vector<32x32xf32>
    %123 = arith.addf %119, %122 : vector<32x32xf32>
    %124 = arith.negf %123 : vector<32x32xf32>
    %125 = math.exp %124 : vector<32x32xf32>
    %cst_101 = arith.constant 1.000000e+00 : f32
    %126 = vector.broadcast %cst_101 : f32 to vector<32x32xf32>
    %127 = arith.addf %126, %125 : vector<32x32xf32>
    %128 = arith.divf %126, %127 : vector<32x32xf32>
    %129 = arith.mulf %123, %128 : vector<32x32xf32>
    %130 = arith.addf %103, %129 : vector<32x32xf32>
    %c0_102 = arith.constant 0 : index
    %c2_103 = arith.constant 2 : index
    %c0_104 = arith.constant 0 : index
    %c0_105 = arith.constant 0 : index
    %131 = vector.load %arg12[%c0_102, %c2_103, %c0_104, %c0_105] : memref<2x7x32x32xf32, #tpu.memory_space<vmem>>, vector<1x1x32x32xf32>
    %132 = vector.shape_cast %131 : vector<1x1x32x32xf32> to vector<32x32xf32>
    %cst_106 = arith.constant dense<0.000000e+00> : vector<32x32xf32>
    %133 = tpu.matmul %130, %132, %cst_106 {dimension_numbers = #tpu.dot_dimension_numbers<[1], [0], [0], [1], [0, 0, 1, 1], [], []>} : vector<32x32xf32>, vector<32x32xf32>, vector<32x32xf32> -> vector<32x32xf32>
    %c0_107 = arith.constant 0 : index
    %c2_108 = arith.constant 2 : index
    %c0_109 = arith.constant 0 : index
    %c0_110 = arith.constant 0 : index
    %134 = vector.load %arg13[%c0_107, %c2_108, %c0_109, %c0_110] : memref<2x7x1x32xf32, #tpu.memory_space<vmem>>, vector<1x1x1x32xf32>
    %135 = vector.shape_cast %134 : vector<1x1x1x32xf32> to vector<1x32xf32>
    %136 = vector.broadcast %135 : vector<1x32xf32> to vector<32x32xf32>
    %137 = arith.addf %133, %136 : vector<32x32xf32>
    %138 = arith.negf %137 : vector<32x32xf32>
    %139 = math.exp %138 : vector<32x32xf32>
    %cst_111 = arith.constant 1.000000e+00 : f32
    %140 = vector.broadcast %cst_111 : f32 to vector<32x32xf32>
    %141 = arith.addf %140, %139 : vector<32x32xf32>
    %142 = arith.divf %140, %141 : vector<32x32xf32>
    %143 = arith.mulf %137, %142 : vector<32x32xf32>
    %144 = arith.addf %143, %0 : vector<32x32xf32>
    %c0_112 = arith.constant 0 : index
    %c3 = arith.constant 3 : index
    %c0_113 = arith.constant 0 : index
    %c0_114 = arith.constant 0 : index
    %145 = vector.load %arg12[%c0_112, %c3, %c0_113, %c0_114] : memref<2x7x32x32xf32, #tpu.memory_space<vmem>>, vector<1x1x32x32xf32>
    %146 = vector.shape_cast %145 : vector<1x1x32x32xf32> to vector<32x32xf32>
    %cst_115 = arith.constant dense<0.000000e+00> : vector<32x32xf32>
    %147 = tpu.matmul %144, %146, %cst_115 {dimension_numbers = #tpu.dot_dimension_numbers<[1], [0], [0], [1], [0, 0, 1, 1], [], []>} : vector<32x32xf32>, vector<32x32xf32>, vector<32x32xf32> -> vector<32x32xf32>
    %c0_116 = arith.constant 0 : index
    %c3_117 = arith.constant 3 : index
    %c0_118 = arith.constant 0 : index
    %c0_119 = arith.constant 0 : index
    %148 = vector.load %arg13[%c0_116, %c3_117, %c0_118, %c0_119] : memref<2x7x1x32xf32, #tpu.memory_space<vmem>>, vector<1x1x1x32xf32>
    %149 = vector.shape_cast %148 : vector<1x1x1x32xf32> to vector<1x32xf32>
    %150 = vector.broadcast %149 : vector<1x32xf32> to vector<32x32xf32>
    %151 = arith.addf %147, %150 : vector<32x32xf32>
    %152 = arith.negf %151 : vector<32x32xf32>
    %153 = math.exp %152 : vector<32x32xf32>
    %cst_120 = arith.constant 1.000000e+00 : f32
    %154 = vector.broadcast %cst_120 : f32 to vector<32x32xf32>
    %155 = arith.addf %154, %153 : vector<32x32xf32>
    %156 = arith.divf %154, %155 : vector<32x32xf32>
    %157 = arith.mulf %151, %156 : vector<32x32xf32>
    %c0_121 = arith.constant 0 : index
    %c4 = arith.constant 4 : index
    %c0_122 = arith.constant 0 : index
    %c0_123 = arith.constant 0 : index
    %158 = vector.load %arg12[%c0_121, %c4, %c0_122, %c0_123] : memref<2x7x32x32xf32, #tpu.memory_space<vmem>>, vector<1x1x32x32xf32>
    %159 = vector.shape_cast %158 : vector<1x1x32x32xf32> to vector<32x32xf32>
    %cst_124 = arith.constant dense<0.000000e+00> : vector<32x32xf32>
    %160 = tpu.matmul %157, %159, %cst_124 {dimension_numbers = #tpu.dot_dimension_numbers<[1], [0], [0], [1], [0, 0, 1, 1], [], []>} : vector<32x32xf32>, vector<32x32xf32>, vector<32x32xf32> -> vector<32x32xf32>
    %c0_125 = arith.constant 0 : index
    %c4_126 = arith.constant 4 : index
    %c0_127 = arith.constant 0 : index
    %c0_128 = arith.constant 0 : index
    %161 = vector.load %arg13[%c0_125, %c4_126, %c0_127, %c0_128] : memref<2x7x1x32xf32, #tpu.memory_space<vmem>>, vector<1x1x1x32xf32>
    %162 = vector.shape_cast %161 : vector<1x1x1x32xf32> to vector<1x32xf32>
    %163 = vector.broadcast %162 : vector<1x32xf32> to vector<32x32xf32>
    %164 = arith.addf %160, %163 : vector<32x32xf32>
    %165 = arith.negf %164 : vector<32x32xf32>
    %166 = math.exp %165 : vector<32x32xf32>
    %cst_129 = arith.constant 1.000000e+00 : f32
    %167 = vector.broadcast %cst_129 : f32 to vector<32x32xf32>
    %168 = arith.addf %167, %166 : vector<32x32xf32>
    %169 = arith.divf %167, %168 : vector<32x32xf32>
    %170 = arith.mulf %164, %169 : vector<32x32xf32>
    %171 = arith.addf %144, %170 : vector<32x32xf32>
    %c0_130 = arith.constant 0 : index
    %c5 = arith.constant 5 : index
    %c0_131 = arith.constant 0 : index
    %c0_132 = arith.constant 0 : index
    %172 = vector.load %arg12[%c0_130, %c5, %c0_131, %c0_132] : memref<2x7x32x32xf32, #tpu.memory_space<vmem>>, vector<1x1x32x32xf32>
    %173 = vector.shape_cast %172 : vector<1x1x32x32xf32> to vector<32x32xf32>
    %cst_133 = arith.constant dense<0.000000e+00> : vector<32x32xf32>
    %174 = tpu.matmul %171, %173, %cst_133 {dimension_numbers = #tpu.dot_dimension_numbers<[1], [0], [0], [1], [0, 0, 1, 1], [], []>} : vector<32x32xf32>, vector<32x32xf32>, vector<32x32xf32> -> vector<32x32xf32>
    %c0_134 = arith.constant 0 : index
    %c5_135 = arith.constant 5 : index
    %c0_136 = arith.constant 0 : index
    %c0_137 = arith.constant 0 : index
    %175 = vector.load %arg13[%c0_134, %c5_135, %c0_136, %c0_137] : memref<2x7x1x32xf32, #tpu.memory_space<vmem>>, vector<1x1x1x32xf32>
    %176 = vector.shape_cast %175 : vector<1x1x1x32xf32> to vector<1x32xf32>
    %177 = vector.broadcast %176 : vector<1x32xf32> to vector<32x32xf32>
    %178 = arith.addf %174, %177 : vector<32x32xf32>
    %179 = arith.negf %178 : vector<32x32xf32>
    %180 = math.exp %179 : vector<32x32xf32>
    %cst_138 = arith.constant 1.000000e+00 : f32
    %181 = vector.broadcast %cst_138 : f32 to vector<32x32xf32>
    %182 = arith.addf %181, %180 : vector<32x32xf32>
    %183 = arith.divf %181, %182 : vector<32x32xf32>
    %184 = arith.mulf %178, %183 : vector<32x32xf32>
    %c0_139 = arith.constant 0 : index
    %c6 = arith.constant 6 : index
    %c0_140 = arith.constant 0 : index
    %c0_141 = arith.constant 0 : index
    %185 = vector.load %arg12[%c0_139, %c6, %c0_140, %c0_141] : memref<2x7x32x32xf32, #tpu.memory_space<vmem>>, vector<1x1x32x32xf32>
    %186 = vector.shape_cast %185 : vector<1x1x32x32xf32> to vector<32x32xf32>
    %cst_142 = arith.constant dense<0.000000e+00> : vector<32x32xf32>
    %187 = tpu.matmul %184, %186, %cst_142 {dimension_numbers = #tpu.dot_dimension_numbers<[1], [0], [0], [1], [0, 0, 1, 1], [], []>} : vector<32x32xf32>, vector<32x32xf32>, vector<32x32xf32> -> vector<32x32xf32>
    %c0_143 = arith.constant 0 : index
    %c6_144 = arith.constant 6 : index
    %c0_145 = arith.constant 0 : index
    %c0_146 = arith.constant 0 : index
    %188 = vector.load %arg13[%c0_143, %c6_144, %c0_145, %c0_146] : memref<2x7x1x32xf32, #tpu.memory_space<vmem>>, vector<1x1x1x32xf32>
    %189 = vector.shape_cast %188 : vector<1x1x1x32xf32> to vector<1x32xf32>
    %190 = vector.broadcast %189 : vector<1x32xf32> to vector<32x32xf32>
    %191 = arith.addf %187, %190 : vector<32x32xf32>
    %192 = arith.negf %191 : vector<32x32xf32>
    %193 = math.exp %192 : vector<32x32xf32>
    %cst_147 = arith.constant 1.000000e+00 : f32
    %194 = vector.broadcast %cst_147 : f32 to vector<32x32xf32>
    %195 = arith.addf %194, %193 : vector<32x32xf32>
    %196 = arith.divf %194, %195 : vector<32x32xf32>
    %197 = arith.mulf %191, %196 : vector<32x32xf32>
    %198 = arith.addf %171, %197 : vector<32x32xf32>
    %c1_148 = arith.constant 1 : index
    %c0_149 = arith.constant 0 : index
    %c0_150 = arith.constant 0 : index
    %199 = vector.load %arg14[%c1_148, %c0_149, %c0_150] : memref<3x8x32xf32, #tpu.memory_space<vmem>>, vector<1x8x32xf32>
    %200 = vector.shape_cast %199 : vector<1x8x32xf32> to vector<8x32xf32>
    %cst_151 = arith.constant dense<0.000000e+00> : vector<32x32xf32>
    %201 = tpu.matmul %1, %200, %cst_151 {dimension_numbers = #tpu.dot_dimension_numbers<[1], [0], [0], [1], [0, 0, 1, 1], [], []>} : vector<32x8xf32>, vector<8x32xf32>, vector<32x32xf32> -> vector<32x32xf32>
    %202 = arith.mulf %201, %198 : vector<32x32xf32>
    %cst_152 = arith.constant dense<0.000000e+00> : vector<8x32xf32>
    %203 = tpu.matmul %5, %202, %cst_152 {dimension_numbers = #tpu.dot_dimension_numbers<[1], [0], [0], [1], [0, 0, 1, 1], [], []>} : vector<8x32xf32>, vector<32x32xf32>, vector<8x32xf32> -> vector<8x32xf32>
    %c1_153 = arith.constant 1 : index
    %c0_154 = arith.constant 0 : index
    %c0_155 = arith.constant 0 : index
    %204 = vector.load %arg15[%c1_153, %c0_154, %c0_155] : memref<3x32x32xf32, #tpu.memory_space<vmem>>, vector<1x32x32xf32>
    %205 = vector.shape_cast %204 : vector<1x32x32xf32> to vector<32x32xf32>
    %cst_156 = arith.constant dense<0.000000e+00> : vector<8x32xf32>
    %206 = tpu.matmul %203, %205, %cst_156 {dimension_numbers = #tpu.dot_dimension_numbers<[1], [0], [0], [1], [0, 0, 1, 1], [], []>} : vector<8x32xf32>, vector<32x32xf32>, vector<8x32xf32> -> vector<8x32xf32>
    %c1_157 = arith.constant 1 : index
    %c0_158 = arith.constant 0 : index
    %c0_159 = arith.constant 0 : index
    %207 = vector.load %arg16[%c1_157, %c0_158, %c0_159] : memref<3x1x32xf32, #tpu.memory_space<vmem>>, vector<1x1x32xf32>
    %208 = vector.shape_cast %207 : vector<1x1x32xf32> to vector<1x32xf32>
    %209 = vector.broadcast %208 : vector<1x32xf32> to vector<8x32xf32>
    %210 = arith.addf %206, %209 : vector<8x32xf32>
    %c1_160 = arith.constant 1 : index
    %c0_161 = arith.constant 0 : index
    %c0_162 = arith.constant 0 : index
    %c0_163 = arith.constant 0 : index
    %211 = vector.load %arg17[%c1_160, %c0_161, %c0_162, %c0_163] : memref<3x3x32x32xf32, #tpu.memory_space<vmem>>, vector<1x1x32x32xf32>
    %212 = vector.shape_cast %211 : vector<1x1x32x32xf32> to vector<32x32xf32>
    %cst_164 = arith.constant dense<0.000000e+00> : vector<8x32xf32>
    %213 = tpu.matmul %210, %212, %cst_164 {dimension_numbers = #tpu.dot_dimension_numbers<[1], [0], [0], [1], [0, 0, 1, 1], [], []>} : vector<8x32xf32>, vector<32x32xf32>, vector<8x32xf32> -> vector<8x32xf32>
    %c1_165 = arith.constant 1 : index
    %c0_166 = arith.constant 0 : index
    %c0_167 = arith.constant 0 : index
    %c0_168 = arith.constant 0 : index
    %214 = vector.load %arg18[%c1_165, %c0_166, %c0_167, %c0_168] : memref<3x3x1x32xf32, #tpu.memory_space<vmem>>, vector<1x1x1x32xf32>
    %215 = vector.shape_cast %214 : vector<1x1x1x32xf32> to vector<1x32xf32>
    %216 = vector.broadcast %215 : vector<1x32xf32> to vector<8x32xf32>
    %217 = arith.addf %213, %216 : vector<8x32xf32>
    %218 = arith.negf %217 : vector<8x32xf32>
    %219 = math.exp %218 : vector<8x32xf32>
    %cst_169 = arith.constant 1.000000e+00 : f32
    %220 = vector.broadcast %cst_169 : f32 to vector<8x32xf32>
    %221 = arith.addf %220, %219 : vector<8x32xf32>
    %222 = arith.divf %220, %221 : vector<8x32xf32>
    %223 = arith.mulf %217, %222 : vector<8x32xf32>
    %c1_170 = arith.constant 1 : index
    %c1_171 = arith.constant 1 : index
    %c0_172 = arith.constant 0 : index
    %c0_173 = arith.constant 0 : index
    %224 = vector.load %arg17[%c1_170, %c1_171, %c0_172, %c0_173] : memref<3x3x32x32xf32, #tpu.memory_space<vmem>>, vector<1x1x32x32xf32>
    %225 = vector.shape_cast %224 : vector<1x1x32x32xf32> to vector<32x32xf32>
    %cst_174 = arith.constant dense<0.000000e+00> : vector<8x32xf32>
    %226 = tpu.matmul %223, %225, %cst_174 {dimension_numbers = #tpu.dot_dimension_numbers<[1], [0], [0], [1], [0, 0, 1, 1], [], []>} : vector<8x32xf32>, vector<32x32xf32>, vector<8x32xf32> -> vector<8x32xf32>
    %c1_175 = arith.constant 1 : index
    %c1_176 = arith.constant 1 : index
    %c0_177 = arith.constant 0 : index
    %c0_178 = arith.constant 0 : index
    %227 = vector.load %arg18[%c1_175, %c1_176, %c0_177, %c0_178] : memref<3x3x1x32xf32, #tpu.memory_space<vmem>>, vector<1x1x1x32xf32>
    %228 = vector.shape_cast %227 : vector<1x1x1x32xf32> to vector<1x32xf32>
    %229 = vector.broadcast %228 : vector<1x32xf32> to vector<8x32xf32>
    %230 = arith.addf %226, %229 : vector<8x32xf32>
    %231 = arith.negf %230 : vector<8x32xf32>
    %232 = math.exp %231 : vector<8x32xf32>
    %cst_179 = arith.constant 1.000000e+00 : f32
    %233 = vector.broadcast %cst_179 : f32 to vector<8x32xf32>
    %234 = arith.addf %233, %232 : vector<8x32xf32>
    %235 = arith.divf %233, %234 : vector<8x32xf32>
    %236 = arith.mulf %230, %235 : vector<8x32xf32>
    %c1_180 = arith.constant 1 : index
    %c2_181 = arith.constant 2 : index
    %c0_182 = arith.constant 0 : index
    %c0_183 = arith.constant 0 : index
    %237 = vector.load %arg17[%c1_180, %c2_181, %c0_182, %c0_183] : memref<3x3x32x32xf32, #tpu.memory_space<vmem>>, vector<1x1x32x32xf32>
    %238 = vector.shape_cast %237 : vector<1x1x32x32xf32> to vector<32x32xf32>
    %cst_184 = arith.constant dense<0.000000e+00> : vector<8x32xf32>
    %239 = tpu.matmul %236, %238, %cst_184 {dimension_numbers = #tpu.dot_dimension_numbers<[1], [0], [0], [1], [0, 0, 1, 1], [], []>} : vector<8x32xf32>, vector<32x32xf32>, vector<8x32xf32> -> vector<8x32xf32>
    %c1_185 = arith.constant 1 : index
    %c2_186 = arith.constant 2 : index
    %c0_187 = arith.constant 0 : index
    %c0_188 = arith.constant 0 : index
    %240 = vector.load %arg18[%c1_185, %c2_186, %c0_187, %c0_188] : memref<3x3x1x32xf32, #tpu.memory_space<vmem>>, vector<1x1x1x32xf32>
    %241 = vector.shape_cast %240 : vector<1x1x1x32xf32> to vector<1x32xf32>
    %242 = vector.broadcast %241 : vector<1x32xf32> to vector<8x32xf32>
    %243 = arith.addf %239, %242 : vector<8x32xf32>
    %244 = arith.negf %243 : vector<8x32xf32>
    %245 = math.exp %244 : vector<8x32xf32>
    %cst_189 = arith.constant 1.000000e+00 : f32
    %246 = vector.broadcast %cst_189 : f32 to vector<8x32xf32>
    %247 = arith.addf %246, %245 : vector<8x32xf32>
    %248 = arith.divf %246, %247 : vector<8x32xf32>
    %249 = arith.mulf %243, %248 : vector<8x32xf32>
    %c1_190 = arith.constant 1 : index
    %c0_191 = arith.constant 0 : index
    %c0_192 = arith.constant 0 : index
    %250 = vector.load %arg19[%c1_190, %c0_191, %c0_192] : memref<3x32x4xf32, #tpu.memory_space<vmem>>, vector<1x32x4xf32>
    %251 = vector.shape_cast %250 : vector<1x32x4xf32> to vector<32x4xf32>
    %cst_193 = arith.constant dense<0.000000e+00> : vector<8x4xf32>
    %252 = tpu.matmul %249, %251, %cst_193 {dimension_numbers = #tpu.dot_dimension_numbers<[1], [0], [0], [1], [0, 0, 1, 1], [], []>} : vector<8x32xf32>, vector<32x4xf32>, vector<8x4xf32> -> vector<8x4xf32>
    %253 = arith.addf %59, %252 : vector<8x4xf32>
    %c1_194 = arith.constant 1 : index
    %c0_195 = arith.constant 0 : index
    %c0_196 = arith.constant 0 : index
    %254 = vector.load %arg8[%c1_194, %c0_195, %c0_196] : memref<2x32x64xf32, #tpu.memory_space<vmem>>, vector<1x32x64xf32>
    %255 = vector.shape_cast %254 : vector<1x32x64xf32> to vector<32x64xf32>
    %cst_197 = arith.constant dense<0.000000e+00> : vector<32x64xf32>
    %256 = tpu.matmul %198, %255, %cst_197 {dimension_numbers = #tpu.dot_dimension_numbers<[1], [0], [0], [1], [0, 0, 1, 1], [], []>} : vector<32x32xf32>, vector<32x64xf32>, vector<32x64xf32> -> vector<32x64xf32>
    %c1_198 = arith.constant 1 : index
    %c0_199 = arith.constant 0 : index
    %c0_200 = arith.constant 0 : index
    %257 = vector.load %arg9[%c1_198, %c0_199, %c0_200] : memref<2x1x64xf32, #tpu.memory_space<vmem>>, vector<1x1x64xf32>
    %258 = vector.shape_cast %257 : vector<1x1x64xf32> to vector<1x64xf32>
    %259 = vector.broadcast %258 : vector<1x64xf32> to vector<32x64xf32>
    %260 = arith.addf %256, %259 : vector<32x64xf32>
    %261 = arith.negf %260 : vector<32x64xf32>
    %262 = math.exp %261 : vector<32x64xf32>
    %cst_201 = arith.constant 1.000000e+00 : f32
    %263 = vector.broadcast %cst_201 : f32 to vector<32x64xf32>
    %264 = arith.addf %263, %262 : vector<32x64xf32>
    %265 = arith.divf %263, %264 : vector<32x64xf32>
    %266 = arith.mulf %260, %265 : vector<32x64xf32>
    %267 = vector.extract_strided_slice %266 {offsets = [0, 0], sizes = [32, 32], strides = [1, 1]} : vector<32x64xf32> to vector<32x32xf32>
    %268 = vector.extract_strided_slice %266 {offsets = [0, 32], sizes = [32, 32], strides = [1, 1]} : vector<32x64xf32> to vector<32x32xf32>
    %c1_202 = arith.constant 1 : index
    %c0_203 = arith.constant 0 : index
    %c0_204 = arith.constant 0 : index
    %269 = vector.load %arg6[%c1_202, %c0_203, %c0_204] : memref<2x8x32xf32, #tpu.memory_space<vmem>>, vector<1x8x32xf32>
    %270 = vector.shape_cast %269 : vector<1x8x32xf32> to vector<8x32xf32>
    %cst_205 = arith.constant dense<0.000000e+00> : vector<32x32xf32>
    %271 = tpu.matmul %1, %270, %cst_205 {dimension_numbers = #tpu.dot_dimension_numbers<[1], [0], [0], [1], [0, 0, 1, 1], [], []>} : vector<32x8xf32>, vector<8x32xf32>, vector<32x32xf32> -> vector<32x32xf32>
    %272 = arith.mulf %268, %271 : vector<32x32xf32>
    %c1_206 = arith.constant 1 : index
    %c0_207 = arith.constant 0 : index
    %c0_208 = arith.constant 0 : index
    %273 = vector.load %arg10[%c1_206, %c0_207, %c0_208] : memref<2x32x16xf32, #tpu.memory_space<vmem>>, vector<1x32x16xf32>
    %274 = vector.shape_cast %273 : vector<1x32x16xf32> to vector<32x16xf32>
    %cst_209 = arith.constant dense<0.000000e+00> : vector<32x16xf32>
    %275 = tpu.matmul %272, %274, %cst_209 {dimension_numbers = #tpu.dot_dimension_numbers<[1], [0], [0], [1], [0, 0, 1, 1], [], []>} : vector<32x32xf32>, vector<32x16xf32>, vector<32x16xf32> -> vector<32x16xf32>
    %276 = arith.negf %275 : vector<32x16xf32>
    %277 = math.exp %276 : vector<32x16xf32>
    %cst_210 = arith.constant 1.000000e+00 : f32
    %278 = vector.broadcast %cst_210 : f32 to vector<32x16xf32>
    %279 = arith.addf %278, %277 : vector<32x16xf32>
    %280 = arith.divf %278, %279 : vector<32x16xf32>
    %281 = arith.mulf %275, %280 : vector<32x16xf32>
    %cst_211 = arith.constant dense<0.000000e+00> : vector<64x16xf32>
    %282 = tpu.matmul %3, %281, %cst_211 {dimension_numbers = #tpu.dot_dimension_numbers<[1], [0], [0], [1], [0, 0, 1, 1], [], []>} : vector<64x32xf32>, vector<32x16xf32>, vector<64x16xf32> -> vector<64x16xf32>
    %c1_212 = arith.constant 1 : index
    %c0_213 = arith.constant 0 : index
    %c0_214 = arith.constant 0 : index
    %283 = vector.load %arg7[%c1_212, %c0_213, %c0_214] : memref<2x32x16xf32, #tpu.memory_space<vmem>>, vector<1x32x16xf32>
    %284 = vector.shape_cast %283 : vector<1x32x16xf32> to vector<32x16xf32>
    %cst_215 = arith.constant dense<0.000000e+00> : vector<64x16xf32>
    %285 = tpu.matmul %2, %284, %cst_215 {dimension_numbers = #tpu.dot_dimension_numbers<[1], [0], [0], [1], [0, 0, 1, 1], [], []>} : vector<64x32xf32>, vector<32x16xf32>, vector<64x16xf32> -> vector<64x16xf32>
    %286 = arith.mulf %282, %285 : vector<64x16xf32>
    %cst_216 = arith.constant dense<0.000000e+00> : vector<32x16xf32>
    %287 = tpu.matmul %4, %286, %cst_216 {dimension_numbers = #tpu.dot_dimension_numbers<[1], [0], [0], [1], [0, 0, 1, 1], [], []>} : vector<32x64xf32>, vector<64x16xf32>, vector<32x16xf32> -> vector<32x16xf32>
    %c1_217 = arith.constant 1 : index
    %c0_218 = arith.constant 0 : index
    %c0_219 = arith.constant 0 : index
    %288 = vector.load %arg11[%c1_217, %c0_218, %c0_219] : memref<2x16x32xf32, #tpu.memory_space<vmem>>, vector<1x16x32xf32>
    %289 = vector.shape_cast %288 : vector<1x16x32xf32> to vector<16x32xf32>
    %cst_220 = arith.constant dense<0.000000e+00> : vector<32x32xf32>
    %290 = tpu.matmul %287, %289, %cst_220 {dimension_numbers = #tpu.dot_dimension_numbers<[1], [0], [0], [1], [0, 0, 1, 1], [], []>} : vector<32x16xf32>, vector<16x32xf32>, vector<32x32xf32> -> vector<32x32xf32>
    %291 = arith.negf %290 : vector<32x32xf32>
    %292 = math.exp %291 : vector<32x32xf32>
    %cst_221 = arith.constant 1.000000e+00 : f32
    %293 = vector.broadcast %cst_221 : f32 to vector<32x32xf32>
    %294 = arith.addf %293, %292 : vector<32x32xf32>
    %295 = arith.divf %293, %294 : vector<32x32xf32>
    %296 = arith.mulf %290, %295 : vector<32x32xf32>
    %297 = arith.addf %267, %296 : vector<32x32xf32>
    %c1_222 = arith.constant 1 : index
    %c0_223 = arith.constant 0 : index
    %c0_224 = arith.constant 0 : index
    %c0_225 = arith.constant 0 : index
    %298 = vector.load %arg12[%c1_222, %c0_223, %c0_224, %c0_225] : memref<2x7x32x32xf32, #tpu.memory_space<vmem>>, vector<1x1x32x32xf32>
    %299 = vector.shape_cast %298 : vector<1x1x32x32xf32> to vector<32x32xf32>
    %cst_226 = arith.constant dense<0.000000e+00> : vector<32x32xf32>
    %300 = tpu.matmul %297, %299, %cst_226 {dimension_numbers = #tpu.dot_dimension_numbers<[1], [0], [0], [1], [0, 0, 1, 1], [], []>} : vector<32x32xf32>, vector<32x32xf32>, vector<32x32xf32> -> vector<32x32xf32>
    %c1_227 = arith.constant 1 : index
    %c0_228 = arith.constant 0 : index
    %c0_229 = arith.constant 0 : index
    %c0_230 = arith.constant 0 : index
    %301 = vector.load %arg13[%c1_227, %c0_228, %c0_229, %c0_230] : memref<2x7x1x32xf32, #tpu.memory_space<vmem>>, vector<1x1x1x32xf32>
    %302 = vector.shape_cast %301 : vector<1x1x1x32xf32> to vector<1x32xf32>
    %303 = vector.broadcast %302 : vector<1x32xf32> to vector<32x32xf32>
    %304 = arith.addf %300, %303 : vector<32x32xf32>
    %305 = arith.negf %304 : vector<32x32xf32>
    %306 = math.exp %305 : vector<32x32xf32>
    %cst_231 = arith.constant 1.000000e+00 : f32
    %307 = vector.broadcast %cst_231 : f32 to vector<32x32xf32>
    %308 = arith.addf %307, %306 : vector<32x32xf32>
    %309 = arith.divf %307, %308 : vector<32x32xf32>
    %310 = arith.mulf %304, %309 : vector<32x32xf32>
    %c1_232 = arith.constant 1 : index
    %c1_233 = arith.constant 1 : index
    %c0_234 = arith.constant 0 : index
    %c0_235 = arith.constant 0 : index
    %311 = vector.load %arg12[%c1_232, %c1_233, %c0_234, %c0_235] : memref<2x7x32x32xf32, #tpu.memory_space<vmem>>, vector<1x1x32x32xf32>
    %312 = vector.shape_cast %311 : vector<1x1x32x32xf32> to vector<32x32xf32>
    %cst_236 = arith.constant dense<0.000000e+00> : vector<32x32xf32>
    %313 = tpu.matmul %310, %312, %cst_236 {dimension_numbers = #tpu.dot_dimension_numbers<[1], [0], [0], [1], [0, 0, 1, 1], [], []>} : vector<32x32xf32>, vector<32x32xf32>, vector<32x32xf32> -> vector<32x32xf32>
    %c1_237 = arith.constant 1 : index
    %c1_238 = arith.constant 1 : index
    %c0_239 = arith.constant 0 : index
    %c0_240 = arith.constant 0 : index
    %314 = vector.load %arg13[%c1_237, %c1_238, %c0_239, %c0_240] : memref<2x7x1x32xf32, #tpu.memory_space<vmem>>, vector<1x1x1x32xf32>
    %315 = vector.shape_cast %314 : vector<1x1x1x32xf32> to vector<1x32xf32>
    %316 = vector.broadcast %315 : vector<1x32xf32> to vector<32x32xf32>
    %317 = arith.addf %313, %316 : vector<32x32xf32>
    %318 = arith.negf %317 : vector<32x32xf32>
    %319 = math.exp %318 : vector<32x32xf32>
    %cst_241 = arith.constant 1.000000e+00 : f32
    %320 = vector.broadcast %cst_241 : f32 to vector<32x32xf32>
    %321 = arith.addf %320, %319 : vector<32x32xf32>
    %322 = arith.divf %320, %321 : vector<32x32xf32>
    %323 = arith.mulf %317, %322 : vector<32x32xf32>
    %324 = arith.addf %297, %323 : vector<32x32xf32>
    %c1_242 = arith.constant 1 : index
    %c2_243 = arith.constant 2 : index
    %c0_244 = arith.constant 0 : index
    %c0_245 = arith.constant 0 : index
    %325 = vector.load %arg12[%c1_242, %c2_243, %c0_244, %c0_245] : memref<2x7x32x32xf32, #tpu.memory_space<vmem>>, vector<1x1x32x32xf32>
    %326 = vector.shape_cast %325 : vector<1x1x32x32xf32> to vector<32x32xf32>
    %cst_246 = arith.constant dense<0.000000e+00> : vector<32x32xf32>
    %327 = tpu.matmul %324, %326, %cst_246 {dimension_numbers = #tpu.dot_dimension_numbers<[1], [0], [0], [1], [0, 0, 1, 1], [], []>} : vector<32x32xf32>, vector<32x32xf32>, vector<32x32xf32> -> vector<32x32xf32>
    %c1_247 = arith.constant 1 : index
    %c2_248 = arith.constant 2 : index
    %c0_249 = arith.constant 0 : index
    %c0_250 = arith.constant 0 : index
    %328 = vector.load %arg13[%c1_247, %c2_248, %c0_249, %c0_250] : memref<2x7x1x32xf32, #tpu.memory_space<vmem>>, vector<1x1x1x32xf32>
    %329 = vector.shape_cast %328 : vector<1x1x1x32xf32> to vector<1x32xf32>
    %330 = vector.broadcast %329 : vector<1x32xf32> to vector<32x32xf32>
    %331 = arith.addf %327, %330 : vector<32x32xf32>
    %332 = arith.negf %331 : vector<32x32xf32>
    %333 = math.exp %332 : vector<32x32xf32>
    %cst_251 = arith.constant 1.000000e+00 : f32
    %334 = vector.broadcast %cst_251 : f32 to vector<32x32xf32>
    %335 = arith.addf %334, %333 : vector<32x32xf32>
    %336 = arith.divf %334, %335 : vector<32x32xf32>
    %337 = arith.mulf %331, %336 : vector<32x32xf32>
    %338 = arith.addf %337, %198 : vector<32x32xf32>
    %c1_252 = arith.constant 1 : index
    %c3_253 = arith.constant 3 : index
    %c0_254 = arith.constant 0 : index
    %c0_255 = arith.constant 0 : index
    %339 = vector.load %arg12[%c1_252, %c3_253, %c0_254, %c0_255] : memref<2x7x32x32xf32, #tpu.memory_space<vmem>>, vector<1x1x32x32xf32>
    %340 = vector.shape_cast %339 : vector<1x1x32x32xf32> to vector<32x32xf32>
    %cst_256 = arith.constant dense<0.000000e+00> : vector<32x32xf32>
    %341 = tpu.matmul %338, %340, %cst_256 {dimension_numbers = #tpu.dot_dimension_numbers<[1], [0], [0], [1], [0, 0, 1, 1], [], []>} : vector<32x32xf32>, vector<32x32xf32>, vector<32x32xf32> -> vector<32x32xf32>
    %c1_257 = arith.constant 1 : index
    %c3_258 = arith.constant 3 : index
    %c0_259 = arith.constant 0 : index
    %c0_260 = arith.constant 0 : index
    %342 = vector.load %arg13[%c1_257, %c3_258, %c0_259, %c0_260] : memref<2x7x1x32xf32, #tpu.memory_space<vmem>>, vector<1x1x1x32xf32>
    %343 = vector.shape_cast %342 : vector<1x1x1x32xf32> to vector<1x32xf32>
    %344 = vector.broadcast %343 : vector<1x32xf32> to vector<32x32xf32>
    %345 = arith.addf %341, %344 : vector<32x32xf32>
    %346 = arith.negf %345 : vector<32x32xf32>
    %347 = math.exp %346 : vector<32x32xf32>
    %cst_261 = arith.constant 1.000000e+00 : f32
    %348 = vector.broadcast %cst_261 : f32 to vector<32x32xf32>
    %349 = arith.addf %348, %347 : vector<32x32xf32>
    %350 = arith.divf %348, %349 : vector<32x32xf32>
    %351 = arith.mulf %345, %350 : vector<32x32xf32>
    %c1_262 = arith.constant 1 : index
    %c4_263 = arith.constant 4 : index
    %c0_264 = arith.constant 0 : index
    %c0_265 = arith.constant 0 : index
    %352 = vector.load %arg12[%c1_262, %c4_263, %c0_264, %c0_265] : memref<2x7x32x32xf32, #tpu.memory_space<vmem>>, vector<1x1x32x32xf32>
    %353 = vector.shape_cast %352 : vector<1x1x32x32xf32> to vector<32x32xf32>
    %cst_266 = arith.constant dense<0.000000e+00> : vector<32x32xf32>
    %354 = tpu.matmul %351, %353, %cst_266 {dimension_numbers = #tpu.dot_dimension_numbers<[1], [0], [0], [1], [0, 0, 1, 1], [], []>} : vector<32x32xf32>, vector<32x32xf32>, vector<32x32xf32> -> vector<32x32xf32>
    %c1_267 = arith.constant 1 : index
    %c4_268 = arith.constant 4 : index
    %c0_269 = arith.constant 0 : index
    %c0_270 = arith.constant 0 : index
    %355 = vector.load %arg13[%c1_267, %c4_268, %c0_269, %c0_270] : memref<2x7x1x32xf32, #tpu.memory_space<vmem>>, vector<1x1x1x32xf32>
    %356 = vector.shape_cast %355 : vector<1x1x1x32xf32> to vector<1x32xf32>
    %357 = vector.broadcast %356 : vector<1x32xf32> to vector<32x32xf32>
    %358 = arith.addf %354, %357 : vector<32x32xf32>
    %359 = arith.negf %358 : vector<32x32xf32>
    %360 = math.exp %359 : vector<32x32xf32>
    %cst_271 = arith.constant 1.000000e+00 : f32
    %361 = vector.broadcast %cst_271 : f32 to vector<32x32xf32>
    %362 = arith.addf %361, %360 : vector<32x32xf32>
    %363 = arith.divf %361, %362 : vector<32x32xf32>
    %364 = arith.mulf %358, %363 : vector<32x32xf32>
    %365 = arith.addf %338, %364 : vector<32x32xf32>
    %c1_272 = arith.constant 1 : index
    %c5_273 = arith.constant 5 : index
    %c0_274 = arith.constant 0 : index
    %c0_275 = arith.constant 0 : index
    %366 = vector.load %arg12[%c1_272, %c5_273, %c0_274, %c0_275] : memref<2x7x32x32xf32, #tpu.memory_space<vmem>>, vector<1x1x32x32xf32>
    %367 = vector.shape_cast %366 : vector<1x1x32x32xf32> to vector<32x32xf32>
    %cst_276 = arith.constant dense<0.000000e+00> : vector<32x32xf32>
    %368 = tpu.matmul %365, %367, %cst_276 {dimension_numbers = #tpu.dot_dimension_numbers<[1], [0], [0], [1], [0, 0, 1, 1], [], []>} : vector<32x32xf32>, vector<32x32xf32>, vector<32x32xf32> -> vector<32x32xf32>
    %c1_277 = arith.constant 1 : index
    %c5_278 = arith.constant 5 : index
    %c0_279 = arith.constant 0 : index
    %c0_280 = arith.constant 0 : index
    %369 = vector.load %arg13[%c1_277, %c5_278, %c0_279, %c0_280] : memref<2x7x1x32xf32, #tpu.memory_space<vmem>>, vector<1x1x1x32xf32>
    %370 = vector.shape_cast %369 : vector<1x1x1x32xf32> to vector<1x32xf32>
    %371 = vector.broadcast %370 : vector<1x32xf32> to vector<32x32xf32>
    %372 = arith.addf %368, %371 : vector<32x32xf32>
    %373 = arith.negf %372 : vector<32x32xf32>
    %374 = math.exp %373 : vector<32x32xf32>
    %cst_281 = arith.constant 1.000000e+00 : f32
    %375 = vector.broadcast %cst_281 : f32 to vector<32x32xf32>
    %376 = arith.addf %375, %374 : vector<32x32xf32>
    %377 = arith.divf %375, %376 : vector<32x32xf32>
    %378 = arith.mulf %372, %377 : vector<32x32xf32>
    %c1_282 = arith.constant 1 : index
    %c6_283 = arith.constant 6 : index
    %c0_284 = arith.constant 0 : index
    %c0_285 = arith.constant 0 : index
    %379 = vector.load %arg12[%c1_282, %c6_283, %c0_284, %c0_285] : memref<2x7x32x32xf32, #tpu.memory_space<vmem>>, vector<1x1x32x32xf32>
    %380 = vector.shape_cast %379 : vector<1x1x32x32xf32> to vector<32x32xf32>
    %cst_286 = arith.constant dense<0.000000e+00> : vector<32x32xf32>
    %381 = tpu.matmul %378, %380, %cst_286 {dimension_numbers = #tpu.dot_dimension_numbers<[1], [0], [0], [1], [0, 0, 1, 1], [], []>} : vector<32x32xf32>, vector<32x32xf32>, vector<32x32xf32> -> vector<32x32xf32>
    %c1_287 = arith.constant 1 : index
    %c6_288 = arith.constant 6 : index
    %c0_289 = arith.constant 0 : index
    %c0_290 = arith.constant 0 : index
    %382 = vector.load %arg13[%c1_287, %c6_288, %c0_289, %c0_290] : memref<2x7x1x32xf32, #tpu.memory_space<vmem>>, vector<1x1x1x32xf32>
    %383 = vector.shape_cast %382 : vector<1x1x1x32xf32> to vector<1x32xf32>
    %384 = vector.broadcast %383 : vector<1x32xf32> to vector<32x32xf32>
    %385 = arith.addf %381, %384 : vector<32x32xf32>
    %386 = arith.negf %385 : vector<32x32xf32>
    %387 = math.exp %386 : vector<32x32xf32>
    %cst_291 = arith.constant 1.000000e+00 : f32
    %388 = vector.broadcast %cst_291 : f32 to vector<32x32xf32>
    %389 = arith.addf %388, %387 : vector<32x32xf32>
    %390 = arith.divf %388, %389 : vector<32x32xf32>
    %391 = arith.mulf %385, %390 : vector<32x32xf32>
    %392 = arith.addf %365, %391 : vector<32x32xf32>
    %c2_292 = arith.constant 2 : index
    %c0_293 = arith.constant 0 : index
    %c0_294 = arith.constant 0 : index
    %393 = vector.load %arg14[%c2_292, %c0_293, %c0_294] : memref<3x8x32xf32, #tpu.memory_space<vmem>>, vector<1x8x32xf32>
    %394 = vector.shape_cast %393 : vector<1x8x32xf32> to vector<8x32xf32>
    %cst_295 = arith.constant dense<0.000000e+00> : vector<32x32xf32>
    %395 = tpu.matmul %1, %394, %cst_295 {dimension_numbers = #tpu.dot_dimension_numbers<[1], [0], [0], [1], [0, 0, 1, 1], [], []>} : vector<32x8xf32>, vector<8x32xf32>, vector<32x32xf32> -> vector<32x32xf32>
    %396 = arith.mulf %395, %392 : vector<32x32xf32>
    %cst_296 = arith.constant dense<0.000000e+00> : vector<8x32xf32>
    %397 = tpu.matmul %5, %396, %cst_296 {dimension_numbers = #tpu.dot_dimension_numbers<[1], [0], [0], [1], [0, 0, 1, 1], [], []>} : vector<8x32xf32>, vector<32x32xf32>, vector<8x32xf32> -> vector<8x32xf32>
    %c2_297 = arith.constant 2 : index
    %c0_298 = arith.constant 0 : index
    %c0_299 = arith.constant 0 : index
    %398 = vector.load %arg15[%c2_297, %c0_298, %c0_299] : memref<3x32x32xf32, #tpu.memory_space<vmem>>, vector<1x32x32xf32>
    %399 = vector.shape_cast %398 : vector<1x32x32xf32> to vector<32x32xf32>
    %cst_300 = arith.constant dense<0.000000e+00> : vector<8x32xf32>
    %400 = tpu.matmul %397, %399, %cst_300 {dimension_numbers = #tpu.dot_dimension_numbers<[1], [0], [0], [1], [0, 0, 1, 1], [], []>} : vector<8x32xf32>, vector<32x32xf32>, vector<8x32xf32> -> vector<8x32xf32>
    %c2_301 = arith.constant 2 : index
    %c0_302 = arith.constant 0 : index
    %c0_303 = arith.constant 0 : index
    %401 = vector.load %arg16[%c2_301, %c0_302, %c0_303] : memref<3x1x32xf32, #tpu.memory_space<vmem>>, vector<1x1x32xf32>
    %402 = vector.shape_cast %401 : vector<1x1x32xf32> to vector<1x32xf32>
    %403 = vector.broadcast %402 : vector<1x32xf32> to vector<8x32xf32>
    %404 = arith.addf %400, %403 : vector<8x32xf32>
    %c2_304 = arith.constant 2 : index
    %c0_305 = arith.constant 0 : index
    %c0_306 = arith.constant 0 : index
    %c0_307 = arith.constant 0 : index
    %405 = vector.load %arg17[%c2_304, %c0_305, %c0_306, %c0_307] : memref<3x3x32x32xf32, #tpu.memory_space<vmem>>, vector<1x1x32x32xf32>
    %406 = vector.shape_cast %405 : vector<1x1x32x32xf32> to vector<32x32xf32>
    %cst_308 = arith.constant dense<0.000000e+00> : vector<8x32xf32>
    %407 = tpu.matmul %404, %406, %cst_308 {dimension_numbers = #tpu.dot_dimension_numbers<[1], [0], [0], [1], [0, 0, 1, 1], [], []>} : vector<8x32xf32>, vector<32x32xf32>, vector<8x32xf32> -> vector<8x32xf32>
    %c2_309 = arith.constant 2 : index
    %c0_310 = arith.constant 0 : index
    %c0_311 = arith.constant 0 : index
    %c0_312 = arith.constant 0 : index
    %408 = vector.load %arg18[%c2_309, %c0_310, %c0_311, %c0_312] : memref<3x3x1x32xf32, #tpu.memory_space<vmem>>, vector<1x1x1x32xf32>
    %409 = vector.shape_cast %408 : vector<1x1x1x32xf32> to vector<1x32xf32>
    %410 = vector.broadcast %409 : vector<1x32xf32> to vector<8x32xf32>
    %411 = arith.addf %407, %410 : vector<8x32xf32>
    %412 = arith.negf %411 : vector<8x32xf32>
    %413 = math.exp %412 : vector<8x32xf32>
    %cst_313 = arith.constant 1.000000e+00 : f32
    %414 = vector.broadcast %cst_313 : f32 to vector<8x32xf32>
    %415 = arith.addf %414, %413 : vector<8x32xf32>
    %416 = arith.divf %414, %415 : vector<8x32xf32>
    %417 = arith.mulf %411, %416 : vector<8x32xf32>
    %c2_314 = arith.constant 2 : index
    %c1_315 = arith.constant 1 : index
    %c0_316 = arith.constant 0 : index
    %c0_317 = arith.constant 0 : index
    %418 = vector.load %arg17[%c2_314, %c1_315, %c0_316, %c0_317] : memref<3x3x32x32xf32, #tpu.memory_space<vmem>>, vector<1x1x32x32xf32>
    %419 = vector.shape_cast %418 : vector<1x1x32x32xf32> to vector<32x32xf32>
    %cst_318 = arith.constant dense<0.000000e+00> : vector<8x32xf32>
    %420 = tpu.matmul %417, %419, %cst_318 {dimension_numbers = #tpu.dot_dimension_numbers<[1], [0], [0], [1], [0, 0, 1, 1], [], []>} : vector<8x32xf32>, vector<32x32xf32>, vector<8x32xf32> -> vector<8x32xf32>
    %c2_319 = arith.constant 2 : index
    %c1_320 = arith.constant 1 : index
    %c0_321 = arith.constant 0 : index
    %c0_322 = arith.constant 0 : index
    %421 = vector.load %arg18[%c2_319, %c1_320, %c0_321, %c0_322] : memref<3x3x1x32xf32, #tpu.memory_space<vmem>>, vector<1x1x1x32xf32>
    %422 = vector.shape_cast %421 : vector<1x1x1x32xf32> to vector<1x32xf32>
    %423 = vector.broadcast %422 : vector<1x32xf32> to vector<8x32xf32>
    %424 = arith.addf %420, %423 : vector<8x32xf32>
    %425 = arith.negf %424 : vector<8x32xf32>
    %426 = math.exp %425 : vector<8x32xf32>
    %cst_323 = arith.constant 1.000000e+00 : f32
    %427 = vector.broadcast %cst_323 : f32 to vector<8x32xf32>
    %428 = arith.addf %427, %426 : vector<8x32xf32>
    %429 = arith.divf %427, %428 : vector<8x32xf32>
    %430 = arith.mulf %424, %429 : vector<8x32xf32>
    %c2_324 = arith.constant 2 : index
    %c2_325 = arith.constant 2 : index
    %c0_326 = arith.constant 0 : index
    %c0_327 = arith.constant 0 : index
    %431 = vector.load %arg17[%c2_324, %c2_325, %c0_326, %c0_327] : memref<3x3x32x32xf32, #tpu.memory_space<vmem>>, vector<1x1x32x32xf32>
    %432 = vector.shape_cast %431 : vector<1x1x32x32xf32> to vector<32x32xf32>
    %cst_328 = arith.constant dense<0.000000e+00> : vector<8x32xf32>
    %433 = tpu.matmul %430, %432, %cst_328 {dimension_numbers = #tpu.dot_dimension_numbers<[1], [0], [0], [1], [0, 0, 1, 1], [], []>} : vector<8x32xf32>, vector<32x32xf32>, vector<8x32xf32> -> vector<8x32xf32>
    %c2_329 = arith.constant 2 : index
    %c2_330 = arith.constant 2 : index
    %c0_331 = arith.constant 0 : index
    %c0_332 = arith.constant 0 : index
    %434 = vector.load %arg18[%c2_329, %c2_330, %c0_331, %c0_332] : memref<3x3x1x32xf32, #tpu.memory_space<vmem>>, vector<1x1x1x32xf32>
    %435 = vector.shape_cast %434 : vector<1x1x1x32xf32> to vector<1x32xf32>
    %436 = vector.broadcast %435 : vector<1x32xf32> to vector<8x32xf32>
    %437 = arith.addf %433, %436 : vector<8x32xf32>
    %438 = arith.negf %437 : vector<8x32xf32>
    %439 = math.exp %438 : vector<8x32xf32>
    %cst_333 = arith.constant 1.000000e+00 : f32
    %440 = vector.broadcast %cst_333 : f32 to vector<8x32xf32>
    %441 = arith.addf %440, %439 : vector<8x32xf32>
    %442 = arith.divf %440, %441 : vector<8x32xf32>
    %443 = arith.mulf %437, %442 : vector<8x32xf32>
    %c2_334 = arith.constant 2 : index
    %c0_335 = arith.constant 0 : index
    %c0_336 = arith.constant 0 : index
    %444 = vector.load %arg19[%c2_334, %c0_335, %c0_336] : memref<3x32x4xf32, #tpu.memory_space<vmem>>, vector<1x32x4xf32>
    %445 = vector.shape_cast %444 : vector<1x32x4xf32> to vector<32x4xf32>
    %cst_337 = arith.constant dense<0.000000e+00> : vector<8x4xf32>
    %446 = tpu.matmul %443, %445, %cst_337 {dimension_numbers = #tpu.dot_dimension_numbers<[1], [0], [0], [1], [0, 0, 1, 1], [], []>} : vector<8x32xf32>, vector<32x4xf32>, vector<8x4xf32> -> vector<8x4xf32>
    %447 = arith.addf %253, %446 : vector<8x4xf32>
    %c0_338 = arith.constant 0 : index
    %c0_339 = arith.constant 0 : index
    %448 = vector.load %arg20[%c0_338, %c0_339] : memref<8x4xf32, #tpu.memory_space<vmem>>, vector<8x4xf32>
    tpu.vector_store %arg20[%c0_338, %c0_339], %447 {strides = array<i32>} : memref<8x4xf32, #tpu.memory_space<vmem>>, vector<8x4xf32>,
    return
  }
}

</mosaic_0001>

<bundles_post_ra>
// kernel: tpu_custom_call.1
= control target key start
LH: loop header
LB: loop body
LE: loop exit
PB: predicated region body
PF: predicated region fallthrough
CT: control target
= control target key end

     0   :  { %s6149_s0 = inlined_call_operand.vmem [shape: f32[32,32], index: 0, kind: input, shape index: {}]   ;;  %s6150_s1 = inlined_call_operand.vmem [shape: f32[32,8], index: 1, kind: input, shape index: {}]   ;;  %s6151_s2 = inlined_call_operand.vmem [shape: f32[64,32], index: 2, kind: input, shape index: {}]   ;;  %s6152_s3 = inlined_call_operand.vmem [shape: f32[64,32], index: 3, kind: input, shape index: {}]   ;;  %s6153_s4 = inlined_call_operand.vmem [shape: f32[32,64], index: 4, kind: input, shape index: {}]   ;;  %s6154_s5 = inlined_call_operand.vmem [shape: f32[8,32], index: 5, kind: input, shape index: {}]   ;;  %s6155_s6 = inlined_call_operand.vmem [shape: f32[2,8,32], index: 6, kind: input, shape index: {}]   ;;  %s6156_s7 = inlined_call_operand.vmem [shape: f32[2,32,16], index: 7, kind: input, shape index: {}]   ;;  %s6157_s8 = inlined_call_operand.vmem [shape: f32[2,32,64], index: 8, kind: input, shape index: {}]   ;;  %s6158_s9 = inlined_call_operand.vmem [shape: f32[2,1,64], index: 9, kind: input, shape index: {}]   ;;  %s6159_s10 = inlined_call_operand.vmem [shape: f32[2,32,16], index: 10, kind: input, shape index: {}]   ;;  %s6160_s11 = inlined_call_operand.vmem [shape: f32[2,16,32], index: 11, kind: input, shape index: {}]   ;;  %s6161_s12 = inlined_call_operand.hbm [shape: f32[2,7,32,32], index: 12, kind: input, shape index: {}]   ;;  %s6162_s13 = inlined_call_operand.vmem [shape: f32[2,7,1,32], index: 13, kind: input, shape index: {}]   ;;  %s6163_s14 = inlined_call_operand.vmem [shape: f32[3,8,32], index: 14, kind: input, shape index: {}]   ;;  %s6164_s15 = inlined_call_operand.vmem [shape: f32[3,32,32], index: 15, kind: input, shape index: {}]   ;;  %s6165_s16 = inlined_call_operand.vmem [shape: f32[3,1,32], index: 16, kind: input, shape index: {}]   ;;  %s6166_s17 = inlined_call_operand.hbm [shape: f32[3,3,32,32], index: 17, kind: input, shape index: {}]   ;;  %s6167_s18 = inlined_call_operand.vmem [shape: f32[3,3,1,32], index: 18, kind: input, shape index: {}]   ;;  %s6168_s19 = inlined_call_operand.vmem [shape: f32[3,32,4], index: 19, kind: input, shape index: {}]   ;;  %s6169_s20 = inlined_call_operand.vmem [shape: f32[8,4], index: 20, kind: output, shape index: {}]  }
   0x1   :  { %6175 = sst [smem:[#allocation8_spill]] %s6149_s0 }
   0x2   :  { %6176 = sst [smem:[#allocation9_spill]] %s6150_s1 }
   0x3   :  { %6177 = sst [smem:[#allocation10_spill]] %s6151_s2 }
   0x4   :  { %6178 = sst [smem:[#allocation11_spill]] %s6152_s3 }
   0x5   :  { %6179 = sst [smem:[#allocation12_spill]] %s6153_s4 }
   0x6   :  { %25 = vsyncpa [#allocation3], 0  ;;  %s55_s23 = sshll.u32 %s6161_s12, 4  ;;  %s56_s23 = int_to_ptr.hbm [resolvable:$true] %s55_s23 }
   0x7   :  { %26 = vsyncpa [#allocation5], 0  ;;  %s4808_s24 = smov [#allocation2]   ;;  %s76_s26 = sshll.u32 %s6166_s17, 4  ;;  %s77_s26 = int_to_ptr.hbm [resolvable:$true] %s76_s26 }
   0x8   :  { %s57_s2 = sshll.u32 %s4808_s24, 4  ;;  %s4809_s27 = smov 128   ;;  %s58_s2 = int_to_ptr.vmem [resolvable:$true] %s57_s2 }
   0x9   :  { %s4810_s28 = smov 8   ;;  %s4811_s4 = smov [#allocation4]  }
   0xa   :  { %63 = dma.hbm_to_vmem [thread:$0]  %s56_s23, 7168, %s58_s2, [#allocation3], %s4809_s27, %s4809_s27, %s4810_s28  }
   0xb   :  { %s78_s29 = sshll.u32 %s4811_s4, 4  ;;  %s79_s29 = int_to_ptr.vmem [resolvable:$true] %s78_s29 }
   0xc   :  { %84 = dma.hbm_to_vmem [thread:$0]  %s77_s26, 4608, %s79_s29, [#allocation5], %s4809_s27, %s4809_s27, %s4810_s28  }
   0xd   :  { %4804 = dma.done.wait [#allocation3], 7168  }
   0xe   :  { %4805 = vsyncadd [#allocation3], 4294960128 }
   0xf   :  { %4806 = dma.done.wait [#allocation5], 4608  }
  0x10   :  { %4807 = vsyncadd [#allocation5], 4294962688  ;;  %vm127_vm0 = vcmask 64512   ;;  %v126_v0 = vld [vmem:[%s6163_s14] sm:$0xff]  ;;  %s6180_s17 = sld [smem:[#allocation9_spill]]  ;;  %v200_v5 = vld [vmem:[%s6164_s15 + $0x18] sm:$0xff] }
  0x11   :  { %155 = vmatpush.msra.mxu0 %v126_v0  ;;  %4331 = vmatpush.msra.mxu1 %v126_v0  ;;  %v199_v6 = vld [vmem:[%s6164_s15 + $0x10] sm:$0xff]  ;;  %v198_v7 = vld [vmem:[%s6164_s15 + $0x8] sm:$0xff]  ;;  %s6181_s0 = sld [smem:[#allocation8_spill]]  ;;  %v125_v20 = vld [vmem:[%s6154_s5] sm:$0xff]  ;;  %vm173_vm1 = vcmask 261120   ;;  %s4812_s4 = smov 32  }
  0x12   :  { %220 = vmatpush.msra.mxu2 %v200_v5  ;;  %v197_v21 = vld [vmem:[%s6164_s15] sm:$0xff]  ;;  %v231_v22 = vld [vmem:[#allocation4 + $0x18] sm:$0xff]  ;;  %v230_v23 = vld [vmem:[#allocation4 + $0x10] sm:$0xff]  ;;  %s4813_s30 = smov 96   ;;  %s6184_s2 = sld [smem:[#allocation10_spill]] }
  0x13   :  { %251 = vmatpush.msra.mxu3 %v231_v22  ;;  %v229_v25 = vld [vmem:[#allocation4 + $0x8] sm:$0xff]  ;;  %v228_v26 = vld [vmem:[#allocation4] sm:$0xff]  ;;  %v283_v30 = vld [vmem:[#allocation4 + $0x38] sm:$0xff]  ;;  %s6189_s23 = sld [smem:[#allocation11_spill]] }
  0x14   :  { %221 = vmatpush.msra.mxu2 %v199_v6  ;;  %v4338_v27 = vld [vmem:[%s6165_s16] ss:$0 sm:$0xff]  ;;  %v282_v31 = vld [vmem:[#allocation4 + $0x30] sm:$0xff]  ;;  %v281_v33 = vld [vmem:[#allocation4 + $0x28] sm:$0xff]  ;;  %s6190_s3 = sld [smem:[#allocation12_spill]] }
  0x15   :  { %252 = vmatpush.msra.mxu3 %v230_v23  ;;  %v4339_v32 = vld [vmem:[%s6167_s18] ss:$0 sm:$0xff]  ;;  %v392_v52 = vld [vmem:[%s6157_s8 + $0x18] sm:$0xff]  ;;  %v391_v53 = vld [vmem:[%s6157_s8 + $0x10] sm:$0xff] }
  0x16   :  { %v4931_v1 = vld [vmem:[%s6180_s17] sm:$0xff]  ;;  %v4936_v2 = vld [vmem:[%s6180_s17 + $0x18] sm:$0xff]  ;;  %v4945_v3 = vld [vmem:[%s6180_s17 + $0x8] sm:$0xff]  ;;  %222 = vmatpush.msra.mxu2 %v198_v7 }
  0x17   :  { %4027 = vmatmul.msk.f32.vlgmr.msra.gmra.mxu0 %vm127_vm0, %v4931_v1  ;;  %4030 = vmatmul.msk.f32.vlgmr.msra.gmra.mxu1 %vm127_vm0, %v4936_v2  ;;  %v4952_v4 = vld [vmem:[%s6180_s17 + $0x10] sm:$0xff]  ;;  %v4968_v8 = vld [vmem:[%s6181_s0 + $0x18] sm:$0xff]  ;;  %v4979_v15 = vld [vmem:[%s6181_s0 + $0x8] sm:$0xff] }
  0x18   :  { %v4974_v13 = vld [vmem:[%s6181_s0 + $0x10] sm:$0xff]  ;;  %v4985_v17 = vld [vmem:[%s6181_s0] sm:$0xff]  ;;  %223 = vmatpush.msra.mxu2 %v197_v21  ;;  %253 = vmatpush.msra.mxu3 %v229_v25  ;;  %v390_v54 = vld [vmem:[%s6157_s8 + $0x8] sm:$0xff] }
  0x19   :  { %v280_v34 = vld [vmem:[#allocation4 + $0x20] sm:$0xff]  ;;  %v336_v56 = vld [vmem:[#allocation4 + $0x58] sm:$0xff]  ;;  %v335_v57 = vld [vmem:[#allocation4 + $0x50] sm:$0xff] }
  0x1a   :  { %254 = vmatpush.msra.mxu3 %v228_v26  ;;  %v518_v37 = vld [vmem:[%s6155_s6] sm:$0xff]  ;;  %357 = vmatpush.msrb.mxu2 %v336_v56  ;;  %v334_v59 = vld [vmem:[#allocation4 + $0x48] sm:$0xff] }
  0x1b   :  { %v389_v55 = vld [vmem:[%s6157_s8] sm:$0xff] }
  0x1c   :  { %421 = vmatpush.msrb.mxu3 %v392_v52  ;;  %358 = vmatpush.msrb.mxu2 %v335_v57  ;;  %v4340_v58 = vld [vmem:[%s6167_s18 + $0x1] ss:$0 sm:$0xff] }
  0x1d   :  { %v333_v60 = vld [vmem:[#allocation4 + $0x40] sm:$0xff] }
  0x1e   :  { %422 = vmatpush.msrb.mxu3 %v391_v53  ;;  %359 = vmatpush.msrb.mxu2 %v334_v59 }
  0x1f   :  { %4028 = vmatmul.msk.f32.gmra.mxu0 %vm127_vm0, %v4945_v3 }
  0x20   :  { %423 = vmatpush.msrb.mxu3 %v390_v54  ;;  %360 = vmatpush.msrb.mxu2 %v333_v60 }
  0x22   :  { %424 = vmatpush.msrb.mxu3 %v389_v55 }
  0x27   :  { %4029 = vmatmul.msk.f32.gmra.mxu0 %vm127_vm0, %v4952_v4 }
  0x94   :  { %v157_v9 = vpop.f32.mrf.mxu0  ;;  %v166_v10 = vpop.f32.mrf.mxu1 }
  0x95   :  { %v172_v11 = vmul.f32 %v166_v10, %v4968_v8  ;;  %v169_v19 = vmul.f32 %v157_v9, %v4985_v17 }
  0x97   :  { %189 = vmatpush.msrb.mxu1 %v172_v11 }
  0x9c   :  { %v160_v12 = vpop.f32.mrf.mxu0 }
  0x9d   :  { %v170_v18 = vmul.f32 %v160_v12, %v4979_v15 }
  0xa4   :  { %v163_v14 = vpop.f32.mrf.mxu0 }
  0xa5   :  { %v171_v16 = vmul.f32 %v163_v14, %v4974_v13 }
  0xa7   :  { %190 = vmatpush.msrb.mxu1 %v171_v16 }
  0xa9   :  { %191 = vmatpush.msrb.mxu1 %v170_v18  ;;  %v4341_v18 = vld [vmem:[%s6158_s9] ss:$0 sm:$0xff] }
  0xab   :  { %192 = vmatpush.msrb.mxu1 %v169_v19 }
  0xac   :  { %4031 = vmatmul.msk.f32.vlgmr.msrb.gmra.mxu1 %vm173_vm1, %v125_v20 }
  0xad   :  { %304 = vmatpush.msra.mxu1 %v283_v30 }
  0xaf   :  { %305 = vmatpush.msra.mxu1 %v282_v31 }
  0xb1   :  { %306 = vmatpush.msra.mxu1 %v281_v33 }
  0xb3   :  { %307 = vmatpush.msra.mxu1 %v280_v34 }
  0xb5   :  { %534 = vmatpush.msrb.mxu1 %v518_v37 }
 0x129   :  { %v194_v24 = vpop.f32.mrf.mxu1 }
 0x12a   :  { %4032 = vmatmul.msk.f32.vlgmr.msra.gmra.mxu2 %vm173_vm1, %v194_v24 }
 0x1ad   :  { %v225_v28 = vpop.f32.mrf.mxu2 }
 0x1ae   :  { %v226_v29 = vadd.f32 %v4338_v27, %v225_v28 }
 0x1b0   :  { %4033 = vmatmul.msk.f32.vlgmr.msra.gmra.mxu3 %vm173_vm1, %v226_v29 }
 0x1b8   :  { %4041 = vmatmul.msk.f32.vlgmr.msrb.gmra.mxu3 %vm173_vm1, %v4985_v17 }
 0x1c0   :  { %4042 = vmatmul.msk.f32.gmra.mxu3 %vm173_vm1, %v4979_v15 }
 0x1c8   :  { %4043 = vmatmul.msk.f32.gmra.mxu3 %vm173_vm1, %v4974_v13 }
 0x1d0   :  { %4044 = vmatmul.msk.f32.gmra.mxu3 %vm173_vm1, %v4968_v8 }
 0x233   :  { %v256_v35 = vpop.f32.mrf.mxu3 }
 0x234   :  { %v257_v36 = vadd.f32 %v4339_v32, %v256_v35 }
 0x236   :  { %v4034_v38 = vmul.f32 -1.442695, %v257_v36 }
 0x238   :  { %4366 = vpow2.f32 %v4034_v38 }
 0x23b   :  { %v426_v17 = vpop.f32.mrf.mxu3 }
 0x23c   :  { %v427_v19 = vadd.f32 %v4341_v18, %v426_v17 }
 0x23e   :  { %v4367_v39 = vpop.eup %4366  ;;  %v4045_v21 = vmul.f32 -1.442695, %v427_v19 }
 0x23f   :  { %v262_v40 = vadd.f32 1.0, %v4367_v39 }
 0x241   :  { %4368 = vrcp.f32 %v262_v40  ;;  %v274_v44 = vand.u32 2147483648, %v262_v40  ;;  %v272_v46 = vand.u32 2147483647, %v262_v40  ;;  %vm268_vm3 = vweird.f32 %v262_v40 }
 0x243   :  { %v275_v48 = vor.u32 1.1754944e-38, %v274_v44  ;;  %vm273_vm5 = vcmp.eq.f32.partialorder %v272_v46, 8.507059e+37  ;;  %v429_v20 = vpop.f32.mrf.mxu3 }
 0x244   :  { %v5047_v22 = vadd.f32 %v4341_v18, %v429_v20 }
 0x246   :  { %v4046_v23 = vmul.f32 -1.442695, %v5047_v22 }
 0x247   :  { %v4369_v41 = vpop.eup %4368 }
 0x248   :  { %v264_v42 = vmul.f32 %v4369_v41, %v262_v40  ;;  %vm269_vm2 = vweird.f32 %v4369_v41 }
 0x249   :  { %vm270_vm4 = vmor %vm268_vm3, %vm269_vm2 }
 0x24a   :  { %v265_v43 = vsub.f32 1.0, %v264_v42 }
 0x24b   :  { %v432_v24 = vpop.f32.mrf.mxu3 }
 0x24c   :  { %v266_v45 = vmul.f32 %v4369_v41, %v265_v43  ;;  %v5050_v26 = vadd.f32 %v4341_v18, %v432_v24 }
 0x24e   :  { %v267_v47 = vadd.f32 %v4369_v41, %v266_v45  ;;  %v4047_v28 = vmul.f32 -1.442695, %v5050_v26 }
 0x250   :  { %v271_v49 = vsel %vm270_vm4, %v4369_v41, %v267_v47 }
 0x251   :  { %v276_v50 = vsel %vm273_vm5, %v275_v48, %v271_v49 }
 0x252   :  { %v278_v51 = vmul.f32 %v276_v50, %v257_v36 }
 0x253   :  { %v435_v30 = vpop.f32.mrf.mxu3 }
 0x254   :  { %4036 = vmatmul.msk.f32.vlgmr.msra.gmra.mxu1 %vm173_vm1, %v278_v51  ;;  %v5053_v32 = vadd.f32 %v4341_v18, %v435_v30  ;;  %v568_v30 = vld [vmem:[%s6159_s10] sm:$0xff] }
 0x256   :  { %v4048_v34 = vmul.f32 -1.442695, %v5053_v32 }
 0x25c   :  { %4049 = vmatmul.msk.f32.vlgmr.msrb.gmra.mxu1 %vm127_vm0, %v4931_v1 }
 0x264   :  { %4050 = vmatmul.msk.f32.gmra.mxu1 %vm127_vm0, %v4945_v3 }
 0x26c   :  { %4051 = vmatmul.msk.f32.gmra.mxu1 %vm127_vm0, %v4952_v4 }
 0x274   :  { %4052 = vmatmul.msk.f32.gmra.mxu1 %vm127_vm0, %v4936_v2 }
 0x2d1   :  { %v309_v61 = vpop.f32.mrf.mxu1 }
 0x2d2   :  { %v310_v62 = vadd.f32 %v4340_v58, %v309_v61 }
 0x2d4   :  { %v4037_v63 = vmul.f32 -1.442695, %v310_v62 }
 0x2d6   :  { %4370 = vpow2.f32 %v4037_v63 }
 0x2d9   :  { %v536_v0 = vpop.f32.mrf.mxu1 }
 0x2da   :  { %552 = vrot.lane.b32.xlu0 %v536_v0, %s4812_s4 }
 0x2dc   :  { %v4371_v1 = vpop.eup %4370 }
 0x2dd   :  { %v315_v2 = vadd.f32 1.0, %v4371_v1 }
 0x2df   :  { %4372 = vrcp.f32 %v315_v2  ;;  %v327_v7 = vand.u32 2147483648, %v315_v2  ;;  %v325_v10 = vand.u32 2147483647, %v315_v2  ;;  %vm321_vm7 = vweird.f32 %v315_v2 }
 0x2e0   :  { %4374 = vpow2.f32 %v4045_v21 }
 0x2e1   :  { %v539_v3 = vpop.f32.mrf.mxu1  ;;  %v328_v12 = vor.u32 1.1754944e-38, %v327_v7  ;;  %vm326_vm9 = vcmp.eq.f32.partialorder %v325_v10, 8.507059e+37  ;;  %4376 = vpow2.f32 %v4046_v23 }
 0x2e2   :  { %554 = vrot.lane.b32.xlu0 %v539_v3, %s4812_s4 }
 0x2e5   :  { %v4373_v4 = vpop.eup %4372 }
 0x2e6   :  { %v317_v5 = vmul.f32 %v4373_v4, %v315_v2  ;;  %vm322_vm6 = vweird.f32 %v4373_v4  ;;  %v4375_v25 = vpop.eup %4374 }
 0x2e7   :  { %vm323_vm8 = vmor %vm321_vm7, %vm322_vm6  ;;  %v450_v27 = vadd.f32 1.0, %v4375_v25  ;;  %v4377_v29 = vpop.eup %4376 }
 0x2e8   :  { %v318_v6 = vsub.f32 1.0, %v317_v5  ;;  %v451_v31 = vadd.f32 1.0, %v4377_v29  ;;  %v569_v29 = vld [vmem:[%s6159_s10 + $0x8] sm:$0xff] }
 0x2e9   :  { %v542_v8 = vpop.f32.mrf.mxu1  ;;  %4378 = vrcp.f32 %v450_v27  ;;  %vm459_vm10 = vweird.f32 %v450_v27  ;;  %v465_v44 = vand.u32 2147483648, %v450_v27  ;;  %v463_v47 = vand.u32 2147483647, %v450_v27 }
 0x2ea   :  { %v319_v9 = vmul.f32 %v4373_v4, %v318_v6  ;;  %556 = vrot.lane.b32.xlu1 %v542_v8, %s4812_s4  ;;  %4380 = vpow2.f32 %v4047_v28  ;;  %vm474_vm14 = vweird.f32 %v451_v31  ;;  %v480_v55 = vand.u32 2147483648, %v451_v31  ;;  %v570_v28 = vld [vmem:[%s6159_s10 + $0x10] sm:$0xff] }
 0x2eb   :  { %4382 = vrcp.f32 %v451_v31  ;;  %v466_v49 = vor.u32 1.1754944e-38, %v465_v44  ;;  %vm464_vm13 = vcmp.eq.f32.partialorder %v463_v47, 8.507059e+37  ;;  %v478_v57 = vand.u32 2147483647, %v451_v31 }
 0x2ec   :  { %v320_v11 = vadd.f32 %v4373_v4, %v319_v9  ;;  %4384 = vpow2.f32 %v4048_v34  ;;  %v481_v63 = vor.u32 1.1754944e-38, %v480_v55  ;;  %v106_v55 = vld [vmem:[%s6184_s2 + $0x8] sm:$0xff] }
 0x2ed   :  { %vm479_vm3 = vcmp.eq.f32.partialorder %v478_v57, 8.507059e+37 }
 0x2ee   :  { %v324_v13 = vsel %vm323_vm8, %v4373_v4, %v320_v11 }
 0x2ef   :  { %v329_v14 = vsel %vm326_vm9, %v328_v12, %v324_v13  ;;  %v4379_v33 = vpop.eup %4378 }
 0x2f0   :  { %v331_v15 = vmul.f32 %v329_v14, %v310_v62  ;;  %v4381_v35 = vpop.eup %4380  ;;  %v455_v36 = vmul.f32 %v4379_v33, %v450_v27  ;;  %vm460_vm11 = vweird.f32 %v4379_v33 }
 0x2f1   :  { %v545_v16 = vpop.f32.mrf.mxu1  ;;  %v452_v37 = vadd.f32 1.0, %v4381_v35  ;;  %v4383_v38 = vpop.eup %4382  ;;  %vm461_vm12 = vmor %vm459_vm10, %vm460_vm11 }
 0x2f2   :  { %558 = vrot.lane.b32.xlu1 %v545_v16, %s4812_s4  ;;  %4039 = vmatmul.msk.f32.vlgmr.msrb.gmra.mxu2 %vm173_vm1, %v331_v15  ;;  %v456_v39 = vsub.f32 1.0, %v455_v36  ;;  %v470_v40 = vmul.f32 %v4383_v38, %v451_v31  ;;  %v4385_v41 = vpop.eup %4384  ;;  %vm475_vm15 = vweird.f32 %v4383_v38 }
 0x2f3   :  { %4386 = vrcp.f32 %v452_v37  ;;  %v453_v43 = vadd.f32 1.0, %v4385_v41  ;;  %vm5056_vm2 = vmor %vm474_vm14, %vm475_vm15  ;;  %vm489_vm4 = vweird.f32 %v452_v37  ;;  %v495_v4 = vand.u32 2147483648, %v452_v37 }
 0x2f4   :  { %v457_v42 = vmul.f32 %v4379_v33, %v456_v39  ;;  %v471_v45 = vsub.f32 1.0, %v470_v40  ;;  %v493_v6 = vand.u32 2147483647, %v452_v37  ;;  %v767_v40 = vld [vmem:[%s6156_s7 + $0x8] sm:$0xff] }
 0x2f5   :  { %4388 = vrcp.f32 %v453_v43  ;;  %v496_v10 = vor.u32 1.1754944e-38, %v495_v4  ;;  %vm504_vm8 = vweird.f32 %v453_v43  ;;  %v510_v15 = vand.u32 2147483648, %v453_v43 }
 0x2f6   :  { %v458_v46 = vadd.f32 %v4379_v33, %v457_v42  ;;  %v472_v50 = vmul.f32 %v4383_v38, %v471_v45  ;;  %vm494_vm7 = vcmp.eq.f32.partialorder %v493_v6, 8.507059e+37  ;;  %v508_v17 = vand.u32 2147483647, %v453_v43 }
 0x2f7   :  { %v511_v20 = vor.u32 1.1754944e-38, %v510_v15 }
 0x2f8   :  { %v462_v51 = vsel %vm461_vm12, %v4379_v33, %v458_v46  ;;  %v473_v54 = vadd.f32 %v4383_v38, %v472_v50  ;;  %vm509_vm11 = vcmp.eq.f32.partialorder %v508_v17, 8.507059e+37  ;;  %v105_v50 = vld [vmem:[%s6184_s2] sm:$0xff] }
 0x2f9   :  { %v4387_v48 = vpop.eup %4386  ;;  %v467_v53 = vsel %vm464_vm13, %v466_v49, %v462_v51  ;;  %v766_v49 = vld [vmem:[%s6156_s7] sm:$0xff] }
 0x2fa   :  { %v485_v52 = vmul.f32 %v4387_v48, %v452_v37  ;;  %v5060_v60 = vmul.f32 %v467_v53, %v427_v19  ;;  %v477_v62 = vsel %vm5056_vm2, %v4383_v38, %v473_v54  ;;  %vm490_vm5 = vweird.f32 %v4387_v48  ;;  %v769_v37 = vld [vmem:[%s6156_s7 + $0x18] sm:$0xff]  ;;  %v768_v38 = vld [vmem:[%s6156_s7 + $0x10] sm:$0xff] }
 0x2fb   :  { %v4389_v59 = vpop.eup %4388  ;;  %v482_v3 = vsel %vm479_vm3, %v481_v63, %v477_v62  ;;  %vm491_vm6 = vmor %vm489_vm4, %vm490_vm5  ;;  %806 = vmatpush.msra.mxu3 %v769_v37 }
 0x2fc   :  { %v486_v58 = vsub.f32 1.0, %v485_v52  ;;  %v500_v2 = vmul.f32 %v4389_v59, %v453_v43  ;;  %v5067_v8 = vmul.f32 %v482_v3, %v5047_v22  ;;  %vm505_vm9 = vweird.f32 %v4389_v59  ;;  %v107_v3 = vld [vmem:[%s6184_s2 + $0x10] sm:$0xff] }
 0x2fd   :  { %vm506_vm10 = vmor %vm504_vm8, %vm505_vm9  ;;  %807 = vmatpush.msra.mxu3 %v768_v38 }
 0x2fe   :  { %v487_v1 = vmul.f32 %v4387_v48, %v486_v58  ;;  %v501_v7 = vsub.f32 1.0, %v500_v2 }
 0x2ff   :  { %808 = vmatpush.msra.mxu3 %v767_v40 }
 0x300   :  { %v488_v5 = vadd.f32 %v4387_v48, %v487_v1  ;;  %v502_v13 = vmul.f32 %v4389_v59, %v501_v7 }
 0x301   :  { %809 = vmatpush.msra.mxu3 %v766_v49 }
 0x302   :  { %v492_v12 = vsel %vm491_vm6, %v4387_v48, %v488_v5  ;;  %v503_v16 = vadd.f32 %v4389_v59, %v502_v13  ;;  %4069 = vmatmul.msk.f32.vlgmr.msra.gmra.mxu3 %vm173_vm1, %v105_v50 }
 0x303   :  { %v497_v14 = vsel %vm494_vm7, %v496_v10, %v492_v12 }
 0x304   :  { %v5072_v18 = vmul.f32 %v497_v14, %v5050_v26  ;;  %v507_v22 = vsel %vm506_vm10, %v4389_v59, %v503_v16  ;;  %v571_v26 = vld [vmem:[%s6159_s10 + $0x18] sm:$0xff] }
 0x305   :  { %v512_v23 = vsel %vm509_vm11, %v511_v20, %v507_v22  ;;  %604 = vmatpush.msra.mxu2 %v571_v26  ;;  %v108_v16 = vld [vmem:[%s6184_s2 + $0x18] sm:$0xff] }
 0x306   :  { %v5077_v24 = vmul.f32 %v512_v23, %v5053_v32  ;;  %v124_v26 = vld [vmem:[%s6190_s3 + $0x18] sm:$0xff] }
 0x307   :  { %605 = vmatpush.msra.mxu2 %v570_v28 }
 0x309   :  { %606 = vmatpush.msra.mxu2 %v569_v29 }
 0x30a   :  { %4070 = vmatmul.msk.f32.gmra.mxu3 %vm173_vm1, %v106_v55  ;;  %v117_v55 = vld [vmem:[%s6189_s23 + $0x20] sm:$0xff] }
 0x30b   :  { %607 = vmatpush.msra.mxu2 %v568_v30 }
 0x312   :  { %4071 = vmatmul.msk.f32.gmra.mxu3 %vm173_vm1, %v107_v3 }
 0x31a   :  { %4072 = vmatmul.msk.f32.gmra.mxu3 %vm173_vm1, %v108_v16 }
 0x34c   :  { %v553_v61 = vpop.permute.xlu0 %552 }
 0x34d   :  { %v564_v0 = vmul.f32 %v553_v61, %v5060_v60 }
 0x34f   :  { %576 = vrot.lane.b32.xlu2 %v564_v0, %s4813_s30 }
 0x354   :  { %v555_v9 = vpop.permute.xlu0 %554 }
 0x355   :  { %v565_v11 = vmul.f32 %v555_v9, %v5067_v8 }
 0x357   :  { %578 = vrot.lane.b32.xlu2 %v565_v11, %s4813_s30 }
 0x35c   :  { %v557_v19 = vpop.permute.xlu1 %556 }
 0x35d   :  { %v566_v21 = vmul.f32 %v557_v19, %v5072_v18 }
 0x35f   :  { %580 = vrot.lane.b32.xlu0 %v566_v21, %s4813_s30 }
 0x364   :  { %v559_v25 = vpop.permute.xlu1 %558 }
 0x365   :  { %v567_v27 = vmul.f32 %v559_v25, %v5077_v24 }
 0x367   :  { %582 = vrot.lane.b32.xlu1 %v567_v27, %s4813_s30 }
 0x375   :  { %v5097_v35 = vpop.f32.mrf.mxu2 }
 0x3a9   :  { %v577_v31 = vpop.permute.xlu2 %576 }
 0x3aa   :  { %4053 = vmatmul.msk.f32.vlgmr.msra.gmra.mxu2 %vm173_vm1, %v577_v31 }
 0x3b1   :  { %v579_v32 = vpop.permute.xlu2 %578 }
 0x3b2   :  { %4054 = vmatmul.msk.f32.gmra.mxu2 %vm173_vm1, %v579_v32 }
 0x3d1   :  { %v581_v33 = vpop.permute.xlu0 %580 }
 0x3d2   :  { %4055 = vmatmul.msk.f32.gmra.mxu2 %vm173_vm1, %v581_v33 }
 0x3d9   :  { %v583_v34 = vpop.permute.xlu1 %582 }
 0x3da   :  { %4056 = vmatmul.msk.f32.gmra.mxu2 %vm173_vm1, %v583_v34 }
 0x42d   :  { %v5099_v36 = vpop.f32.mrf.mxu2 }
 0x42e   :  { %v4057_v42 = vmul.f32 -1.442695, %v5099_v36 }
 0x435   :  { %v5107_v39 = vpop.f32.mrf.mxu2 }
 0x436   :  { %v4058_v41 = vmul.f32 -1.442695, %v5107_v39 }
 0x438   :  { %4390 = vpow2.f32 %v4058_v41 }
 0x439   :  { %4392 = vpow2.f32 %v4057_v42 }
 0x43e   :  { %v4391_v45 = vpop.eup %4390 }
 0x43f   :  { %v4393_v46 = vpop.eup %4392  ;;  %v5117_v47 = vadd.f32 1.0, %v4391_v45 }
 0x440   :  { %v5119_v48 = vadd.f32 1.0, %v4393_v46  ;;  %v109_v46 = vld [vmem:[%s6184_s2 + $0x20] sm:$0xff] }
 0x441   :  { %vm657_vm4 = vweird.f32 %v5117_v47  ;;  %v661_v22 = vand.u32 2147483647, %v5117_v47  ;;  %v663_v23 = vand.u32 2147483648, %v5117_v47  ;;  %4073 = vmatmul.msk.f32.gmra.mxu3 %vm173_vm1, %v109_v46 }
 0x442   :  { %vm642_vm12 = vweird.f32 %v5119_v48  ;;  %v646_v31 = vand.u32 2147483647, %v5119_v48  ;;  %v648_v32 = vand.u32 2147483648, %v5119_v48 }
 0x443   :  { %v664_v40 = vor.u32 1.1754944e-38, %v663_v23  ;;  %v121_v23 = vld [vmem:[%s6190_s3] sm:$0xff] }
 0x444   :  { %v649_v45 = vor.u32 1.1754944e-38, %v648_v32 }
 0x455   :  { %v5114_v43 = vpop.f32.mrf.mxu2 }
 0x456   :  { %v4059_v44 = vmul.f32 -1.442695, %v5114_v43 }
 0x458   :  { %4394 = vpow2.f32 %v4059_v44 }
 0x459   :  { %4396 = vrcp.f32 %v5117_v47 }
 0x45a   :  { %4398 = vrcp.f32 %v5119_v48 }
 0x45d   :  { %v5127_v51 = vpop.f32.mrf.mxu2 }
 0x45e   :  { %v4395_v52 = vpop.eup %4394  ;;  %v4060_v53 = vmul.f32 -1.442695, %v5127_v51 }
 0x45f   :  { %v635_v54 = vadd.f32 1.0, %v4395_v52  ;;  %v5136_v56 = vpop.eup %4396  ;;  %v115_v52 = vld [vmem:[%s6189_s23 + $0x10] sm:$0xff] }
 0x460   :  { %4400 = vpow2.f32 %v4060_v53  ;;  %v5138_v57 = vpop.eup %4398  ;;  %v653_v62 = vmul.f32 %v5136_v56, %v5117_v47  ;;  %vm658_vm14 = vweird.f32 %v5136_v56  ;;  %v112_v53 = vld [vmem:[%s6184_s2 + $0x38] sm:$0xff] }
 0x461   :  { %4402 = vrcp.f32 %v635_v54  ;;  %v638_v0 = vmul.f32 %v5138_v57, %v5119_v48  ;;  %vm672_vm15 = vweird.f32 %v635_v54  ;;  %v678_v14 = vand.u32 2147483648, %v635_v54  ;;  %vm5170_vm7 = vmor %vm657_vm4, %vm658_vm14 }
 0x462   :  { %v654_v2 = vsub.f32 1.0, %v653_v62  ;;  %v676_v20 = vand.u32 2147483647, %v635_v54  ;;  %vm643_vm5 = vweird.f32 %v5138_v57  ;;  %vm647_vm14 = vcmp.eq.f32.partialorder %v646_v31, 8.507059e+37 }
 0x463   :  { %v639_v4 = vsub.f32 1.0, %v638_v0  ;;  %v679_v30 = vor.u32 1.1754944e-38, %v678_v14  ;;  %vm644_vm11 = vmor %vm642_vm12, %vm643_vm5  ;;  %vm843_vm12 = vcmask 523264  }
 0x464   :  { %v655_v7 = vmul.f32 %v5136_v56, %v654_v2  ;;  %vm677_vm10 = vcmp.eq.f32.partialorder %v676_v20, 8.507059e+37 }
 0x465   :  { %v640_v10 = vmul.f32 %v5138_v57, %v639_v4 }
 0x466   :  { %v4401_v58 = vpop.eup %4400  ;;  %v656_v15 = vadd.f32 %v5136_v56, %v655_v7 }
 0x467   :  { %v4403_v59 = vpop.eup %4402  ;;  %v636_v61 = vadd.f32 1.0, %v4401_v58  ;;  %v641_v28 = vadd.f32 %v5138_v57, %v640_v10  ;;  %v120_v58 = vld [vmem:[%s6189_s23 + $0x38] sm:$0xff] }
 0x468   :  { %v668_v63 = vmul.f32 %v4403_v59, %v635_v54  ;;  %vm673_vm13 = vweird.f32 %v4403_v59  ;;  %v660_v34 = vsel %vm5170_vm7, %v5136_v56, %v656_v15  ;;  %v116_v54 = vld [vmem:[%s6189_s23 + $0x18] sm:$0xff]  ;;  %v118_v56 = vld [vmem:[%s6189_s23 + $0x28] sm:$0xff] }
 0x469   :  { %4404 = vrcp.f32 %v636_v61  ;;  %v693_v13 = vand.u32 2147483648, %v636_v61  ;;  %v691_v19 = vand.u32 2147483647, %v636_v61  ;;  %vm5157_vm3 = vmor %vm672_vm15, %vm673_vm13  ;;  %vm687_vm6 = vweird.f32 %v636_v61 }
 0x46a   :  { %v669_v1 = vsub.f32 1.0, %v668_v63  ;;  %vm662_vm13 = vcmp.eq.f32.partialorder %v661_v22, 8.507059e+37  ;;  %v645_v42 = vsel %vm644_vm11, %v5138_v57, %v641_v28  ;;  %v119_v57 = vld [vmem:[%s6189_s23 + $0x30] sm:$0xff]  ;;  %v885_v28 = vld [vmem:[%s6160_s11] sm:$0xff]  ;;  %vm887_vm15 = vcmask 130048  }
 0x46b   :  { %v694_v29 = vor.u32 1.1754944e-38, %v693_v13  ;;  %vm692_vm9 = vcmp.eq.f32.partialorder %v691_v19, 8.507059e+37  ;;  %v665_v44 = vsel %vm662_vm13, %v664_v40, %v660_v34  ;;  %v650_v49 = vsel %vm647_vm14, %v649_v45, %v645_v42  ;;  %v886_v19 = vld [vmem:[%s6160_s11 + $0x8] sm:$0xff]  ;;  %v1015_v34 = vld [vmem:[#allocation2 + $0x10] sm:$0xff]  ;;  %v1013_v40 = vld [vmem:[#allocation2] sm:$0xff] }
 0x46c   :  { %v670_v5 = vmul.f32 %v4403_v59, %v669_v1  ;;  %v698_v48 = vmul.f32 %v665_v44, %v5107_v39  ;;  %v697_v50 = vmul.f32 %v650_v49, %v5099_v36  ;;  %v114_v39 = vld [vmem:[%s6189_s23 + $0x8] sm:$0xff]  ;;  %v111_v36 = vld [vmem:[%s6184_s2 + $0x30] sm:$0xff]  ;;  %914 = vmatpush.msrb.mxu2 %v886_v19 }
 0x46e   :  { %v671_v12 = vadd.f32 %v4403_v59, %v670_v5  ;;  %915 = vmatpush.msrb.mxu2 %v885_v28 }
 0x46f   :  { %v4405_v6 = vpop.eup %4404 }
 0x470   :  { %v683_v9 = vmul.f32 %v4405_v6, %v636_v61  ;;  %vm688_vm2 = vweird.f32 %v4405_v6  ;;  %v675_v27 = vsel %vm5157_vm3, %v4403_v59, %v671_v12  ;;  %v811_v59 = vpop.f32.mrf.mxu3 }
 0x471   :  { %vm689_vm8 = vmor %vm687_vm6, %vm688_vm2  ;;  %v680_v38 = vsel %vm677_vm10, %v679_v30, %v675_v27  ;;  %v123_v27 = vld [vmem:[%s6190_s3 + $0x10] sm:$0xff] }
 0x472   :  { %v684_v11 = vsub.f32 1.0, %v683_v9  ;;  %v699_v47 = vmul.f32 %v680_v38, %v5114_v43  ;;  %v110_v43 = vld [vmem:[%s6184_s2 + $0x28] sm:$0xff] }
 0x473   :  { %4074 = vmatmul.msk.f32.gmra.mxu3 %vm173_vm1, %v110_v43 }
 0x474   :  { %v685_v17 = vmul.f32 %v4405_v6, %v684_v11 }
 0x476   :  { %v686_v25 = vadd.f32 %v4405_v6, %v685_v17 }
 0x478   :  { %v690_v33 = vsel %vm689_vm8, %v4405_v6, %v686_v25  ;;  %v814_v61 = vpop.f32.mrf.mxu3  ;;  %v122_v25 = vld [vmem:[%s6190_s3 + $0x8] sm:$0xff] }
 0x479   :  { %v695_v37 = vsel %vm692_vm9, %v694_v29, %v690_v33  ;;  %v1016_v33 = vld [vmem:[#allocation2 + $0x18] sm:$0xff] }
 0x47a   :  { %v700_v41 = vmul.f32 %v695_v37, %v5127_v51  ;;  %v113_v51 = vld [vmem:[%s6189_s23] sm:$0xff]  ;;  %v1014_v37 = vld [vmem:[#allocation2 + $0x8] sm:$0xff] }
 0x47b   :  { %4075 = vmatmul.msk.f32.gmra.mxu3 %vm173_vm1, %v111_v36 }
 0x47c   :  { %737 = vmatpush.msrb.mxu0 %v700_v41 }
 0x47e   :  { %738 = vmatpush.msrb.mxu0 %v699_v47 }
 0x480   :  { %739 = vmatpush.msrb.mxu0 %v698_v48  ;;  %v817_v63 = vpop.f32.mrf.mxu3 }
 0x482   :  { %740 = vmatpush.msrb.mxu0 %v697_v50 }
 0x483   :  { %4061 = vmatmul.msk.f32.vlgmr.msrb.gmra.mxu0 %vm173_vm1, %v113_v51  ;;  %4076 = vmatmul.msk.f32.gmra.mxu3 %vm173_vm1, %v112_v53 }
 0x488   :  { %v820_v1 = vpop.f32.mrf.mxu3 }
 0x48b   :  { %4062 = vmatmul.msk.f32.gmra.mxu0 %vm173_vm1, %v114_v39 }
 0x493   :  { %4063 = vmatmul.msk.f32.gmra.mxu0 %vm173_vm1, %v115_v52 }
 0x49b   :  { %4064 = vmatmul.msk.f32.gmra.mxu0 %vm173_vm1, %v116_v54 }
 0x4a3   :  { %4065 = vmatmul.msk.f32.gmra.mxu0 %vm173_vm1, %v117_v55 }
 0x4ab   :  { %4066 = vmatmul.msk.f32.gmra.mxu0 %vm173_vm1, %v118_v56 }
 0x4b3   :  { %4067 = vmatmul.msk.f32.gmra.mxu0 %vm173_vm1, %v119_v57 }
 0x4bb   :  { %4068 = vmatmul.msk.f32.gmra.mxu0 %vm173_vm1, %v120_v58 }
 0x4c4   :  { %v823_v4 = vpop.f32.mrf.mxu3 }
 0x4f6   :  { %v826_v6 = vpop.f32.mrf.mxu3 }
 0x4fe   :  { %v829_v9 = vpop.f32.mrf.mxu3 }
 0x500   :  { %v742_v62 = vpop.f32.mrf.mxu0 }
 0x501   :  { %v835_v22 = vmul.f32 %v811_v59, %v742_v62 }
 0x506   :  { %v832_v11 = vpop.f32.mrf.mxu3 }
 0x508   :  { %v745_v0 = vpop.f32.mrf.mxu0 }
 0x509   :  { %v836_v21 = vmul.f32 %v814_v61, %v745_v0 }
 0x510   :  { %v748_v2 = vpop.f32.mrf.mxu0 }
 0x511   :  { %v837_v20 = vmul.f32 %v817_v63, %v748_v2 }
 0x518   :  { %v751_v3 = vpop.f32.mrf.mxu0 }
 0x519   :  { %v838_v17 = vmul.f32 %v820_v1, %v751_v3 }
 0x520   :  { %v754_v5 = vpop.f32.mrf.mxu0 }
 0x521   :  { %v839_v16 = vmul.f32 %v823_v4, %v754_v5 }
 0x528   :  { %v757_v7 = vpop.f32.mrf.mxu0 }
 0x529   :  { %v840_v15 = vmul.f32 %v826_v6, %v757_v7 }
 0x530   :  { %v760_v10 = vpop.f32.mrf.mxu0 }
 0x531   :  { %v841_v14 = vmul.f32 %v829_v9, %v760_v10 }
 0x538   :  { %v763_v12 = vpop.f32.mrf.mxu0 }
 0x539   :  { %v842_v13 = vmul.f32 %v832_v11, %v763_v12 }
 0x53b   :  { %864 = vmatpush.msra.mxu1 %v842_v13 }
 0x53d   :  { %865 = vmatpush.msra.mxu1 %v841_v14 }
 0x53f   :  { %866 = vmatpush.msra.mxu1 %v840_v15 }
 0x541   :  { %867 = vmatpush.msra.mxu1 %v839_v16 }
 0x543   :  { %868 = vmatpush.msra.mxu1 %v838_v17 }
 0x545   :  { %869 = vmatpush.msra.mxu1 %v837_v20 }
 0x547   :  { %870 = vmatpush.msra.mxu1 %v836_v21 }
 0x549   :  { %871 = vmatpush.msra.mxu1 %v835_v22 }
 0x54a   :  { %4077 = vmatmul.msk.f32.vlgmr.msra.gmra.mxu1 %vm843_vm12, %v121_v23 }
 0x54b   :  { %1045 = vmatpush.msrb.mxu1 %v1016_v33 }
 0x54d   :  { %1046 = vmatpush.msrb.mxu1 %v1015_v34 }
 0x54f   :  { %1047 = vmatpush.msrb.mxu1 %v1014_v37 }
 0x551   :  { %1048 = vmatpush.msrb.mxu1 %v1013_v40 }
 0x552   :  { %4078 = vmatmul.msk.f32.gmra.mxu1 %vm843_vm12, %v122_v25 }
 0x55a   :  { %4079 = vmatmul.msk.f32.gmra.mxu1 %vm843_vm12, %v123_v27 }
 0x562   :  { %4080 = vmatmul.msk.f32.gmra.mxu1 %vm843_vm12, %v124_v26 }
 0x5c7   :  { %v873_v29 = vpop.f32.mrf.mxu1 }
 0x5c8   :  { %4081 = vmatmul.msk.f32.vlgmr.msrb.gmra.mxu2 %vm887_vm15, %v873_v29 }
 0x5cf   :  { %v876_v30 = vpop.f32.mrf.mxu1 }
 0x5d0   :  { %4082 = vmatmul.msk.f32.gmra.mxu2 %vm887_vm15, %v876_v30 }
 0x5d7   :  { %v879_v31 = vpop.f32.mrf.mxu1 }
 0x5d8   :  { %4083 = vmatmul.msk.f32.gmra.mxu2 %vm887_vm15, %v879_v31 }
 0x5df   :  { %v882_v32 = vpop.f32.mrf.mxu1 }
 0x5e0   :  { %4084 = vmatmul.msk.f32.gmra.mxu2 %vm887_vm15, %v882_v32 }
 0x64b   :  { %v917_v38 = vpop.f32.mrf.mxu2 }
 0x64c   :  { %v4085_v41 = vmul.f32 -1.442695, %v917_v38 }
 0x64e   :  { %4406 = vpow2.f32 %v4085_v41 }
 0x653   :  { %v920_v42 = vpop.f32.mrf.mxu2 }
 0x654   :  { %v4407_v44 = vpop.eup %4406  ;;  %v4086_v45 = vmul.f32 -1.442695, %v920_v42 }
 0x655   :  { %v941_v46 = vadd.f32 1.0, %v4407_v44  ;;  %v1145_v44 = vld [vmem:[#allocation2 + $0x30] sm:$0xff] }
 0x656   :  { %4408 = vpow2.f32 %v4086_v45  ;;  %v4343_v45 = vld [vmem:[%s6162_s13] ss:$0 sm:$0xff] }
 0x657   :  { %4410 = vrcp.f32 %v941_v46  ;;  %v956_v36 = vand.u32 2147483648, %v941_v46  ;;  %v954_v53 = vand.u32 2147483647, %v941_v46  ;;  %vm950_vm3 = vweird.f32 %v941_v46 }
 0x659   :  { %v957_v59 = vor.u32 1.1754944e-38, %v956_v36  ;;  %vm955_vm5 = vcmp.eq.f32.partialorder %v954_v53, 8.507059e+37 }
 0x65b   :  { %v5263_v47 = vpop.f32.mrf.mxu2 }
 0x65c   :  { %v4409_v49 = vpop.eup %4408  ;;  %v4087_v48 = vmul.f32 -1.442695, %v5263_v47 }
 0x65d   :  { %v4411_v50 = vpop.eup %4410  ;;  %v942_v51 = vadd.f32 1.0, %v4409_v49  ;;  %v1143_v49 = vld [vmem:[#allocation2 + $0x20] sm:$0xff] }
 0x65e   :  { %v946_v43 = vmul.f32 %v4411_v50, %v941_v46  ;;  %4412 = vpow2.f32 %v4087_v48  ;;  %vm951_vm2 = vweird.f32 %v4411_v50  ;;  %v1144_v46 = vld [vmem:[#allocation2 + $0x28] sm:$0xff] }
 0x65f   :  { %4414 = vrcp.f32 %v942_v51  ;;  %vm952_vm4 = vmor %vm950_vm3, %vm951_vm2  ;;  %v971_v3 = vand.u32 2147483648, %v942_v51  ;;  %v969_v6 = vand.u32 2147483647, %v942_v51  ;;  %vm965_vm7 = vweird.f32 %v942_v51 }
 0x660   :  { %v947_v39 = vsub.f32 1.0, %v946_v43 }
 0x661   :  { %v972_v11 = vor.u32 1.1754944e-38, %v971_v3  ;;  %vm970_vm9 = vcmp.eq.f32.partialorder %v969_v6, 8.507059e+37 }
 0x662   :  { %v948_v52 = vmul.f32 %v4411_v50, %v947_v39 }
 0x663   :  { %v5266_v54 = vpop.f32.mrf.mxu2 }
 0x664   :  { %v4413_v55 = vpop.eup %4412  ;;  %v949_v56 = vadd.f32 %v4411_v50, %v948_v52  ;;  %v4088_v57 = vmul.f32 -1.442695, %v5266_v54 }
 0x665   :  { %v4415_v58 = vpop.eup %4414  ;;  %v943_v61 = vadd.f32 1.0, %v4413_v55 }
 0x666   :  { %v953_v62 = vsel %vm952_vm4, %v4411_v50, %v949_v56  ;;  %v961_v63 = vmul.f32 %v4415_v58, %v942_v51  ;;  %4416 = vpow2.f32 %v4088_v57  ;;  %vm966_vm6 = vweird.f32 %v4415_v58 }
 0x667   :  { %v958_v0 = vsel %vm955_vm5, %v957_v59, %v953_v62  ;;  %4418 = vrcp.f32 %v943_v61  ;;  %vm967_vm8 = vmor %vm965_vm7, %vm966_vm6  ;;  %v986_v17 = vand.u32 2147483648, %v943_v61  ;;  %v984_v20 = vand.u32 2147483647, %v943_v61 }
 0x668   :  { %v1005_v1 = vmul.f32 %v958_v0, %v917_v38  ;;  %v962_v2 = vsub.f32 1.0, %v961_v63  ;;  %vm980_vm11 = vweird.f32 %v943_v61 }
 0x669   :  { %v987_v25 = vor.u32 1.1754944e-38, %v986_v17  ;;  %vm985_vm14 = vcmp.eq.f32.partialorder %v984_v20, 8.507059e+37 }
 0x66a   :  { %v5270_v4 = vadd.f32 %v1005_v1, %v5060_v60  ;;  %v963_v5 = vmul.f32 %v4415_v58, %v962_v2  ;;  %v1281_v2 = vld [vmem:[#allocation2 + $0x58] sm:$0xff] }
 0x66b   :  { %1311 = vmatpush.msra.mxu0 %v1281_v2 }
 0x66c   :  { %v4417_v7 = vpop.eup %4416  ;;  %v964_v9 = vadd.f32 %v4415_v58, %v963_v5  ;;  %4089 = vmatmul.msk.f32.vlgmr.msrb.gmra.mxu1 %vm173_vm1, %v5270_v4 }
 0x66d   :  { %v4419_v10 = vpop.eup %4418  ;;  %v944_v12 = vadd.f32 1.0, %v4417_v7 }
 0x66e   :  { %v968_v13 = vsel %vm967_vm8, %v4415_v58, %v964_v9  ;;  %v976_v14 = vmul.f32 %v4419_v10, %v943_v61  ;;  %vm981_vm10 = vweird.f32 %v4419_v10 }
 0x66f   :  { %v973_v15 = vsel %vm970_vm9, %v972_v11, %v968_v13  ;;  %4420 = vrcp.f32 %v944_v12  ;;  %vm982_vm13 = vmor %vm980_vm11, %vm981_vm10  ;;  %v1001_v31 = vand.u32 2147483648, %v944_v12  ;;  %vm995_vm3 = vweird.f32 %v944_v12 }
 0x670   :  { %v1006_v60 = vmul.f32 %v973_v15, %v920_v42  ;;  %v977_v16 = vsub.f32 1.0, %v976_v14 }
 0x671   :  { %v1002_v37 = vor.u32 1.1754944e-38, %v1001_v31 }
 0x672   :  { %v978_v19 = vmul.f32 %v4419_v10, %v977_v16  ;;  %v5275_v21 = vadd.f32 %v1006_v60, %v5067_v8  ;;  %v999_v8 = vand.u32 2147483647, %v944_v12 }
 0x674   :  { %v979_v22 = vadd.f32 %v4419_v10, %v978_v19  ;;  %4090 = vmatmul.msk.f32.gmra.mxu1 %vm173_vm1, %v5275_v21  ;;  %vm1000_vm5 = vcmp.eq.f32.partialorder %v999_v8, 8.507059e+37 }
 0x675   :  { %v4421_v23 = vpop.eup %4420 }
 0x676   :  { %v983_v27 = vsel %vm982_vm13, %v4419_v10, %v979_v22  ;;  %v991_v26 = vmul.f32 %v4421_v23, %v944_v12  ;;  %vm996_vm2 = vweird.f32 %v4421_v23 }
 0x677   :  { %v988_v28 = vsel %vm985_vm14, %v987_v25, %v983_v27  ;;  %vm997_vm4 = vmor %vm995_vm3, %vm996_vm2 }
 0x678   :  { %v1007_v29 = vmul.f32 %v988_v28, %v5263_v47  ;;  %v992_v30 = vsub.f32 1.0, %v991_v26 }
 0x67a   :  { %v993_v32 = vmul.f32 %v4421_v23, %v992_v30  ;;  %v5281_v33 = vadd.f32 %v1007_v29, %v5072_v18  ;;  %v1146_v18 = vld [vmem:[#allocation2 + $0x38] sm:$0xff] }
 0x67b   :  { %1176 = vmatpush.msra.mxu2 %v1146_v18 }
 0x67c   :  { %v994_v34 = vadd.f32 %v4421_v23, %v993_v32  ;;  %4091 = vmatmul.msk.f32.gmra.mxu1 %vm173_vm1, %v5281_v33 }
 0x67d   :  { %1177 = vmatpush.msra.mxu2 %v1145_v44 }
 0x67e   :  { %v998_v38 = vsel %vm997_vm4, %v4421_v23, %v994_v34 }
 0x67f   :  { %v1003_v40 = vsel %vm1000_vm5, %v1002_v37, %v998_v38  ;;  %1178 = vmatpush.msra.mxu2 %v1144_v46 }
 0x680   :  { %v1008_v41 = vmul.f32 %v1003_v40, %v5266_v54 }
 0x681   :  { %1179 = vmatpush.msra.mxu2 %v1143_v49 }
 0x682   :  { %v5287_v42 = vadd.f32 %v1008_v41, %v5077_v24 }
 0x684   :  { %4092 = vmatmul.msk.f32.gmra.mxu1 %vm173_vm1, %v5287_v42 }
 0x6e9   :  { %v1050_v47 = vpop.f32.mrf.mxu1 }
 0x6ea   :  { %v1051_v48 = vadd.f32 %v4343_v45, %v1050_v47 }
 0x6ec   :  { %v4093_v50 = vmul.f32 -1.442695, %v1051_v48 }
 0x6ee   :  { %4422 = vpow2.f32 %v4093_v50 }
 0x6f1   :  { %v1053_v24 = vpop.f32.mrf.mxu1 }
 0x6f2   :  { %v1054_v51 = vadd.f32 %v4343_v45, %v1053_v24 }
 0x6f4   :  { %v4423_v43 = vpop.eup %4422  ;;  %v4094_v39 = vmul.f32 -1.442695, %v1054_v51 }
 0x6f5   :  { %v1074_v36 = vadd.f32 1.0, %v4423_v43 }
 0x6f6   :  { %4424 = vpow2.f32 %v4094_v39  ;;  %v4344_v39 = vld [vmem:[%s6162_s13 + $0x1] ss:$0 sm:$0xff] }
 0x6f7   :  { %4426 = vrcp.f32 %v1074_v36  ;;  %v1089_v61 = vand.u32 2147483648, %v1074_v36  ;;  %v1087_v0 = vand.u32 2147483647, %v1074_v36  ;;  %vm1083_vm7 = vweird.f32 %v1074_v36 }
 0x6f9   :  { %v1056_v52 = vpop.f32.mrf.mxu1  ;;  %v1090_v9 = vor.u32 1.1754944e-38, %v1089_v61  ;;  %vm1088_vm9 = vcmp.eq.f32.partialorder %v1087_v0, 8.507059e+37 }
 0x6fa   :  { %v5294_v53 = vadd.f32 %v4343_v45, %v1056_v52 }
 0x6fc   :  { %v4425_v54 = vpop.eup %4424  ;;  %v4095_v55 = vmul.f32 -1.442695, %v5294_v53 }
 0x6fd   :  { %v4427_v56 = vpop.eup %4426  ;;  %v1075_v57 = vadd.f32 1.0, %v4425_v54 }
 0x6fe   :  { %v1079_v58 = vmul.f32 %v4427_v56, %v1074_v36  ;;  %4428 = vpow2.f32 %v4095_v55  ;;  %vm1084_vm6 = vweird.f32 %v4427_v56  ;;  %v1280_v36 = vld [vmem:[#allocation2 + $0x50] sm:$0xff]  ;;  %v1278_v55 = vld [vmem:[#allocation2 + $0x40] sm:$0xff] }
 0x6ff   :  { %4430 = vrcp.f32 %v1075_v57  ;;  %vm1085_vm8 = vmor %vm1083_vm7, %vm1084_vm6  ;;  %v1104_v60 = vand.u32 2147483648, %v1075_v57  ;;  %v1102_v17 = vand.u32 2147483647, %v1075_v57  ;;  %vm1098_vm11 = vweird.f32 %v1075_v57  ;;  %1312 = vmatpush.msra.mxu0 %v1280_v36 }
 0x700   :  { %v1080_v59 = vsub.f32 1.0, %v1079_v58 }
 0x701   :  { %v1059_v62 = vpop.f32.mrf.mxu1  ;;  %v1105_v23 = vor.u32 1.1754944e-38, %v1104_v60  ;;  %vm1103_vm14 = vcmp.eq.f32.partialorder %v1102_v17, 8.507059e+37 }
 0x702   :  { %v1081_v63 = vmul.f32 %v4427_v56, %v1080_v59  ;;  %v5297_v1 = vadd.f32 %v4343_v45, %v1059_v62 }
 0x704   :  { %v4429_v3 = vpop.eup %4428  ;;  %v1082_v5 = vadd.f32 %v4427_v56, %v1081_v63  ;;  %v4096_v6 = vmul.f32 -1.442695, %v5297_v1 }
 0x705   :  { %v4431_v7 = vpop.eup %4430  ;;  %v1076_v10 = vadd.f32 1.0, %v4429_v3 }
 0x706   :  { %v1086_v11 = vsel %vm1085_vm8, %v4427_v56, %v1082_v5  ;;  %v1094_v12 = vmul.f32 %v4431_v7, %v1075_v57  ;;  %4432 = vpow2.f32 %v4096_v6  ;;  %vm1099_vm10 = vweird.f32 %v4431_v7 }
 0x707   :  { %v1091_v13 = vsel %vm1088_vm9, %v1090_v9, %v1086_v11  ;;  %4434 = vrcp.f32 %v1076_v10  ;;  %vm1100_vm13 = vmor %vm1098_vm11, %vm1099_vm10  ;;  %v1119_v31 = vand.u32 2147483648, %v1076_v10  ;;  %v1117_v8 = vand.u32 2147483647, %v1076_v10 }
 0x708   :  { %v1138_v14 = vmul.f32 %v1091_v13, %v1051_v48  ;;  %v1095_v15 = vsub.f32 1.0, %v1094_v12  ;;  %vm1113_vm3 = vweird.f32 %v1076_v10 }
 0x709   :  { %v1120_v38 = vor.u32 1.1754944e-38, %v1119_v31  ;;  %vm1118_vm5 = vcmp.eq.f32.partialorder %v1117_v8, 8.507059e+37 }
 0x70a   :  { %v1096_v16 = vmul.f32 %v4431_v7, %v1095_v15  ;;  %4098 = vmatmul.msk.f32.vlgmr.msra.gmra.mxu2 %vm173_vm1, %v1138_v14 }
 0x70c   :  { %v4433_v19 = vpop.eup %4432  ;;  %v1097_v20 = vadd.f32 %v4431_v7, %v1096_v16  ;;  %v1416_v16 = vld [vmem:[#allocation2 + $0x78] sm:$0xff] }
 0x70d   :  { %v4435_v22 = vpop.eup %4434  ;;  %v1077_v25 = vadd.f32 1.0, %v4433_v19  ;;  %1446 = vmatpush.msrb.mxu3 %v1416_v16 }
 0x70e   :  { %v1101_v27 = vsel %vm1100_vm13, %v4431_v7, %v1097_v20  ;;  %v1109_v26 = vmul.f32 %v4435_v22, %v1076_v10  ;;  %vm1114_vm2 = vweird.f32 %v4435_v22 }
 0x70f   :  { %v1106_v28 = vsel %vm1103_vm14, %v1105_v23, %v1101_v27  ;;  %4436 = vrcp.f32 %v1077_v25  ;;  %vm1115_vm4 = vmor %vm1113_vm3, %vm1114_vm2  ;;  %v1134_v46 = vand.u32 2147483648, %v1077_v25  ;;  %v1132_v49 = vand.u32 2147483647, %v1077_v25 }
 0x710   :  { %v1139_v29 = vmul.f32 %v1106_v28, %v1054_v51  ;;  %v1110_v30 = vsub.f32 1.0, %v1109_v26  ;;  %vm1128_vm7 = vweird.f32 %v1077_v25 }
 0x711   :  { %v1135_v50 = vor.u32 1.1754944e-38, %v1134_v46  ;;  %vm1133_vm9 = vcmp.eq.f32.partialorder %v1132_v49, 8.507059e+37 }
 0x712   :  { %v1111_v32 = vmul.f32 %v4435_v22, %v1110_v30  ;;  %4099 = vmatmul.msk.f32.gmra.mxu2 %vm173_vm1, %v1139_v29 }
 0x714   :  { %v1112_v34 = vadd.f32 %v4435_v22, %v1111_v32 }
 0x715   :  { %v4437_v37 = vpop.eup %4436 }
 0x716   :  { %v1116_v40 = vsel %vm1115_vm4, %v4435_v22, %v1112_v34  ;;  %v1124_v41 = vmul.f32 %v4437_v37, %v1077_v25  ;;  %vm1129_vm6 = vweird.f32 %v4437_v37 }
 0x717   :  { %v1121_v18 = vsel %vm1118_vm5, %v1120_v38, %v1116_v40  ;;  %vm1130_vm8 = vmor %vm1128_vm7, %vm1129_vm6 }
 0x718   :  { %v1140_v44 = vmul.f32 %v1121_v18, %v5294_v53  ;;  %v1125_v45 = vsub.f32 1.0, %v1124_v41  ;;  %v1279_v53 = vld [vmem:[#allocation2 + $0x48] sm:$0xff] }
 0x719   :  { %1313 = vmatpush.msra.mxu0 %v1279_v53 }
 0x71a   :  { %v1126_v47 = vmul.f32 %v4437_v37, %v1125_v45  ;;  %4100 = vmatmul.msk.f32.gmra.mxu2 %vm173_vm1, %v1140_v44 }
 0x71b   :  { %1314 = vmatpush.msra.mxu0 %v1278_v55 }
 0x71c   :  { %v1127_v48 = vadd.f32 %v4437_v37, %v1126_v47 }
 0x71e   :  { %v1131_v24 = vsel %vm1130_vm8, %v4437_v37, %v1127_v48 }
 0x71f   :  { %v1136_v51 = vsel %vm1133_vm9, %v1135_v50, %v1131_v24 }
 0x720   :  { %v1141_v43 = vmul.f32 %v1136_v51, %v5297_v1 }
 0x722   :  { %4101 = vmatmul.msk.f32.gmra.mxu2 %vm173_vm1, %v1141_v43 }
 0x78d   :  { %v1181_v52 = vpop.f32.mrf.mxu2 }
 0x78e   :  { %v1182_v54 = vadd.f32 %v4344_v39, %v1181_v52 }
 0x790   :  { %v4102_v56 = vmul.f32 -1.442695, %v1182_v54 }
 0x792   :  { %4438 = vpow2.f32 %v4102_v56 }
 0x795   :  { %v1184_v57 = vpop.f32.mrf.mxu2 }
 0x796   :  { %v1185_v58 = vadd.f32 %v4344_v39, %v1184_v57 }
 0x798   :  { %v4439_v59 = vpop.eup %4438  ;;  %v4103_v61 = vmul.f32 -1.442695, %v1185_v58 }
 0x799   :  { %v1205_v62 = vadd.f32 1.0, %v4439_v59 }
 0x79a   :  { %4440 = vpow2.f32 %v4103_v61 }
 0x79b   :  { %4442 = vrcp.f32 %v1205_v62  ;;  %v1220_v9 = vand.u32 2147483648, %v1205_v62  ;;  %v1218_v12 = vand.u32 2147483647, %v1205_v62  ;;  %vm1214_vm11 = vweird.f32 %v1205_v62 }
 0x79d   :  { %v1187_v63 = vpop.f32.mrf.mxu2  ;;  %v1221_v19 = vor.u32 1.1754944e-38, %v1220_v9  ;;  %vm1219_vm14 = vcmp.eq.f32.partialorder %v1218_v12, 8.507059e+37 }
 0x79e   :  { %v5309_v0 = vadd.f32 %v4344_v39, %v1187_v63  ;;  %v4345_v63 = vld [vmem:[%s6162_s13 + $0x2] ss:$0 sm:$0xff] }
 0x7a0   :  { %v4441_v1 = vpop.eup %4440  ;;  %v4104_v2 = vmul.f32 -1.442695, %v5309_v0 }
 0x7a1   :  { %v4443_v3 = vpop.eup %4442  ;;  %v1206_v5 = vadd.f32 1.0, %v4441_v1  ;;  %v1414_v1 = vld [vmem:[#allocation2 + $0x68] sm:$0xff] }
 0x7a2   :  { %v1210_v6 = vmul.f32 %v4443_v3, %v1205_v62  ;;  %4444 = vpow2.f32 %v4104_v2  ;;  %vm1215_vm10 = vweird.f32 %v4443_v3 }
 0x7a3   :  { %4446 = vrcp.f32 %v1206_v5  ;;  %vm1216_vm13 = vmor %vm1214_vm11, %vm1215_vm10  ;;  %v1235_v28 = vand.u32 2147483648, %v1206_v5  ;;  %v1233_v31 = vand.u32 2147483647, %v1206_v5  ;;  %vm1229_vm3 = vweird.f32 %v1206_v5 }
 0x7a4   :  { %v1211_v7 = vsub.f32 1.0, %v1210_v6 }
 0x7a5   :  { %v1190_v10 = vpop.f32.mrf.mxu2  ;;  %v1236_v37 = vor.u32 1.1754944e-38, %v1235_v28  ;;  %vm1234_vm5 = vcmp.eq.f32.partialorder %v1233_v31, 8.507059e+37 }
 0x7a6   :  { %v1212_v11 = vmul.f32 %v4443_v3, %v1211_v7  ;;  %v5312_v13 = vadd.f32 %v4344_v39, %v1190_v10 }
 0x7a8   :  { %v4445_v14 = vpop.eup %4444  ;;  %v1213_v15 = vadd.f32 %v4443_v3, %v1212_v11  ;;  %v4105_v60 = vmul.f32 -1.442695, %v5312_v13 }
 0x7a9   :  { %v4447_v17 = vpop.eup %4446  ;;  %v1207_v20 = vadd.f32 1.0, %v4445_v14 }
 0x7aa   :  { %v1217_v22 = vsel %vm1216_vm13, %v4443_v3, %v1213_v15  ;;  %v1225_v23 = vmul.f32 %v4447_v17, %v1206_v5  ;;  %4448 = vpow2.f32 %v4105_v60  ;;  %vm1230_vm2 = vweird.f32 %v4447_v17  ;;  %v1413_v3 = vld [vmem:[#allocation2 + $0x60] sm:$0xff] }
 0x7ab   :  { %v1222_v25 = vsel %vm1219_vm14, %v1221_v19, %v1217_v22  ;;  %4450 = vrcp.f32 %v1207_v20  ;;  %vm1231_vm4 = vmor %vm1229_vm3, %vm1230_vm2  ;;  %v1248_v47 = vand.u32 2147483647, %v1207_v20  ;;  %vm1244_vm7 = vweird.f32 %v1207_v20 }
 0x7ac   :  { %v1269_v27 = vmul.f32 %v1222_v25, %v1182_v54  ;;  %v1226_v26 = vsub.f32 1.0, %v1225_v23 }
 0x7ad   :  { %vm1249_vm9 = vcmp.eq.f32.partialorder %v1248_v47, 8.507059e+37 }
 0x7ae   :  { %v1273_v29 = vadd.f32 %v1269_v27, %v5270_v4  ;;  %v1227_v30 = vmul.f32 %v4447_v17, %v1226_v26  ;;  %v1250_v4 = vand.u32 2147483648, %v1207_v20 }
 0x7b0   :  { %v4449_v32 = vpop.eup %4448  ;;  %v1228_v8 = vadd.f32 %v4447_v17, %v1227_v30  ;;  %4107 = vmatmul.msk.f32.vlgmr.msra.gmra.mxu0 %vm173_vm1, %v1273_v29  ;;  %v1251_v24 = vor.u32 1.1754944e-38, %v1250_v4 }
 0x7b1   :  { %v4451_v34 = vpop.eup %4450  ;;  %v1208_v38 = vadd.f32 1.0, %v4449_v32 }
 0x7b2   :  { %v1232_v40 = vsel %vm1231_vm4, %v4447_v17, %v1228_v8  ;;  %v1240_v41 = vmul.f32 %v4451_v34, %v1207_v20  ;;  %vm1245_vm6 = vweird.f32 %v4451_v34 }
 0x7b3   :  { %v1237_v18 = vsel %vm1234_vm5, %v1236_v37, %v1232_v40  ;;  %4452 = vrcp.f32 %v1208_v38  ;;  %vm1246_vm8 = vmor %vm1244_vm7, %vm1245_vm6  ;;  %v1265_v53 = vand.u32 2147483648, %v1208_v38  ;;  %v1263_v55 = vand.u32 2147483647, %v1208_v38 }
 0x7b4   :  { %v1270_v44 = vmul.f32 %v1237_v18, %v1185_v58  ;;  %v1241_v45 = vsub.f32 1.0, %v1240_v41  ;;  %vm1259_vm11 = vweird.f32 %v1208_v38  ;;  %v4722_v41 = vld [vmem:[%s6181_s0] sm:$0xff] }
 0x7b5   :  { %v1266_v57 = vor.u32 1.1754944e-38, %v1265_v53  ;;  %vm1264_vm14 = vcmp.eq.f32.partialorder %v1263_v55, 8.507059e+37 }
 0x7b6   :  { %v1242_v46 = vmul.f32 %v4451_v34, %v1241_v45  ;;  %v1274_v49 = vadd.f32 %v1270_v44, %v5275_v21 }
 0x7b8   :  { %v1243_v48 = vadd.f32 %v4451_v34, %v1242_v46  ;;  %4108 = vmatmul.msk.f32.gmra.mxu0 %vm173_vm1, %v1274_v49 }
 0x7b9   :  { %v4453_v50 = vpop.eup %4452 }
 0x7ba   :  { %v1247_v51 = vsel %vm1246_vm8, %v4451_v34, %v1243_v48  ;;  %v1255_v43 = vmul.f32 %v4453_v50, %v1208_v38  ;;  %vm1260_vm10 = vweird.f32 %v4453_v50 }
 0x7bb   :  { %v1252_v39 = vsel %vm1249_vm9, %v1251_v24, %v1247_v51  ;;  %vm1261_vm13 = vmor %vm1259_vm11, %vm1260_vm10 }
 0x7bc   :  { %v1271_v36 = vmul.f32 %v1252_v39, %v5309_v0  ;;  %v1256_v52 = vsub.f32 1.0, %v1255_v43 }
 0x7be   :  { %v1257_v54 = vmul.f32 %v4453_v50, %v1256_v52  ;;  %v1275_v21 = vadd.f32 %v1271_v36, %v5281_v33  ;;  %v1415_v33 = vld [vmem:[#allocation2 + $0x70] sm:$0xff] }
 0x7bf   :  { %1447 = vmatpush.msrb.mxu3 %v1415_v33 }
 0x7c0   :  { %v1258_v56 = vadd.f32 %v4453_v50, %v1257_v54  ;;  %4109 = vmatmul.msk.f32.gmra.mxu0 %vm173_vm1, %v1275_v21  ;;  %v4723_v54 = vld [vmem:[%s6181_s0 + $0x8] sm:$0xff] }
 0x7c1   :  { %1448 = vmatpush.msrb.mxu3 %v1414_v1 }
 0x7c2   :  { %v1262_v58 = vsel %vm1261_vm13, %v4453_v50, %v1258_v56 }
 0x7c3   :  { %v1267_v59 = vsel %vm1264_vm14, %v1266_v57, %v1262_v58  ;;  %1449 = vmatpush.msrb.mxu3 %v1413_v3 }
 0x7c4   :  { %v1272_v61 = vmul.f32 %v1267_v59, %v5312_v13 }
 0x7c6   :  { %v1276_v62 = vadd.f32 %v1272_v61, %v5287_v42 }
 0x7c8   :  { %4110 = vmatmul.msk.f32.gmra.mxu0 %vm173_vm1, %v1276_v62 }
 0x82d   :  { %v1316_v0 = vpop.f32.mrf.mxu0 }
 0x82e   :  { %v1317_v2 = vadd.f32 %v4345_v63, %v1316_v0 }
 0x830   :  { %v4111_v5 = vmul.f32 -1.442695, %v1317_v2 }
 0x832   :  { %4454 = vpow2.f32 %v4111_v5 }
 0x835   :  { %v1319_v6 = vpop.f32.mrf.mxu0 }
 0x836   :  { %v1320_v7 = vadd.f32 %v4345_v63, %v1319_v6 }
 0x838   :  { %v4455_v9 = vpop.eup %4454  ;;  %v4112_v42 = vmul.f32 -1.442695, %v1320_v7 }
 0x839   :  { %v1340_v10 = vadd.f32 1.0, %v4455_v9 }
 0x83a   :  { %4456 = vpow2.f32 %v4112_v42 }
 0x83b   :  { %4458 = vrcp.f32 %v1340_v10  ;;  %v1355_v19 = vand.u32 2147483648, %v1340_v10  ;;  %v1353_v23 = vand.u32 2147483647, %v1340_v10  ;;  %vm1349_vm3 = vweird.f32 %v1340_v10 }
 0x83d   :  { %v1322_v11 = vpop.f32.mrf.mxu0  ;;  %v1356_v30 = vor.u32 1.1754944e-38, %v1355_v19  ;;  %vm1354_vm5 = vcmp.eq.f32.partialorder %v1353_v23, 8.507059e+37 }
 0x83e   :  { %v5328_v12 = vadd.f32 %v4345_v63, %v1322_v11 }
 0x840   :  { %v4457_v13 = vpop.eup %4456  ;;  %v4113_v14 = vmul.f32 -1.442695, %v5328_v12 }
 0x841   :  { %v4459_v15 = vpop.eup %4458  ;;  %v1341_v60 = vadd.f32 1.0, %v4457_v13  ;;  %v1546_v13 = vld [vmem:[#allocation2 + $0x90] sm:$0xff] }
 0x842   :  { %v1345_v16 = vmul.f32 %v4459_v15, %v1340_v10  ;;  %4460 = vpow2.f32 %v4113_v14  ;;  %vm1350_vm2 = vweird.f32 %v4459_v15  ;;  %v4725_v10 = vld [vmem:[%s6181_s0 + $0x18] sm:$0xff]  ;;  %v4346_v14 = vld [vmem:[%s6162_s13 + $0x3] ss:$0 sm:$0xff] }
 0x843   :  { %4462 = vrcp.f32 %v1341_v60  ;;  %vm1351_vm4 = vmor %vm1349_vm3, %vm1350_vm2  ;;  %v1370_v40 = vand.u32 2147483648, %v1341_v60  ;;  %v1368_v45 = vand.u32 2147483647, %v1341_v60  ;;  %vm1364_vm7 = vweird.f32 %v1341_v60 }
 0x844   :  { %v1346_v17 = vsub.f32 1.0, %v1345_v16  ;;  %v1544_v16 = vld [vmem:[#allocation2 + $0x80] sm:$0xff] }
 0x845   :  { %v1325_v20 = vpop.f32.mrf.mxu0  ;;  %v1371_v49 = vor.u32 1.1754944e-38, %v1370_v40  ;;  %vm1369_vm9 = vcmp.eq.f32.partialorder %v1368_v45, 8.507059e+37 }
 0x846   :  { %v1347_v22 = vmul.f32 %v4459_v15, %v1346_v17  ;;  %v5331_v25 = vadd.f32 %v4345_v63, %v1325_v20 }
 0x848   :  { %v4461_v27 = vpop.eup %4460  ;;  %v1348_v26 = vadd.f32 %v4459_v15, %v1347_v22  ;;  %v4114_v28 = vmul.f32 -1.442695, %v5331_v25 }
 0x849   :  { %v4463_v29 = vpop.eup %4462  ;;  %v1342_v31 = vadd.f32 1.0, %v4461_v27 }
 0x84a   :  { %v1352_v32 = vsel %vm1351_vm4, %v4459_v15, %v1348_v26  ;;  %v1360_v8 = vmul.f32 %v4463_v29, %v1341_v60  ;;  %4464 = vpow2.f32 %v4114_v28  ;;  %vm1365_vm6 = vweird.f32 %v4463_v29  ;;  %v1545_v15 = vld [vmem:[#allocation2 + $0x88] sm:$0xff] }
 0x84b   :  { %v1357_v34 = vsel %vm1354_vm5, %v1356_v30, %v1352_v32  ;;  %4466 = vrcp.f32 %v1342_v31  ;;  %vm1366_vm8 = vmor %vm1364_vm7, %vm1365_vm6  ;;  %v1385_v36 = vand.u32 2147483648, %v1342_v31  ;;  %v1383_v53 = vand.u32 2147483647, %v1342_v31 }
 0x84c   :  { %v1404_v37 = vmul.f32 %v1357_v34, %v1317_v2  ;;  %v1361_v38 = vsub.f32 1.0, %v1360_v8  ;;  %vm1379_vm11 = vweird.f32 %v1342_v31  ;;  %v4724_v2 = vld [vmem:[%s6181_s0 + $0x10] sm:$0xff] }
 0x84d   :  { %v1386_v57 = vor.u32 1.1754944e-38, %v1385_v36  ;;  %vm1384_vm14 = vcmp.eq.f32.partialorder %v1383_v53, 8.507059e+37 }
 0x84e   :  { %v5337_v18 = vadd.f32 %v4722_v41, %v1404_v37  ;;  %v1362_v44 = vmul.f32 %v4463_v29, %v1361_v38 }
 0x850   :  { %v4465_v4 = vpop.eup %4464  ;;  %v1363_v46 = vadd.f32 %v4463_v29, %v1362_v44  ;;  %4116 = vmatmul.msk.f32.vlgmr.msrb.gmra.mxu3 %vm173_vm1, %v5337_v18 }
 0x851   :  { %v4467_v47 = vpop.eup %4466  ;;  %v1343_v48 = vadd.f32 1.0, %v4465_v4 }
 0x852   :  { %v1367_v50 = vsel %vm1366_vm8, %v4463_v29, %v1363_v46  ;;  %v1375_v24 = vmul.f32 %v4467_v47, %v1342_v31  ;;  %vm1380_vm10 = vweird.f32 %v4467_v47 }
 0x853   :  { %v1372_v51 = vsel %vm1369_vm9, %v1371_v49, %v1367_v50  ;;  %4468 = vrcp.f32 %v1343_v48  ;;  %vm1381_vm13 = vmor %vm1379_vm11, %vm1380_vm10  ;;  %v1400_v33 = vand.u32 2147483648, %v1343_v48  ;;  %v1398_v1 = vand.u32 2147483647, %v1343_v48 }
 0x854   :  { %v1405_v43 = vmul.f32 %v1372_v51, %v1320_v7  ;;  %v1376_v39 = vsub.f32 1.0, %v1375_v24  ;;  %vm1394_vm3 = vweird.f32 %v1343_v48 }
 0x855   :  { %v1401_v6 = vor.u32 1.1754944e-38, %v1400_v33  ;;  %vm1399_vm5 = vcmp.eq.f32.partialorder %v1398_v1, 8.507059e+37 }
 0x856   :  { %v1377_v52 = vmul.f32 %v4467_v47, %v1376_v39  ;;  %v5344_v55 = vadd.f32 %v4723_v54, %v1405_v43 }
 0x858   :  { %v1378_v21 = vadd.f32 %v4467_v47, %v1377_v52  ;;  %4117 = vmatmul.msk.f32.gmra.mxu3 %vm173_vm1, %v5344_v55 }
 0x859   :  { %v4469_v56 = vpop.eup %4468 }
 0x85a   :  { %v1382_v58 = vsel %vm1381_vm13, %v4467_v47, %v1378_v21  ;;  %v1390_v59 = vmul.f32 %v4469_v56, %v1343_v48  ;;  %vm1395_vm2 = vweird.f32 %v4469_v56 }
 0x85b   :  { %v1387_v61 = vsel %vm1384_vm14, %v1386_v57, %v1382_v58  ;;  %vm1396_vm4 = vmor %vm1394_vm3, %vm1395_vm2 }
 0x85c   :  { %v1406_v62 = vmul.f32 %v1387_v61, %v5328_v12  ;;  %v1391_v63 = vsub.f32 1.0, %v1390_v59  ;;  %v1547_v12 = vld [vmem:[#allocation2 + $0x98] sm:$0xff] }
 0x85d   :  { %1577 = vmatpush.msra.mxu1 %v1547_v12 }
 0x85e   :  { %v1392_v0 = vmul.f32 %v4469_v56, %v1391_v63  ;;  %v5352_v3 = vadd.f32 %v4724_v2, %v1406_v62 }
 0x85f   :  { %1578 = vmatpush.msra.mxu1 %v1546_v13 }
 0x860   :  { %v1393_v5 = vadd.f32 %v4469_v56, %v1392_v0  ;;  %4118 = vmatmul.msk.f32.gmra.mxu3 %vm173_vm1, %v5352_v3 }
 0x861   :  { %1579 = vmatpush.msra.mxu1 %v1545_v15 }
 0x862   :  { %v1397_v7 = vsel %vm1396_vm4, %v4469_v56, %v1393_v5 }
 0x863   :  { %v1402_v9 = vsel %vm1399_vm5, %v1401_v6, %v1397_v7  ;;  %1580 = vmatpush.msra.mxu1 %v1544_v16 }
 0x864   :  { %v1407_v42 = vmul.f32 %v1402_v9, %v5331_v25 }
 0x866   :  { %v5360_v11 = vadd.f32 %v4725_v10, %v1407_v42 }
 0x868   :  { %4119 = vmatmul.msk.f32.gmra.mxu3 %vm173_vm1, %v5360_v11 }
 0x8d3   :  { %v1451_v60 = vpop.f32.mrf.mxu3 }
 0x8d4   :  { %v1452_v17 = vadd.f32 %v4346_v14, %v1451_v60 }
 0x8d6   :  { %v4120_v19 = vmul.f32 -1.442695, %v1452_v17 }
 0x8d8   :  { %4470 = vpow2.f32 %v4120_v19 }
 0x8db   :  { %v1454_v20 = vpop.f32.mrf.mxu3 }
 0x8dc   :  { %v1455_v22 = vadd.f32 %v4346_v14, %v1454_v20 }
 0x8de   :  { %v4471_v23 = vpop.eup %4470  ;;  %v4121_v25 = vmul.f32 -1.442695, %v1455_v22 }
 0x8df   :  { %v1475_v27 = vadd.f32 1.0, %v4471_v23  ;;  %v1682_v23 = vld [vmem:[#allocation2 + $0xb8] sm:$0xff] }
 0x8e0   :  { %4472 = vpow2.f32 %v4121_v25  ;;  %v4347_v25 = vld [vmem:[%s6162_s13 + $0x4] ss:$0 sm:$0xff]  ;;  %1712 = vmatpush.msrb.mxu2 %v1682_v23 }
 0x8e1   :  { %4474 = vrcp.f32 %v1475_v27  ;;  %v1490_v37 = vand.u32 2147483648, %v1475_v27  ;;  %v1488_v41 = vand.u32 2147483647, %v1475_v27  ;;  %vm1484_vm7 = vweird.f32 %v1475_v27 }
 0x8e3   :  { %v1457_v26 = vpop.f32.mrf.mxu3  ;;  %v1491_v49 = vor.u32 1.1754944e-38, %v1490_v37  ;;  %vm1489_vm9 = vcmp.eq.f32.partialorder %v1488_v41, 8.507059e+37 }
 0x8e4   :  { %v5367_v28 = vadd.f32 %v4346_v14, %v1457_v26 }
 0x8e6   :  { %v4473_v29 = vpop.eup %4472  ;;  %v4122_v30 = vmul.f32 -1.442695, %v5367_v28 }
 0x8e7   :  { %v4475_v31 = vpop.eup %4474  ;;  %v1476_v32 = vadd.f32 1.0, %v4473_v29 }
 0x8e8   :  { %v1480_v8 = vmul.f32 %v4475_v31, %v1475_v27  ;;  %4476 = vpow2.f32 %v4122_v30  ;;  %vm1485_vm6 = vweird.f32 %v4475_v31  ;;  %v1681_v27 = vld [vmem:[#allocation2 + $0xb0] sm:$0xff]  ;;  %v1679_v30 = vld [vmem:[#allocation2 + $0xa0] sm:$0xff] }
 0x8e9   :  { %4478 = vrcp.f32 %v1476_v32  ;;  %vm1486_vm8 = vmor %vm1484_vm7, %vm1485_vm6  ;;  %v1505_v36 = vand.u32 2147483648, %v1476_v32  ;;  %v1503_v53 = vand.u32 2147483647, %v1476_v32  ;;  %vm1499_vm11 = vweird.f32 %v1476_v32  ;;  %1713 = vmatpush.msrb.mxu2 %v1681_v27 }
 0x8ea   :  { %v1481_v34 = vsub.f32 1.0, %v1480_v8 }
 0x8eb   :  { %v1460_v38 = vpop.f32.mrf.mxu3  ;;  %v1506_v57 = vor.u32 1.1754944e-38, %v1505_v36  ;;  %vm1504_vm14 = vcmp.eq.f32.partialorder %v1503_v53, 8.507059e+37 }
 0x8ec   :  { %v1482_v40 = vmul.f32 %v4475_v31, %v1481_v34  ;;  %v5370_v44 = vadd.f32 %v4346_v14, %v1460_v38 }
 0x8ee   :  { %v4477_v45 = vpop.eup %4476  ;;  %v1483_v4 = vadd.f32 %v4475_v31, %v1482_v40  ;;  %v4123_v46 = vmul.f32 -1.442695, %v5370_v44 }
 0x8ef   :  { %v4479_v47 = vpop.eup %4478  ;;  %v1477_v48 = vadd.f32 1.0, %v4477_v45 }
 0x8f0   :  { %v1487_v50 = vsel %vm1486_vm8, %v4475_v31, %v1483_v4  ;;  %v1495_v24 = vmul.f32 %v4479_v47, %v1476_v32  ;;  %4480 = vpow2.f32 %v4123_v46  ;;  %vm1500_vm10 = vweird.f32 %v4479_v47 }
 0x8f1   :  { %v1492_v51 = vsel %vm1489_vm9, %v1491_v49, %v1487_v50  ;;  %4482 = vrcp.f32 %v1477_v48  ;;  %vm1501_vm13 = vmor %vm1499_vm11, %vm1500_vm10  ;;  %v1520_v0 = vand.u32 2147483648, %v1477_v48  ;;  %v1518_v2 = vand.u32 2147483647, %v1477_v48 }
 0x8f2   :  { %v1539_v43 = vmul.f32 %v1492_v51, %v1452_v17  ;;  %v1496_v39 = vsub.f32 1.0, %v1495_v24  ;;  %vm1514_vm3 = vweird.f32 %v1477_v48 }
 0x8f3   :  { %v1521_v7 = vor.u32 1.1754944e-38, %v1520_v0  ;;  %vm1519_vm5 = vcmp.eq.f32.partialorder %v1518_v2, 8.507059e+37 }
 0x8f4   :  { %v1497_v52 = vmul.f32 %v4479_v47, %v1496_v39  ;;  %4125 = vmatmul.msk.f32.vlgmr.msra.gmra.mxu1 %vm173_vm1, %v1539_v43 }
 0x8f6   :  { %v4481_v54 = vpop.eup %4480  ;;  %v1498_v21 = vadd.f32 %v4479_v47, %v1497_v52 }
 0x8f7   :  { %v4483_v56 = vpop.eup %4482  ;;  %v1478_v58 = vadd.f32 1.0, %v4481_v54 }
 0x8f8   :  { %v1502_v59 = vsel %vm1501_vm13, %v4479_v47, %v1498_v21  ;;  %v1510_v61 = vmul.f32 %v4483_v56, %v1477_v48  ;;  %vm1515_vm2 = vweird.f32 %v4483_v56 }
 0x8f9   :  { %v1507_v62 = vsel %vm1504_vm14, %v1506_v57, %v1502_v59  ;;  %4484 = vrcp.f32 %v1478_v58  ;;  %vm1516_vm4 = vmor %vm1514_vm3, %vm1515_vm2  ;;  %v1535_v14 = vand.u32 2147483648, %v1478_v58  ;;  %v1533_v60 = vand.u32 2147483647, %v1478_v58 }
 0x8fa   :  { %v1540_v63 = vmul.f32 %v1507_v62, %v1455_v22  ;;  %v1511_v33 = vsub.f32 1.0, %v1510_v61  ;;  %vm1529_vm7 = vweird.f32 %v1478_v58 }
 0x8fb   :  { %v1536_v17 = vor.u32 1.1754944e-38, %v1535_v14  ;;  %vm1534_vm9 = vcmp.eq.f32.partialorder %v1533_v60, 8.507059e+37 }
 0x8fc   :  { %v1512_v1 = vmul.f32 %v4483_v56, %v1511_v33  ;;  %4126 = vmatmul.msk.f32.gmra.mxu1 %vm173_vm1, %v1540_v63 }
 0x8fe   :  { %v1513_v5 = vadd.f32 %v4483_v56, %v1512_v1 }
 0x8ff   :  { %v4485_v6 = vpop.eup %4484 }
 0x900   :  { %v1517_v9 = vsel %vm1516_vm4, %v4483_v56, %v1513_v5  ;;  %v1525_v42 = vmul.f32 %v4485_v6, %v1478_v58  ;;  %vm1530_vm6 = vweird.f32 %v4485_v6 }
 0x901   :  { %v1522_v10 = vsel %vm1519_vm5, %v1521_v7, %v1517_v9  ;;  %vm1531_vm8 = vmor %vm1529_vm7, %vm1530_vm6 }
 0x902   :  { %v1541_v12 = vmul.f32 %v1522_v10, %v5367_v28  ;;  %v1526_v13 = vsub.f32 1.0, %v1525_v42  ;;  %v1680_v28 = vld [vmem:[#allocation2 + $0xa8] sm:$0xff] }
 0x903   :  { %1714 = vmatpush.msrb.mxu2 %v1680_v28 }
 0x904   :  { %v1527_v15 = vmul.f32 %v4485_v6, %v1526_v13  ;;  %4127 = vmatmul.msk.f32.gmra.mxu1 %vm173_vm1, %v1541_v12 }
 0x905   :  { %1715 = vmatpush.msrb.mxu2 %v1679_v30 }
 0x906   :  { %v1528_v16 = vadd.f32 %v4485_v6, %v1527_v15 }
 0x908   :  { %v1532_v19 = vsel %vm1531_vm8, %v4485_v6, %v1528_v16 }
 0x909   :  { %v1537_v20 = vsel %vm1534_vm9, %v1536_v17, %v1532_v19 }
 0x90a   :  { %v1542_v22 = vmul.f32 %v1537_v20, %v5370_v44 }
 0x90c   :  { %4128 = vmatmul.msk.f32.gmra.mxu1 %vm173_vm1, %v1542_v22 }
 0x971   :  { %v1582_v26 = vpop.f32.mrf.mxu1 }
 0x972   :  { %v1583_v29 = vadd.f32 %v4347_v25, %v1582_v26 }
 0x974   :  { %v4129_v31 = vmul.f32 -1.442695, %v1583_v29 }
 0x976   :  { %4486 = vpow2.f32 %v4129_v31 }
 0x979   :  { %v1585_v32 = vpop.f32.mrf.mxu1 }
 0x97a   :  { %v1586_v8 = vadd.f32 %v4347_v25, %v1585_v32 }
 0x97c   :  { %v4487_v34 = vpop.eup %4486  ;;  %v4130_v37 = vmul.f32 -1.442695, %v1586_v8 }
 0x97d   :  { %v1606_v38 = vadd.f32 1.0, %v4487_v34 }
 0x97e   :  { %4488 = vpow2.f32 %v4130_v37 }
 0x97f   :  { %4490 = vrcp.f32 %v1606_v38  ;;  %v1621_v48 = vand.u32 2147483648, %v1606_v38  ;;  %v1619_v51 = vand.u32 2147483647, %v1606_v38  ;;  %vm1615_vm11 = vweird.f32 %v1606_v38 }
 0x981   :  { %v1588_v40 = vpop.f32.mrf.mxu1  ;;  %v1622_v54 = vor.u32 1.1754944e-38, %v1621_v48  ;;  %vm1620_vm14 = vcmp.eq.f32.partialorder %v1619_v51, 8.507059e+37 }
 0x982   :  { %v5382_v41 = vadd.f32 %v4347_v25, %v1588_v40  ;;  %v4348_v40 = vld [vmem:[%s6162_s13 + $0x5] ss:$0 sm:$0xff] }
 0x984   :  { %v4489_v44 = vpop.eup %4488  ;;  %v4131_v45 = vmul.f32 -1.442695, %v5382_v41 }
 0x985   :  { %v4491_v4 = vpop.eup %4490  ;;  %v1607_v46 = vadd.f32 1.0, %v4489_v44 }
 0x986   :  { %v1611_v47 = vmul.f32 %v4491_v4, %v1606_v38  ;;  %4492 = vpow2.f32 %v4131_v45  ;;  %vm1616_vm10 = vweird.f32 %v4491_v4  ;;  %v1812_v38 = vld [vmem:[#allocation2 + $0xd0] sm:$0xff]  ;;  %v1810_v45 = vld [vmem:[#allocation2 + $0xc0] sm:$0xff] }
 0x987   :  { %4494 = vrcp.f32 %v1607_v46  ;;  %vm1617_vm13 = vmor %vm1615_vm11, %vm1616_vm10  ;;  %v1636_v62 = vand.u32 2147483648, %v1607_v46  ;;  %v1634_v0 = vand.u32 2147483647, %v1607_v46  ;;  %vm1630_vm3 = vweird.f32 %v1607_v46 }
 0x988   :  { %v1612_v49 = vsub.f32 1.0, %v1611_v47 }
 0x989   :  { %v1591_v50 = vpop.f32.mrf.mxu1  ;;  %v1637_v6 = vor.u32 1.1754944e-38, %v1636_v62  ;;  %vm1635_vm5 = vcmp.eq.f32.partialorder %v1634_v0, 8.507059e+37  ;;  %v5424_v62 = vld [vmem:[%s6180_s17] sm:$0xff] }
 0x98a   :  { %v1613_v24 = vmul.f32 %v4491_v4, %v1612_v49  ;;  %v5385_v43 = vadd.f32 %v4347_v25, %v1591_v50 }
 0x98c   :  { %v4493_v39 = vpop.eup %4492  ;;  %v1614_v36 = vadd.f32 %v4491_v4, %v1613_v24  ;;  %v4132_v52 = vmul.f32 -1.442695, %v5385_v43 }
 0x98d   :  { %v4495_v53 = vpop.eup %4494  ;;  %v1608_v21 = vadd.f32 1.0, %v4493_v39 }
 0x98e   :  { %v1618_v56 = vsel %vm1617_vm13, %v4491_v4, %v1614_v36  ;;  %v1626_v57 = vmul.f32 %v4495_v53, %v1607_v46  ;;  %4496 = vpow2.f32 %v4132_v52  ;;  %vm1631_vm2 = vweird.f32 %v4495_v53 }
 0x98f   :  { %v1623_v58 = vsel %vm1620_vm14, %v1622_v54, %v1618_v56  ;;  %4498 = vrcp.f32 %v1608_v21  ;;  %vm1632_vm4 = vmor %vm1630_vm3, %vm1631_vm2  ;;  %v1651_v13 = vand.u32 2147483648, %v1608_v21  ;;  %v1649_v15 = vand.u32 2147483647, %v1608_v21 }
 0x990   :  { %v1670_v59 = vmul.f32 %v1623_v58, %v1583_v29  ;;  %v1627_v61 = vsub.f32 1.0, %v1626_v57  ;;  %vm1645_vm7 = vweird.f32 %v1608_v21 }
 0x991   :  { %v1652_v19 = vor.u32 1.1754944e-38, %v1651_v13  ;;  %vm1650_vm9 = vcmp.eq.f32.partialorder %v1649_v15, 8.507059e+37  ;;  %v5433_v15 = vld [vmem:[%s6180_s17 + $0x8] sm:$0xff] }
 0x992   :  { %v5389_v63 = vadd.f32 %v1670_v59, %v5337_v18  ;;  %v1628_v33 = vmul.f32 %v4495_v53, %v1627_v61 }
 0x994   :  { %v4497_v1 = vpop.eup %4496  ;;  %v1629_v2 = vadd.f32 %v4495_v53, %v1628_v33  ;;  %4134 = vmatmul.msk.f32.vlgmr.msrb.gmra.mxu2 %vm173_vm1, %v5389_v63 }
 0x995   :  { %v4499_v5 = vpop.eup %4498  ;;  %v1609_v7 = vadd.f32 1.0, %v4497_v1 }
 0x996   :  { %v1633_v9 = vsel %vm1632_vm4, %v4495_v53, %v1629_v2  ;;  %v1641_v42 = vmul.f32 %v4499_v5, %v1608_v21  ;;  %vm1646_vm6 = vweird.f32 %v4499_v5  ;;  %v4151_v21 = vld [vmem:[%s6163_s14 + $0x8] sm:$0xff] }
 0x997   :  { %v1638_v10 = vsel %vm1635_vm5, %v1637_v6, %v1633_v9  ;;  %4500 = vrcp.f32 %v1609_v7  ;;  %vm1647_vm8 = vmor %vm1645_vm7, %vm1646_vm6  ;;  %v1666_v26 = vand.u32 2147483648, %v1609_v7  ;;  %vm1660_vm11 = vweird.f32 %v1609_v7  ;;  %1961 = vmatpush.msra.mxu3 %v4151_v21 }
 0x998   :  { %v1671_v18 = vmul.f32 %v1638_v10, %v1586_v8  ;;  %v1642_v12 = vsub.f32 1.0, %v1641_v42  ;;  %4152 = vmatmul.msk.f32.vlgmr.msra.gmra.mxu3 %vm127_vm0, %v5424_v62 }
 0x999   :  { %v1667_v31 = vor.u32 1.1754944e-38, %v1666_v26 }
 0x99a   :  { %v1643_v14 = vmul.f32 %v4499_v5, %v1642_v12  ;;  %v5394_v60 = vadd.f32 %v1671_v18, %v5344_v55  ;;  %v1664_v55 = vand.u32 2147483647, %v1609_v7 }
 0x99c   :  { %v1644_v16 = vadd.f32 %v4499_v5, %v1643_v14  ;;  %4135 = vmatmul.msk.f32.gmra.mxu2 %vm173_vm1, %v5394_v60  ;;  %vm1665_vm14 = vcmp.eq.f32.partialorder %v1664_v55, 8.507059e+37 }
 0x99d   :  { %v4501_v17 = vpop.eup %4500 }
 0x99e   :  { %v1648_v20 = vsel %vm1647_vm8, %v4499_v5, %v1644_v16  ;;  %v1656_v22 = vmul.f32 %v4501_v17, %v1609_v7  ;;  %vm1661_vm10 = vweird.f32 %v4501_v17 }
 0x99f   :  { %v1653_v23 = vsel %vm1650_vm9, %v1652_v19, %v1648_v20  ;;  %vm1662_vm13 = vmor %vm1660_vm11, %vm1661_vm10 }
 0x9a0   :  { %v1672_v25 = vmul.f32 %v1653_v23, %v5382_v41  ;;  %v1657_v27 = vsub.f32 1.0, %v1656_v22  ;;  %v1811_v41 = vld [vmem:[#allocation2 + $0xc8] sm:$0xff]  ;;  %4153 = vmatmul.msk.f32.gmra.mxu3 %vm127_vm0, %v5433_v15 }
 0x9a2   :  { %v1658_v28 = vmul.f32 %v4501_v17, %v1657_v27  ;;  %v5400_v29 = vadd.f32 %v1672_v25, %v5352_v3  ;;  %v1813_v3 = vld [vmem:[#allocation2 + $0xd8] sm:$0xff] }
 0x9a3   :  { %1843 = vmatpush.msrb.mxu0 %v1813_v3 }
 0x9a4   :  { %v1659_v30 = vadd.f32 %v4501_v17, %v1658_v28  ;;  %4136 = vmatmul.msk.f32.gmra.mxu2 %vm173_vm1, %v5400_v29 }
 0x9a5   :  { %1844 = vmatpush.msrb.mxu0 %v1812_v38 }
 0x9a6   :  { %v1663_v32 = vsel %vm1662_vm13, %v4501_v17, %v1659_v30 }
 0x9a7   :  { %v1668_v8 = vsel %vm1665_vm14, %v1667_v31, %v1663_v32  ;;  %1845 = vmatpush.msrb.mxu0 %v1811_v41  ;;  %v5441_v32 = vld [vmem:[%s6180_s17 + $0x10] sm:$0xff] }
 0x9a8   :  { %v1673_v34 = vmul.f32 %v1668_v8, %v5385_v43  ;;  %4154 = vmatmul.msk.f32.gmra.mxu3 %vm127_vm0, %v5441_v32 }
 0x9a9   :  { %1846 = vmatpush.msrb.mxu0 %v1810_v45 }
 0x9aa   :  { %v5406_v37 = vadd.f32 %v1673_v34, %v5360_v11 }
 0x9ac   :  { %4137 = vmatmul.msk.f32.gmra.mxu2 %vm173_vm1, %v5406_v37 }
 0xa17   :  { %v1717_v44 = vpop.f32.mrf.mxu2 }
 0xa18   :  { %v1718_v4 = vadd.f32 %v4348_v40, %v1717_v44 }
 0xa1a   :  { %v4138_v46 = vmul.f32 -1.442695, %v1718_v4 }
 0xa1c   :  { %4502 = vpow2.f32 %v4138_v46 }
 0xa1f   :  { %v1720_v11 = vpop.f32.mrf.mxu2 }
 0xa20   :  { %v1721_v47 = vadd.f32 %v4348_v40, %v1720_v11 }
 0xa22   :  { %v4503_v49 = vpop.eup %4502  ;;  %v4139_v48 = vmul.f32 -1.442695, %v1721_v47 }
 0xa23   :  { %v1741_v50 = vadd.f32 1.0, %v4503_v49 }
 0xa24   :  { %4504 = vpow2.f32 %v4139_v48 }
 0xa25   :  { %4506 = vrcp.f32 %v1741_v50  ;;  %v1756_v56 = vand.u32 2147483648, %v1741_v50  ;;  %v1754_v59 = vand.u32 2147483647, %v1741_v50  ;;  %vm1750_vm3 = vweird.f32 %v1741_v50 }
 0xa27   :  { %v1723_v24 = vpop.f32.mrf.mxu2  ;;  %v1757_v5 = vor.u32 1.1754944e-38, %v1756_v56  ;;  %vm1755_vm5 = vcmp.eq.f32.partialorder %v1754_v59, 8.507059e+37 }
 0xa28   :  { %v5413_v51 = vadd.f32 %v4348_v40, %v1723_v24 }
 0xa2a   :  { %v4505_v43 = vpop.eup %4504  ;;  %v4140_v39 = vmul.f32 -1.442695, %v5413_v51 }
 0xa2b   :  { %v4507_v36 = vpop.eup %4506  ;;  %v1742_v52 = vadd.f32 1.0, %v4505_v43  ;;  %v4349_v43 = vld [vmem:[%s6162_s13 + $0x6] ss:$0 sm:$0xff] }
 0xa2c   :  { %v1746_v53 = vmul.f32 %v4507_v36, %v1741_v50  ;;  %4508 = vpow2.f32 %v4140_v39  ;;  %vm1751_vm2 = vweird.f32 %v4507_v36 }
 0xa2d   :  { %4510 = vrcp.f32 %v1742_v52  ;;  %vm1752_vm4 = vmor %vm1750_vm3, %vm1751_vm2  ;;  %v1771_v12 = vand.u32 2147483648, %v1742_v52  ;;  %v1769_v14 = vand.u32 2147483647, %v1742_v52  ;;  %vm1765_vm7 = vweird.f32 %v1742_v52 }
 0xa2e   :  { %v1747_v54 = vsub.f32 1.0, %v1746_v53 }
 0xa2f   :  { %v1726_v57 = vpop.f32.mrf.mxu2  ;;  %v1772_v20 = vor.u32 1.1754944e-38, %v1771_v12  ;;  %vm1770_vm9 = vcmp.eq.f32.partialorder %v1769_v14, 8.507059e+37 }
 0xa30   :  { %v1748_v58 = vmul.f32 %v4507_v36, %v1747_v54  ;;  %v5419_v61 = vadd.f32 %v4348_v40, %v1726_v57 }
 0xa32   :  { %v4509_v33 = vpop.eup %4508  ;;  %v1749_v0 = vadd.f32 %v4507_v36, %v1748_v58  ;;  %v4141_v1 = vmul.f32 -1.442695, %v5419_v61 }
 0xa33   :  { %v4511_v2 = vpop.eup %4510  ;;  %v1743_v6 = vadd.f32 1.0, %v4509_v33 }
 0xa34   :  { %v1753_v7 = vsel %vm1752_vm4, %v4507_v36, %v1749_v0  ;;  %v1761_v9 = vmul.f32 %v4511_v2, %v1742_v52  ;;  %4512 = vpow2.f32 %v4141_v1  ;;  %vm1766_vm6 = vweird.f32 %v4511_v2 }
 0xa35   :  { %v1758_v42 = vsel %vm1755_vm5, %v1757_v5, %v1753_v7  ;;  %4514 = vrcp.f32 %v1743_v6  ;;  %vm1767_vm8 = vmor %vm1765_vm7, %vm1766_vm6  ;;  %v1786_v55 = vand.u32 2147483648, %v1743_v6  ;;  %v1784_v31 = vand.u32 2147483647, %v1743_v6  ;;  %v5476_v5 = vpop.f32.mrf.mxu3 }
 0xa36   :  { %v1805_v10 = vmul.f32 %v1758_v42, %v1718_v4  ;;  %v1762_v18 = vsub.f32 1.0, %v1761_v9  ;;  %vm1780_vm11 = vweird.f32 %v1743_v6 }
 0xa37   :  { %v1787_v3 = vor.u32 1.1754944e-38, %v1786_v55  ;;  %vm1785_vm14 = vcmp.eq.f32.partialorder %v1784_v31, 8.507059e+37 }
 0xa38   :  { %v1763_v13 = vmul.f32 %v4511_v2, %v1762_v18  ;;  %4143 = vmatmul.msk.f32.vlgmr.msrb.gmra.mxu0 %vm173_vm1, %v1805_v10 }
 0xa3a   :  { %v4513_v16 = vpop.eup %4512  ;;  %v1764_v17 = vadd.f32 %v4511_v2, %v1763_v13 }
 0xa3b   :  { %v4515_v19 = vpop.eup %4514  ;;  %v1744_v22 = vadd.f32 1.0, %v4513_v16 }
 0xa3c   :  { %v1768_v23 = vsel %vm1767_vm8, %v4511_v2, %v1764_v17  ;;  %v1776_v25 = vmul.f32 %v4515_v19, %v1743_v6  ;;  %vm1781_vm10 = vweird.f32 %v4515_v19 }
 0xa3d   :  { %v1773_v27 = vsel %vm1770_vm9, %v1772_v20, %v1768_v23  ;;  %4516 = vrcp.f32 %v1744_v22  ;;  %vm1782_vm13 = vmor %vm1780_vm11, %vm1781_vm10  ;;  %v1801_v4 = vand.u32 2147483648, %v1744_v22  ;;  %v1799_v11 = vand.u32 2147483647, %v1744_v22  ;;  %v5484_v17 = vpop.f32.mrf.mxu3  ;;  %v4159_v20 = vld [vmem:[%s6164_s15 + $0x30] sm:$0xff] }
 0xa3e   :  { %v1806_v26 = vmul.f32 %v1773_v27, %v1721_v47  ;;  %v1777_v28 = vsub.f32 1.0, %v1776_v25  ;;  %v5450_v47 = vld [vmem:[%s6180_s17 + $0x18] sm:$0xff]  ;;  %vm1795_vm3 = vweird.f32 %v1744_v22  ;;  %v4158_v25 = vld [vmem:[%s6164_s15 + $0x28] sm:$0xff] }
 0xa3f   :  { %4155 = vmatmul.msk.f32.gmra.mxu3 %vm127_vm0, %v5450_v47  ;;  %v1802_v48 = vor.u32 1.1754944e-38, %v1801_v4  ;;  %vm1800_vm5 = vcmp.eq.f32.partialorder %v1799_v11, 8.507059e+37 }
 0xa40   :  { %v1778_v30 = vmul.f32 %v4515_v19, %v1777_v28  ;;  %4144 = vmatmul.msk.f32.gmra.mxu0 %vm173_vm1, %v1806_v26 }
 0xa42   :  { %v1779_v8 = vadd.f32 %v4515_v19, %v1778_v30 }
 0xa43   :  { %v4517_v34 = vpop.eup %4516 }
 0xa44   :  { %v1783_v38 = vsel %vm1782_vm13, %v4515_v19, %v1779_v8  ;;  %v1791_v40 = vmul.f32 %v4517_v34, %v1744_v22  ;;  %vm1796_vm2 = vweird.f32 %v4517_v34  ;;  %v4160_v19 = vld [vmem:[%s6164_s15 + $0x38] sm:$0xff] }
 0xa45   :  { %v1788_v41 = vsel %vm1785_vm14, %v1787_v3, %v1783_v38  ;;  %vm1797_vm4 = vmor %vm1795_vm3, %vm1796_vm2  ;;  %2024 = vmatpush.msra.mxu2 %v4160_v19  ;;  %v1969_v4 = vpop.f32.mrf.mxu3 }
 0xa46   :  { %v1807_v44 = vmul.f32 %v1788_v41, %v5413_v51  ;;  %v1792_v45 = vsub.f32 1.0, %v1791_v40 }
 0xa47   :  { %2025 = vmatpush.msra.mxu2 %v4159_v20 }
 0xa48   :  { %v1793_v46 = vmul.f32 %v4517_v34, %v1792_v45  ;;  %4145 = vmatmul.msk.f32.gmra.mxu0 %vm173_vm1, %v1807_v44 }
 0xa49   :  { %2026 = vmatpush.msra.mxu2 %v4158_v25 }
 0xa4a   :  { %v1794_v49 = vadd.f32 %v4517_v34, %v1793_v46 }
 0xa4c   :  { %v1798_v50 = vsel %vm1797_vm4, %v4517_v34, %v1794_v49 }
 0xa4d   :  { %v1803_v24 = vsel %vm1800_vm5, %v1802_v48, %v1798_v50 }
 0xa4e   :  { %v1808_v51 = vmul.f32 %v1803_v24, %v5419_v61 }
 0xa50   :  { %4146 = vmatmul.msk.f32.gmra.mxu0 %vm173_vm1, %v1808_v51 }
 0xab5   :  { %v1848_v39 = vpop.f32.mrf.mxu0 }
 0xab6   :  { %v5459_v36 = vadd.f32 %v4349_v43, %v1848_v39 }
 0xab8   :  { %v4147_v52 = vmul.f32 -1.442695, %v5459_v36 }
 0xaba   :  { %4518 = vpow2.f32 %v4147_v52 }
 0xabd   :  { %v1851_v53 = vpop.f32.mrf.mxu0 }
 0xabe   :  { %v5462_v54 = vadd.f32 %v4349_v43, %v1851_v53 }
 0xac0   :  { %v4148_v21 = vmul.f32 -1.442695, %v5462_v54  ;;  %v4519_v58 = vpop.eup %4518 }
 0xac1   :  { %v5470_v0 = vadd.f32 1.0, %v4519_v58 }
 0xac2   :  { %4520 = vpow2.f32 %v4148_v21 }
 0xac3   :  { %vm1881_vm7 = vweird.f32 %v5470_v0  ;;  %v1885_v41 = vand.u32 2147483647, %v5470_v0  ;;  %v1887_v50 = vand.u32 2147483648, %v5470_v0 }
 0xac5   :  { %v1854_v56 = vpop.f32.mrf.mxu0 }
 0xac6   :  { %v5465_v57 = vadd.f32 %v4349_v43, %v1854_v56 }
 0xac8   :  { %v4521_v59 = vpop.eup %4520  ;;  %v4149_v61 = vmul.f32 -1.442695, %v5465_v57 }
 0xac9   :  { %v5468_v33 = vadd.f32 1.0, %v4521_v59 }
 0xaca   :  { %4522 = vpow2.f32 %v4149_v61 }
 0xacb   :  { %4524 = vrcp.f32 %v5468_v33  ;;  %vm1896_vm11 = vweird.f32 %v5468_v33  ;;  %v1902_v44 = vand.u32 2147483648, %v5468_v33  ;;  %v1900_v11 = vand.u32 2147483647, %v5468_v33 }
 0xacc   :  { %4526 = vrcp.f32 %v5470_v0 }
 0xacd   :  { %v1857_v1 = vpop.f32.mrf.mxu0  ;;  %v1903_v56 = vor.u32 1.1754944e-38, %v1902_v44  ;;  %vm1901_vm5 = vcmp.eq.f32.partialorder %v1900_v11, 8.507059e+37  ;;  %v387_v44 = vld [vmem:[%s6168_s19 + $0x10] sm:$0xff]  ;;  %v385_v11 = vld [vmem:[%s6168_s19] sm:$0xff] }
 0xace   :  { %v5473_v2 = vadd.f32 %v4349_v43, %v1857_v1 }
 0xad0   :  { %v4523_v6 = vpop.eup %4522  ;;  %v4150_v7 = vmul.f32 -1.442695, %v5473_v2 }
 0xad1   :  { %v1874_v9 = vadd.f32 1.0, %v4523_v6  ;;  %v4525_v42 = vpop.eup %4524 }
 0xad2   :  { %4528 = vpow2.f32 %v4150_v7  ;;  %v5479_v10 = vpop.eup %4526  ;;  %v1892_v18 = vmul.f32 %v4525_v42, %v5468_v33  ;;  %vm1897_vm8 = vweird.f32 %v4525_v42  ;;  %v1888_v33 = vor.u32 1.1754944e-38, %v1887_v50 }
 0xad3   :  { %4530 = vrcp.f32 %v1874_v9  ;;  %v1877_v13 = vmul.f32 %v5479_v10, %v5470_v0  ;;  %v1915_v34 = vand.u32 2147483647, %v1874_v9  ;;  %v1917_v3 = vand.u32 2147483648, %v1874_v9  ;;  %vm5510_vm14 = vmor %vm1896_vm11, %vm1897_vm8 }
 0xad4   :  { %v1893_v22 = vsub.f32 1.0, %v1892_v18  ;;  %vm1911_vm9 = vweird.f32 %v1874_v9  ;;  %vm1882_vm10 = vweird.f32 %v5479_v10 }
 0xad5   :  { %v1878_v27 = vsub.f32 1.0, %v1877_v13  ;;  %vm1916_vm2 = vcmp.eq.f32.partialorder %v1915_v34, 8.507059e+37  ;;  %v1918_v51 = vor.u32 1.1754944e-38, %v1917_v3  ;;  %vm5520_vm4 = vmor %vm1881_vm7, %vm1882_vm10  ;;  %v1972_v13 = vpop.f32.mrf.mxu3  ;;  %v2087_v34 = vld [vmem:[#allocation4 + $0x88] sm:$0xff]  ;;  %v2086_v3 = vld [vmem:[#allocation4 + $0x80] sm:$0xff] }
 0xad6   :  { %v1894_v28 = vmul.f32 %v4525_v42, %v1893_v22  ;;  %v2033_v22 = vld [vmem:[#allocation4 + $0x60] sm:$0xff] }
 0xad7   :  { %v1879_v30 = vmul.f32 %v5479_v10, %v1878_v27 }
 0xad8   :  { %v4529_v12 = vpop.eup %4528  ;;  %v1895_v38 = vadd.f32 %v4525_v42, %v1894_v28 }
 0xad9   :  { %v4531_v14 = vpop.eup %4530  ;;  %v1875_v16 = vadd.f32 1.0, %v4529_v12  ;;  %v1880_v46 = vadd.f32 %v5479_v10, %v1879_v30  ;;  %v2089_v30 = vld [vmem:[#allocation4 + $0x98] sm:$0xff] }
 0xada   :  { %v1907_v23 = vmul.f32 %v4531_v14, %v1874_v9  ;;  %vm1912_vm6 = vweird.f32 %v4531_v14  ;;  %v1899_v39 = vsel %vm5510_vm14, %v4525_v42, %v1895_v38 }
 0xadb   :  { %4532 = vrcp.f32 %v1875_v16  ;;  %vm5501_vm13 = vmor %vm1911_vm9, %vm1912_vm6  ;;  %v1932_v43 = vand.u32 2147483648, %v1875_v16  ;;  %v1930_v53 = vand.u32 2147483647, %v1875_v16  ;;  %v1884_v59 = vsel %vm5520_vm4, %v5479_v10, %v1880_v46 }
 0xadc   :  { %v1908_v26 = vsub.f32 1.0, %v1907_v23  ;;  %vm1926_vm6 = vweird.f32 %v1875_v16  ;;  %v1904_v1 = vsel %vm1901_vm5, %v1903_v56, %v1899_v39  ;;  %vm1886_vm9 = vcmp.eq.f32.partialorder %v1885_v41, 8.507059e+37  ;;  %v4350_v23 = vld [vmem:[%s6165_s16 + $0x1] ss:$0 sm:$0xff] }
 0xadd   :  { %v1933_v6 = vor.u32 1.1754944e-38, %v1932_v43  ;;  %vm1931_vm7 = vcmp.eq.f32.partialorder %v1930_v53, 8.507059e+37  ;;  %v1889_v9 = vsel %vm1886_vm9, %v1888_v33, %v1884_v59  ;;  %v1937_v18 = vmul.f32 %v1904_v1, %v5462_v54 }
 0xade   :  { %v1909_v55 = vmul.f32 %v4531_v14, %v1908_v26  ;;  %v1936_v10 = vmul.f32 %v1889_v9, %v5459_v36  ;;  %v4342_v26 = vld [vmem:[%s6167_s18 + $0x2] ss:$0 sm:$0xff] }
 0xadf   :  { %v5538_v19 = vadd.f32 %v1937_v18, %v5394_v60  ;;  %v4730_v60 = vld [vmem:[%s6154_s5] sm:$0xff]  ;;  %v363_v28 = vadd.f32 %v4342_v26, %v5097_v35  ;;  %v388_v35 = vld [vmem:[%s6168_s19 + $0x18] sm:$0xff] }
 0xae0   :  { %v1910_v31 = vadd.f32 %v4531_v14, %v1909_v55  ;;  %v5542_v20 = vadd.f32 %v1936_v10, %v5389_v63  ;;  %v4157_v63 = vld [vmem:[%s6164_s15 + $0x20] sm:$0xff]  ;;  %v2142_v10 = vld [vmem:[#allocation4 + $0xb8] sm:$0xff] }
 0xae1   :  { %v4533_v8 = vpop.eup %4532  ;;  %v1976_v36 = vmul.f32 %v5484_v17, %v5538_v19  ;;  %2027 = vmatpush.msra.mxu2 %v4157_v63  ;;  %v4040_v55 = vmul.f32 -1.442695, %v363_v28  ;;  %2163 = vmatpush.msra.mxu0 %v2142_v10 }
 0xae2   :  { %v1922_v40 = vmul.f32 %v4533_v8, %v1875_v16  ;;  %v1914_v49 = vsel %vm5501_vm13, %v4531_v14, %v1910_v31  ;;  %vm1927_vm3 = vweird.f32 %v4533_v8  ;;  %v2088_v31 = vld [vmem:[#allocation4 + $0x90] sm:$0xff] }
 0xae3   :  { %v1919_v58 = vsel %vm1916_vm2, %v1918_v51, %v1914_v49  ;;  %vm1928_vm8 = vmor %vm1926_vm6, %vm1927_vm3  ;;  %4534 = vpow2.f32 %v4040_v55  ;;  %2110 = vmatpush.msrb.mxu2 %v2089_v30 }
 0xae4   :  { %v1923_v48 = vsub.f32 1.0, %v1922_v40  ;;  %v1938_v0 = vmul.f32 %v1919_v58, %v5465_v57 }
 0xae5   :  { %2111 = vmatpush.msrb.mxu2 %v2088_v31 }
 0xae6   :  { %v1924_v52 = vmul.f32 %v4533_v8, %v1923_v48  ;;  %v5532_v14 = vadd.f32 %v1938_v0, %v5400_v29  ;;  %v1975_v29 = vmul.f32 %v5476_v5, %v5542_v20  ;;  %v2034_v5 = vld [vmem:[#allocation4 + $0x68] sm:$0xff] }
 0xae7   :  { %2112 = vmatpush.msrb.mxu2 %v2087_v34 }
 0xae8   :  { %v1925_v61 = vadd.f32 %v4533_v8, %v1924_v52  ;;  %v1977_v54 = vmul.f32 %v1969_v4, %v5532_v14  ;;  %v386_v4 = vld [vmem:[%s6168_s19 + $0x8] sm:$0xff] }
 0xae9   :  { %v4535_v40 = vpop.eup %4534  ;;  %2113 = vmatpush.msrb.mxu2 %v2086_v3 }
 0xaea   :  { %v1929_v7 = vsel %vm1928_vm8, %v4533_v8, %v1925_v61  ;;  %v4351_v8 = vld [vmem:[%s6167_s18 + $0x3] ss:$0 sm:$0xff]  ;;  %v368_v46 = vadd.f32 1.0, %v4535_v40 }
 0xaeb   :  { %v1934_v42 = vsel %vm1931_vm7, %v1933_v6, %v1929_v7 }
 0xaec   :  { %v1939_v12 = vmul.f32 %v1934_v42, %v5473_v2  ;;  %v2035_v2 = vld [vmem:[#allocation4 + $0x70] sm:$0xff]  ;;  %v380_v6 = vand.u32 2147483648, %v368_v46  ;;  %vm374_vm3 = vweird.f32 %v368_v46  ;;  %v378_v7 = vand.u32 2147483647, %v368_v46 }
 0xaee   :  { %v5535_v16 = vadd.f32 %v1939_v12, %v5406_v37  ;;  %v2036_v37 = vld [vmem:[#allocation4 + $0x78] sm:$0xff]  ;;  %v381_v18 = vor.u32 1.1754944e-38, %v380_v6  ;;  %vm379_vm5 = vcmp.eq.f32.partialorder %v378_v7, 8.507059e+37 }
 0xaf0   :  { %v1978_v57 = vmul.f32 %v1972_v13, %v5535_v16 }
 0xaf2   :  { %1991 = vmatpush.msrb.mxu1 %v1978_v57  ;;  %v2141_v57 = vld [vmem:[#allocation4 + $0xb0] sm:$0xff] }
 0xaf3   :  { %2164 = vmatpush.msra.mxu0 %v2141_v57 }
 0xaf4   :  { %1992 = vmatpush.msrb.mxu1 %v1977_v54  ;;  %v4352_v54 = vld [vmem:[%s6167_s18 + $0x4] ss:$0 sm:$0xff] }
 0xaf6   :  { %1993 = vmatpush.msrb.mxu1 %v1976_v36  ;;  %v2140_v36 = vld [vmem:[#allocation4 + $0xa8] sm:$0xff] }
 0xaf7   :  { %2165 = vmatpush.msra.mxu0 %v2140_v36 }
 0xaf8   :  { %1994 = vmatpush.msrb.mxu1 %v1975_v29  ;;  %v2139_v29 = vld [vmem:[#allocation4 + $0xa0] sm:$0xff] }
 0xaf9   :  { %4156 = vmatmul.msk.f32.vlgmr.msrb.gmra.mxu1 %vm173_vm1, %v4730_v60  ;;  %2166 = vmatpush.msra.mxu0 %v2139_v29 }
 0xafa   :  { %2057 = vmatpush.msra.mxu1 %v2036_v37  ;;  %v4181_v37 = vld [vmem:[%s6157_s8 + $0x38] sm:$0xff] }
 0xafb   :  { %2276 = vmatpush.msrb.mxu0 %v4181_v37 }
 0xafc   :  { %2058 = vmatpush.msra.mxu1 %v2035_v2  ;;  %v4180_v2 = vld [vmem:[%s6157_s8 + $0x30] sm:$0xff] }
 0xafd   :  { %2277 = vmatpush.msrb.mxu0 %v4180_v2 }
 0xafe   :  { %2059 = vmatpush.msra.mxu1 %v2034_v5  ;;  %v4179_v5 = vld [vmem:[%s6157_s8 + $0x28] sm:$0xff] }
 0xaff   :  { %2278 = vmatpush.msrb.mxu0 %v4179_v5 }
 0xb00   :  { %2060 = vmatpush.msra.mxu1 %v2033_v22  ;;  %v4178_v22 = vld [vmem:[%s6157_s8 + $0x20] sm:$0xff] }
 0xb01   :  { %2279 = vmatpush.msrb.mxu0 %v4178_v22 }
 0xb76   :  { %v1996_v17 = vpop.f32.mrf.mxu1 }
 0xb77   :  { %4162 = vmatmul.msk.f32.vlgmr.msra.gmra.mxu2 %vm173_vm1, %v1996_v17 }
 0xb78   :  { %2234 = vmatpush.msra.mxu2 %v388_v35  ;;  %v4174_v35 = vld [vmem:[%s6168_s19 + $0x30] sm:$0xff] }
 0xb7a   :  { %2235 = vmatpush.msra.mxu2 %v387_v44  ;;  %v4353_v44 = vld [vmem:[%s6167_s18 + $0x5] ss:$0 sm:$0xff] }
 0xb7c   :  { %2236 = vmatpush.msra.mxu2 %v386_v4 }
 0xb7e   :  { %2237 = vmatpush.msra.mxu2 %v385_v11 }
 0xbfa   :  { %v2029_v25 = vpop.f32.mrf.mxu2 }
 0xbfb   :  { %v2030_v27 = vadd.f32 %v4350_v23, %v2029_v25 }
 0xbfd   :  { %4164 = vmatmul.msk.f32.vlgmr.msra.gmra.mxu1 %vm173_vm1, %v2030_v27 }
 0xc7a   :  { %v2062_v38 = vpop.f32.mrf.mxu1 }
 0xc7b   :  { %v2063_v41 = vadd.f32 %v4351_v8, %v2062_v38 }
 0xc7d   :  { %v4165_v45 = vmul.f32 -1.442695, %v2063_v41 }
 0xc7f   :  { %4536 = vpow2.f32 %v4165_v45  ;;  %v4173_v45 = vld [vmem:[%s6168_s19 + $0x28] sm:$0xff] }
 0xc80   :  { %4538 = vrcp.f32 %v368_v46 }
 0xc85   :  { %v4537_v49 = vpop.eup %4536 }
 0xc86   :  { %v2068_v48 = vadd.f32 1.0, %v4537_v49  ;;  %v4539_v50 = vpop.eup %4538 }
 0xc87   :  { %v370_v24 = vmul.f32 %v4539_v50, %v368_v46  ;;  %vm375_vm14 = vweird.f32 %v4539_v50  ;;  %v4172_v46 = vld [vmem:[%s6168_s19 + $0x20] sm:$0xff] }
 0xc88   :  { %4540 = vrcp.f32 %v2068_v48  ;;  %v2080_v53 = vand.u32 2147483648, %v2068_v48  ;;  %v2078_v58 = vand.u32 2147483647, %v2068_v48  ;;  %vm2074_vm11 = vweird.f32 %v2068_v48  ;;  %vm376_vm4 = vmor %vm374_vm3, %vm375_vm14 }
 0xc89   :  { %v371_v43 = vsub.f32 1.0, %v370_v24 }
 0xc8a   :  { %v2081_v61 = vor.u32 1.1754944e-38, %v2080_v53  ;;  %vm2079_vm2 = vcmp.eq.f32.partialorder %v2078_v58, 8.507059e+37 }
 0xc8b   :  { %v372_v21 = vmul.f32 %v4539_v50, %v371_v43 }
 0xc8d   :  { %v373_v33 = vadd.f32 %v4539_v50, %v372_v21 }
 0xc8e   :  { %v4541_v51 = vpop.eup %4540 }
 0xc8f   :  { %v2070_v39 = vmul.f32 %v4541_v51, %v2068_v48  ;;  %vm2075_vm10 = vweird.f32 %v4541_v51  ;;  %v377_v42 = vsel %vm376_vm4, %v4539_v50, %v373_v33  ;;  %v4191_v48 = vld [vmem:[%s6155_s6 + $0x8] sm:$0xff] }
 0xc90   :  { %vm2076_vm13 = vmor %vm2074_vm11, %vm2075_vm10  ;;  %v382_v12 = vsel %vm379_vm5, %v381_v18, %v377_v42 }
 0xc91   :  { %v2071_v52 = vsub.f32 1.0, %v2070_v39  ;;  %v384_v13 = vmul.f32 %v382_v12, %v363_v28 }
 0xc93   :  { %v2072_v56 = vmul.f32 %v4541_v51, %v2071_v52 }
 0xc95   :  { %v2073_v59 = vadd.f32 %v4541_v51, %v2072_v56 }
 0xc97   :  { %v2077_v1 = vsel %vm2076_vm13, %v4541_v51, %v2073_v59 }
 0xc98   :  { %v2082_v0 = vsel %vm2079_vm2, %v2081_v61, %v2077_v1 }
 0xc99   :  { %v2084_v9 = vmul.f32 %v2082_v0, %v2063_v41  ;;  %v4175_v41 = vld [vmem:[%s6168_s19 + $0x38] sm:$0xff] }
 0xc9a   :  { %2211 = vmatpush.msrb.mxu1 %v4175_v41 }
 0xc9b   :  { %4167 = vmatmul.msk.f32.vlgmr.msrb.gmra.mxu2 %vm173_vm1, %v2084_v9 }
 0xc9c   :  { %2212 = vmatpush.msrb.mxu1 %v4174_v35 }
 0xc9e   :  { %2213 = vmatpush.msrb.mxu1 %v4173_v45 }
 0xca0   :  { %2214 = vmatpush.msrb.mxu1 %v4172_v46 }
 0xca2   :  { %2390 = vmatpush.msra.mxu1 %v4191_v48  ;;  %v4198_v48 = vld [vmem:[%s6159_s10 + $0x30] sm:$0xff] }
 0xca3   :  { %4177 = vmatmul.msk.f32.vlgmr.msra.gmra.mxu2 %vm173_vm1, %v384_v13 }
 0xd1e   :  { %v2115_v60 = vpop.f32.mrf.mxu2 }
 0xd1f   :  { %v2116_v63 = vadd.f32 %v4352_v54, %v2115_v60 }
 0xd21   :  { %v4168_v17 = vmul.f32 -1.442695, %v2116_v63 }
 0xd23   :  { %4542 = vpow2.f32 %v4168_v17 }
 0xd29   :  { %v4543_v23 = vpop.eup %4542 }
 0xd2a   :  { %v2121_v25 = vadd.f32 1.0, %v4543_v23 }
 0xd2c   :  { %4544 = vrcp.f32 %v2121_v25  ;;  %v2133_v55 = vand.u32 2147483648, %v2121_v25  ;;  %v2131_v31 = vand.u32 2147483647, %v2121_v25  ;;  %vm2127_vm8 = vweird.f32 %v2121_v25 }
 0xd2e   :  { %v2134_v34 = vor.u32 1.1754944e-38, %v2133_v55  ;;  %vm2132_vm7 = vcmp.eq.f32.partialorder %v2131_v31, 8.507059e+37 }
 0xd32   :  { %v4545_v27 = vpop.eup %4544 }
 0xd33   :  { %v2123_v26 = vmul.f32 %v4545_v27, %v2121_v25  ;;  %vm2128_vm6 = vweird.f32 %v4545_v27 }
 0xd34   :  { %vm2129_vm9 = vmor %vm2127_vm8, %vm2128_vm6 }
 0xd35   :  { %v2124_v28 = vsub.f32 1.0, %v2123_v26 }
 0xd37   :  { %v2125_v30 = vmul.f32 %v4545_v27, %v2124_v28 }
 0xd39   :  { %v2126_v8 = vadd.f32 %v4545_v27, %v2125_v30 }
 0xd3b   :  { %v2130_v3 = vsel %vm2129_vm9, %v4545_v27, %v2126_v8 }
 0xd3c   :  { %v2135_v38 = vsel %vm2132_vm7, %v2134_v34, %v2130_v3 }
 0xd3d   :  { %v2137_v40 = vmul.f32 %v2135_v38, %v2116_v63 }
 0xd3f   :  { %4170 = vmatmul.msk.f32.vlgmr.msra.gmra.mxu0 %vm173_vm1, %v2137_v40 }
 0xd47   :  { %4183 = vmatmul.msk.f32.vlgmr.msrb.gmra.mxu0 %vm173_vm1, %v5542_v20 }
 0xd4f   :  { %4184 = vmatmul.msk.f32.gmra.mxu0 %vm173_vm1, %v5538_v19 }
 0xd57   :  { %4185 = vmatmul.msk.f32.gmra.mxu0 %vm173_vm1, %v5532_v14 }
 0xd5f   :  { %4186 = vmatmul.msk.f32.gmra.mxu0 %vm173_vm1, %v5535_v16 }
 0xdbc   :  { %v2168_v4 = vpop.f32.mrf.mxu0 }
 0xdbd   :  { %v2169_v11 = vadd.f32 %v4353_v44, %v2168_v4 }
 0xdbf   :  { %v4171_v49 = vmul.f32 -1.442695, %v2169_v11 }
 0xdc1   :  { %4546 = vpow2.f32 %v4171_v49  ;;  %v4199_v49 = vld [vmem:[%s6159_s10 + $0x38] sm:$0xff] }
 0xdc2   :  { %2461 = vmatpush.msrb.mxu2 %v4199_v49 }
 0xdc4   :  { %2462 = vmatpush.msrb.mxu2 %v4198_v48  ;;  %v4217_v48 = vld [vmem:[%s6156_s7 + $0x28] sm:$0xff] }
 0xdc7   :  { %v4547_v50 = vpop.eup %4546 }
 0xdc8   :  { %v2174_v24 = vadd.f32 1.0, %v4547_v50 }
 0xdca   :  { %4548 = vrcp.f32 %v2174_v24  ;;  %v2186_v52 = vand.u32 2147483648, %v2174_v24  ;;  %v2184_v21 = vand.u32 2147483647, %v2174_v24  ;;  %vm2180_vm11 = vweird.f32 %v2174_v24 }
 0xdcc   :  { %v2187_v58 = vor.u32 1.1754944e-38, %v2186_v52  ;;  %vm2185_vm14 = vcmp.eq.f32.partialorder %v2184_v21, 8.507059e+37 }
 0xdd0   :  { %v4549_v51 = vpop.eup %4548 }
 0xdd1   :  { %v2176_v43 = vmul.f32 %v4549_v51, %v2174_v24  ;;  %vm2181_vm10 = vweird.f32 %v4549_v51 }
 0xdd2   :  { %vm2182_vm13 = vmor %vm2180_vm11, %vm2181_vm10 }
 0xdd3   :  { %v2177_v39 = vsub.f32 1.0, %v2176_v43 }
 0xdd5   :  { %v2178_v53 = vmul.f32 %v4549_v51, %v2177_v39 }
 0xdd7   :  { %v2179_v56 = vadd.f32 %v4549_v51, %v2178_v53  ;;  %v4196_v53 = vld [vmem:[%s6159_s10 + $0x20] sm:$0xff] }
 0xdd9   :  { %v2183_v59 = vsel %vm2182_vm13, %v4549_v51, %v2179_v56  ;;  %v4197_v51 = vld [vmem:[%s6159_s10 + $0x28] sm:$0xff] }
 0xdda   :  { %v2188_v61 = vsel %vm2185_vm14, %v2187_v58, %v2183_v59  ;;  %2463 = vmatpush.msrb.mxu2 %v4197_v51  ;;  %v4216_v51 = vld [vmem:[%s6156_s7 + $0x20] sm:$0xff] }
 0xddb   :  { %v2190_v33 = vmul.f32 %v2188_v61, %v2169_v11 }
 0xddc   :  { %2464 = vmatpush.msrb.mxu2 %v4196_v53 }
 0xddd   :  { %4176 = vmatmul.msk.f32.vlgmr.msrb.gmra.mxu1 %vm173_vm1, %v2190_v33 }
 0xde5   :  { %4192 = vmatmul.msk.f32.vlgmr.msra.gmra.mxu1 %vm127_vm0, %v5424_v62 }
 0xded   :  { %4193 = vmatmul.msk.f32.gmra.mxu1 %vm127_vm0, %v5433_v15  ;;  %v2281_v15 = vpop.f32.mrf.mxu0 }
 0xdf5   :  { %4194 = vmatmul.msk.f32.gmra.mxu1 %vm127_vm0, %v5441_v32  ;;  %v4354_v32 = vld [vmem:[%s6158_s9 + $0x1] ss:$0 sm:$0xff]  ;;  %v2284_v9 = vpop.f32.mrf.mxu0 }
 0xdf6   :  { %v5645_v60 = vadd.f32 %v4354_v32, %v2284_v9 }
 0xdf8   :  { %v4188_v37 = vmul.f32 -1.442695, %v5645_v60 }
 0xdfd   :  { %4195 = vmatmul.msk.f32.gmra.mxu1 %vm127_vm0, %v5450_v47  ;;  %v2282_v47 = vadd.f32 %v4354_v32, %v2281_v15  ;;  %v2287_v18 = vpop.f32.mrf.mxu0 }
 0xdfe   :  { %v5648_v5 = vadd.f32 %v4354_v32, %v2287_v18 }
 0xdff   :  { %v4187_v42 = vmul.f32 -1.442695, %v2282_v47 }
 0xe00   :  { %v4189_v27 = vmul.f32 -1.442695, %v5648_v5 }
 0xe01   :  { %4550 = vpow2.f32 %v4187_v42 }
 0xe05   :  { %v2290_v10 = vpop.f32.mrf.mxu0 }
 0xe06   :  { %v5642_v57 = vadd.f32 %v4354_v32, %v2290_v10 }
 0xe07   :  { %v4551_v12 = vpop.eup %4550 }
 0xe08   :  { %v2305_v13 = vadd.f32 1.0, %v4551_v12  ;;  %v4190_v36 = vmul.f32 -1.442695, %v5642_v57 }
 0xe0a   :  { %4552 = vrcp.f32 %v2305_v13  ;;  %v2320_v25 = vand.u32 2147483648, %v2305_v13  ;;  %vm2314_vm3 = vweird.f32 %v2305_v13  ;;  %v2318_v26 = vand.u32 2147483647, %v2305_v13 }
 0xe0b   :  { %4554 = vpow2.f32 %v4190_v36 }
 0xe0c   :  { %4556 = vpow2.f32 %v4188_v37  ;;  %v2321_v30 = vor.u32 1.1754944e-38, %v2320_v25  ;;  %vm2319_vm5 = vcmp.eq.f32.partialorder %v2318_v26, 8.507059e+37  ;;  %v5686_v26 = vpop.f32.mrf.mxu2 }
 0xe10   :  { %v4553_v54 = vpop.eup %4552 }
 0xe11   :  { %v2310_v29 = vmul.f32 %v4553_v54, %v2305_v13  ;;  %v4555_v2 = vpop.eup %4554  ;;  %vm2315_vm2 = vweird.f32 %v4553_v54 }
 0xe12   :  { %v2308_v22 = vadd.f32 1.0, %v4555_v2  ;;  %vm2316_vm4 = vmor %vm2314_vm3, %vm2315_vm2  ;;  %v4557_v28 = vpop.eup %4556 }
 0xe13   :  { %v2311_v63 = vsub.f32 1.0, %v2310_v29  ;;  %v2306_v31 = vadd.f32 1.0, %v4557_v28 }
 0xe14   :  { %4558 = vrcp.f32 %v2308_v22  ;;  %v2365_v39 = vand.u32 2147483648, %v2308_v22  ;;  %vm2359_vm8 = vweird.f32 %v2308_v22  ;;  %v2363_v52 = vand.u32 2147483647, %v2308_v22 }
 0xe15   :  { %v2312_v17 = vmul.f32 %v4553_v54, %v2311_v63  ;;  %4560 = vpow2.f32 %v4189_v27  ;;  %vm2329_vm11 = vweird.f32 %v2306_v31 }
 0xe16   :  { %4562 = vrcp.f32 %v2306_v31  ;;  %v2366_v59 = vor.u32 1.1754944e-38, %v2365_v39  ;;  %vm2364_vm7 = vcmp.eq.f32.partialorder %v2363_v52, 8.507059e+37 }
 0xe17   :  { %v2313_v23 = vadd.f32 %v4553_v54, %v2312_v17 }
 0xe19   :  { %v2317_v55 = vsel %vm2316_vm4, %v4553_v54, %v2313_v23 }
 0xe1a   :  { %v2322_v8 = vsel %vm2319_vm5, %v2321_v30, %v2317_v55  ;;  %v4559_v34 = vpop.eup %4558 }
 0xe1b   :  { %v5651_v3 = vmul.f32 %v2322_v8, %v2282_v47  ;;  %v4561_v40 = vpop.eup %4560  ;;  %v2355_v35 = vmul.f32 %v4559_v34, %v2308_v22  ;;  %vm2360_vm6 = vweird.f32 %v4559_v34 }
 0xe1c   :  { %v2307_v44 = vadd.f32 1.0, %v4561_v40  ;;  %v4563_v4 = vpop.eup %4562  ;;  %vm2361_vm9 = vmor %vm2359_vm8, %vm2360_vm6 }
 0xe1d   :  { %v2356_v45 = vsub.f32 1.0, %v2355_v35  ;;  %v2325_v11 = vmul.f32 %v4563_v4, %v2306_v31  ;;  %vm2330_vm10 = vweird.f32 %v4563_v4 }
 0xe1e   :  { %4564 = vrcp.f32 %v2307_v44  ;;  %vm2331_vm13 = vmor %vm2329_vm11, %vm2330_vm10  ;;  %v2350_v13 = vand.u32 2147483648, %v2307_v44  ;;  %vm2344_vm3 = vweird.f32 %v2307_v44 }
 0xe1f   :  { %v2357_v46 = vmul.f32 %v4559_v34, %v2356_v45  ;;  %v2326_v24 = vsub.f32 1.0, %v2325_v11  ;;  %v4218_v11 = vld [vmem:[%s6156_s7 + $0x30] sm:$0xff] }
 0xe20   :  { %v2351_v63 = vor.u32 1.1754944e-38, %v2350_v13 }
 0xe21   :  { %v2358_v50 = vadd.f32 %v4559_v34, %v2357_v46  ;;  %v2327_v56 = vmul.f32 %v4563_v4, %v2326_v24  ;;  %v4219_v46 = vld [vmem:[%s6156_s7 + $0x38] sm:$0xff] }
 0xe22   :  { %2616 = vmatpush.msra.mxu0 %v4219_v46 }
 0xe23   :  { %v2362_v21 = vsel %vm2361_vm9, %v4559_v34, %v2358_v50  ;;  %v2328_v33 = vadd.f32 %v4563_v4, %v2327_v56 }
 0xe24   :  { %v4565_v43 = vpop.eup %4564  ;;  %v2367_v61 = vsel %vm2364_vm7, %v2366_v59, %v2362_v21  ;;  %2617 = vmatpush.msra.mxu0 %v4218_v11 }
 0xe25   :  { %v2340_v58 = vmul.f32 %v4565_v43, %v2307_v44  ;;  %v2332_v47 = vsel %vm2331_vm13, %v4563_v4, %v2328_v33  ;;  %vm2345_vm2 = vweird.f32 %v4565_v43 }
 0xe26   :  { %vm2346_vm4 = vmor %vm2344_vm3, %vm2345_vm2  ;;  %2618 = vmatpush.msra.mxu0 %v4217_v48 }
 0xe28   :  { %2619 = vmatpush.msra.mxu0 %v4216_v51  ;;  %v4739_v51 = vld [vmem:[%s6189_s23 + $0x10] sm:$0xff] }
 0xe5a   :  { %v5633_v1 = vpop.f32.mrf.mxu1 }
 0xe62   :  { %v2392_v6 = vpop.f32.mrf.mxu1 }
 0xe63   :  { %2408 = vrot.lane.b32.xlu2 %v2392_v6, %s4812_s4  ;;  %v2341_v6 = vsub.f32 1.0, %v2340_v58  ;;  %v4731_v58 = vld [vmem:[%s6184_s2] sm:$0xff] }
 0xe64   :  { %4220 = vmatmul.msk.f32.vlgmr.msra.gmra.mxu0 %vm173_vm1, %v4731_v58  ;;  %v4746_v58 = vld [vmem:[%s6189_s23 + $0x38] sm:$0xff] }
 0xe65   :  { %v2342_v9 = vmul.f32 %v4565_v43, %v2341_v6 }
 0xe67   :  { %v2343_v12 = vadd.f32 %v4565_v43, %v2342_v9  ;;  %v4732_v9 = vld [vmem:[%s6184_s2 + $0x8] sm:$0xff] }
 0xe69   :  { %v2347_v29 = vsel %vm2346_vm4, %v4565_v43, %v2343_v12 }
 0xe6a   :  { %v2395_v0 = vpop.f32.mrf.mxu1 }
 0xe6b   :  { %2410 = vrot.lane.b32.xlu0 %v2395_v0, %s4812_s4  ;;  %v2335_v0 = vand.u32 2147483648, %v2306_v31 }
 0xe6c   :  { %4221 = vmatmul.msk.f32.gmra.mxu0 %vm173_vm1, %v4732_v9 }
 0xe6d   :  { %v2336_v42 = vor.u32 1.1754944e-38, %v2335_v0 }
 0xe72   :  { %v2398_v7 = vpop.f32.mrf.mxu1 }
 0xe73   :  { %2412 = vrot.lane.b32.xlu1 %v2398_v7, %s4812_s4  ;;  %v5668_v7 = vmul.f32 %v2367_v61, %v5642_v57  ;;  %v2348_v57 = vand.u32 2147483647, %v2307_v44 }
 0xe75   :  { %vm2349_vm5 = vcmp.eq.f32.partialorder %v2348_v57, 8.507059e+37 }
 0xe76   :  { %v2352_v37 = vsel %vm2349_vm5, %v2351_v63, %v2347_v29 }
 0xe77   :  { %v5678_v2 = vmul.f32 %v2352_v37, %v5648_v5 }
 0xe7a   :  { %v2401_v62 = vpop.f32.mrf.mxu1 }
 0xe7b   :  { %2414 = vrot.lane.b32.xlu2 %v2401_v62, %s4812_s4  ;;  %v2333_v62 = vand.u32 2147483647, %v2306_v31 }
 0xe7d   :  { %vm2334_vm14 = vcmp.eq.f32.partialorder %v2333_v62, 8.507059e+37 }
 0xe7e   :  { %v2337_v18 = vsel %vm2334_vm14, %v2336_v42, %v2332_v47 }
 0xe7f   :  { %v5673_v10 = vmul.f32 %v2337_v18, %v5645_v60 }
 0xebd   :  { %v2409_v38 = vpop.permute.xlu2 %2408 }
 0xebe   :  { %v2420_v41 = vmul.f32 %v2409_v38, %v5651_v3 }
 0xec0   :  { %2433 = vrot.lane.b32.xlu0 %v2420_v41, %s4813_s30 }
 0xed5   :  { %v2415_v15 = vpop.permute.xlu2 %2414 }
 0xed6   :  { %v2423_v32 = vmul.f32 %v2415_v15, %v5668_v7 }
 0xed8   :  { %2439 = vrot.lane.b32.xlu0 %v2423_v32, %s4813_s30 }
 0xedd   :  { %v2411_v54 = vpop.permute.xlu0 %2410 }
 0xede   :  { %v2421_v36 = vmul.f32 %v2411_v54, %v5673_v10 }
 0xee0   :  { %2435 = vrot.lane.b32.xlu1 %v2421_v36, %s4813_s30 }
 0xee5   :  { %v2413_v17 = vpop.permute.xlu1 %2412 }
 0xee6   :  { %v2422_v22 = vmul.f32 %v2413_v17, %v5678_v2 }
 0xee8   :  { %2437 = vrot.lane.b32.xlu2 %v2422_v22, %s4813_s30 }
 0xf32   :  { %v2434_v60 = vpop.permute.xlu0 %2433 }
 0xf33   :  { %4200 = vmatmul.msk.f32.vlgmr.msrb.gmra.mxu2 %vm173_vm1, %v2434_v60 }
 0xf42   :  { %v2438_v25 = vpop.permute.xlu2 %2437 }
 0xf4a   :  { %v2440_v27 = vpop.permute.xlu0 %2439 }
 0xf52   :  { %v2436_v23 = vpop.permute.xlu1 %2435 }
 0xf53   :  { %4201 = vmatmul.msk.f32.gmra.mxu2 %vm173_vm1, %v2436_v23 }
 0xf5b   :  { %4202 = vmatmul.msk.f32.gmra.mxu2 %vm173_vm1, %v2438_v25 }
 0xf63   :  { %4203 = vmatmul.msk.f32.gmra.mxu2 %vm173_vm1, %v2440_v27 }
 0xfb6   :  { %v5688_v5 = vpop.f32.mrf.mxu2 }
 0xfb7   :  { %v4204_v28 = vmul.f32 -1.442695, %v5688_v5 }
 0xfb9   :  { %4566 = vpow2.f32 %v4204_v28 }
 0xfbf   :  { %v4567_v34 = vpop.eup %4566 }
 0xfc0   :  { %v5697_v40 = vadd.f32 1.0, %v4567_v34 }
 0xfc2   :  { %vm2499_vm6 = vweird.f32 %v5697_v40  ;;  %v2503_v23 = vand.u32 2147483647, %v5697_v40  ;;  %v2505_v25 = vand.u32 2147483648, %v5697_v40 }
 0xfc4   :  { %v2506_v46 = vor.u32 1.1754944e-38, %v2505_v25 }
 0xfd6   :  { %v5691_v55 = vpop.f32.mrf.mxu2 }
 0xfd7   :  { %v4205_v30 = vmul.f32 -1.442695, %v5691_v55 }
 0xfd9   :  { %4568 = vpow2.f32 %v4205_v30 }
 0xfde   :  { %v5694_v31 = vpop.f32.mrf.mxu2 }
 0xfdf   :  { %v4206_v8 = vmul.f32 -1.442695, %v5694_v31  ;;  %v4569_v38 = vpop.eup %4568 }
 0xfe0   :  { %v5699_v41 = vadd.f32 1.0, %v4569_v38 }
 0xfe1   :  { %4570 = vpow2.f32 %v4206_v8 }
 0xfe2   :  { %4572 = vrcp.f32 %v5697_v40  ;;  %vm2514_vm13 = vweird.f32 %v5699_v41  ;;  %v2520_v29 = vand.u32 2147483648, %v5699_v41  ;;  %v2518_v17 = vand.u32 2147483647, %v5699_v41 }
 0xfe3   :  { %4574 = vrcp.f32 %v5699_v41 }
 0xfe4   :  { %v2521_v34 = vor.u32 1.1754944e-38, %v2520_v29 }
 0xfe6   :  { %v5701_v35 = vpop.f32.mrf.mxu2 }
 0xfe7   :  { %v4571_v44 = vpop.eup %4570  ;;  %v4207_v45 = vmul.f32 -1.442695, %v5701_v35 }
 0xfe8   :  { %v2492_v4 = vadd.f32 1.0, %v4571_v44  ;;  %v5712_v49 = vpop.eup %4572 }
 0xfe9   :  { %4576 = vpow2.f32 %v4207_v45  ;;  %v5717_v50 = vpop.eup %4574  ;;  %v2495_v21 = vmul.f32 %v5712_v49, %v5697_v40  ;;  %vm2500_vm11 = vweird.f32 %v5712_v49 }
 0xfea   :  { %4578 = vrcp.f32 %v2492_v4  ;;  %v2510_v52 = vmul.f32 %v5717_v50, %v5699_v41  ;;  %vm2515_vm8 = vweird.f32 %v5717_v50  ;;  %vm2529_vm7 = vweird.f32 %v2492_v4 }
 0xfeb   :  { %v2496_v61 = vsub.f32 1.0, %v2495_v21  ;;  %v2533_v42 = vand.u32 2147483647, %v2492_v4  ;;  %v2535_v18 = vand.u32 2147483648, %v2492_v4  ;;  %vm5750_vm2 = vmor %vm2514_vm13, %vm2515_vm8  ;;  %v4744_v21 = vld [vmem:[%s6189_s23 + $0x28] sm:$0xff] }
 0xfec   :  { %v2511_v59 = vsub.f32 1.0, %v2510_v52  ;;  %v4742_v52 = vld [vmem:[%s6184_s2 + $0x38] sm:$0xff] }
 0xfed   :  { %v2497_v15 = vmul.f32 %v5712_v49, %v2496_v61  ;;  %v2536_v27 = vor.u32 1.1754944e-38, %v2535_v18  ;;  %vm2534_vm5 = vcmp.eq.f32.partialorder %v2533_v42, 8.507059e+37 }
 0xfee   :  { %v2512_v0 = vmul.f32 %v5717_v50, %v2511_v59  ;;  %v2621_v59 = vpop.f32.mrf.mxu0 }
 0xfef   :  { %v4577_v24 = vpop.eup %4576  ;;  %v2498_v36 = vadd.f32 %v5712_v49, %v2497_v15 }
 0xff0   :  { %v4579_v43 = vpop.eup %4578  ;;  %v2493_v39 = vadd.f32 1.0, %v4577_v24  ;;  %v2513_v13 = vadd.f32 %v5717_v50, %v2512_v0  ;;  %v4735_v24 = vld [vmem:[%s6189_s23] sm:$0xff] }
 0xff1   :  { %v2525_v53 = vmul.f32 %v4579_v43, %v2492_v4  ;;  %vm2530_vm9 = vweird.f32 %v4579_v43  ;;  %v4733_v4 = vld [vmem:[%s6184_s2 + $0x10] sm:$0xff] }
 0xff2   :  { %4580 = vrcp.f32 %v2493_v39  ;;  %v2550_v12 = vand.u32 2147483648, %v2493_v39  ;;  %v2548_v54 = vand.u32 2147483647, %v2493_v39  ;;  %vm5744_vm14 = vmor %vm2529_vm7, %vm2530_vm9  ;;  %vm2544_vm3 = vweird.f32 %v2493_v39  ;;  %4222 = vmatmul.msk.f32.gmra.mxu0 %vm173_vm1, %v4733_v4  ;;  %v2814_v4 = vld [vmem:[#allocation2 + $0xf8] sm:$0xff] }
 0xff3   :  { %v2526_v56 = vsub.f32 1.0, %v2525_v53  ;;  %v2517_v30 = vsel %vm5750_vm2, %v5717_v50, %v2513_v13  ;;  %vm2501_vm9 = vmor %vm2499_vm6, %vm2500_vm11  ;;  %vm2519_vm7 = vcmp.eq.f32.partialorder %v2518_v17, 8.507059e+37  ;;  %v4743_v53 = vld [vmem:[%s6189_s23 + $0x20] sm:$0xff] }
 0xff4   :  { %v2551_v28 = vor.u32 1.1754944e-38, %v2550_v12  ;;  %vm2549_vm8 = vcmp.eq.f32.partialorder %v2548_v54, 8.507059e+37  ;;  %v2502_v44 = vsel %vm2501_vm9, %v5712_v49, %v2498_v36  ;;  %v2522_v11 = vsel %vm2519_vm7, %v2521_v34, %v2517_v30  ;;  %v4749_v30 = vld [vmem:[%s6190_s3 + $0x10] sm:$0xff] }
 0xff5   :  { %v2527_v33 = vmul.f32 %v4579_v43, %v2526_v56  ;;  %v2555_v50 = vmul.f32 %v2522_v11, %v5691_v55  ;;  %v4736_v55 = vld [vmem:[%s6184_s2 + $0x20] sm:$0xff]  ;;  %v4745_v56 = vld [vmem:[%s6189_s23 + $0x30] sm:$0xff]  ;;  %v2812_v11 = vld [vmem:[#allocation2 + $0xe8] sm:$0xff] }
 0xff6   :  { %v2624_v61 = vpop.f32.mrf.mxu0  ;;  %v4232_v34 = vld [vmem:[%s6160_s11 + $0x10] sm:$0xff] }
 0xff7   :  { %v2528_v32 = vadd.f32 %v4579_v43, %v2527_v33 }
 0xff8   :  { %v4581_v6 = vpop.eup %4580 }
 0xff9   :  { %v2540_v62 = vmul.f32 %v4581_v6, %v2493_v39  ;;  %vm2545_vm10 = vweird.f32 %v4581_v6  ;;  %v2532_v22 = vsel %vm5744_vm14, %v4579_v43, %v2528_v32  ;;  %v4740_v43 = vld [vmem:[%s6184_s2 + $0x30] sm:$0xff]  ;;  %v4741_v39 = vld [vmem:[%s6189_s23 + $0x18] sm:$0xff] }
 0xffa   :  { %vm2546_vm4 = vmor %vm2544_vm3, %vm2545_vm10  ;;  %v2537_v38 = vsel %vm2534_vm5, %v2536_v27, %v2532_v22  ;;  %vm2504_vm10 = vcmp.eq.f32.partialorder %v2503_v23, 8.507059e+37  ;;  %v4747_v27 = vld [vmem:[%s6190_s3] sm:$0xff] }
 0xffb   :  { %v2541_v47 = vsub.f32 1.0, %v2540_v62  ;;  %v2556_v40 = vmul.f32 %v2537_v38, %v5694_v31  ;;  %v2507_v48 = vsel %vm2504_vm10, %v2506_v46, %v2502_v44  ;;  %v4738_v31 = vld [vmem:[%s6184_s2 + $0x28] sm:$0xff]  ;;  %v2813_v46 = vld [vmem:[#allocation2 + $0xf0] sm:$0xff] }
 0xffc   :  { %v2554_v49 = vmul.f32 %v2507_v48, %v5688_v5  ;;  %v4737_v5 = vld [vmem:[%s6189_s23 + $0x8] sm:$0xff]  ;;  %v2811_v48 = vld [vmem:[#allocation2 + $0xe0] sm:$0xff] }
 0xffd   :  { %v2542_v57 = vmul.f32 %v4581_v6, %v2541_v47 }
 0xfff   :  { %v2543_v60 = vadd.f32 %v4581_v6, %v2542_v57 }
0x1001   :  { %v2547_v8 = vsel %vm2546_vm4, %v4581_v6, %v2543_v60  ;;  %v4233_v60 = vld [vmem:[%s6160_s11 + $0x18] sm:$0xff] }
0x1002   :  { %v2552_v41 = vsel %vm2549_vm8, %v2551_v28, %v2547_v8  ;;  %2711 = vmatpush.msra.mxu2 %v4233_v60  ;;  %v4748_v28 = vld [vmem:[%s6190_s3 + $0x8] sm:$0xff]  ;;  %v4750_v8 = vld [vmem:[%s6190_s3 + $0x18] sm:$0xff] }
0x1003   :  { %v2557_v45 = vmul.f32 %v2552_v41, %v5701_v35  ;;  %v4734_v35 = vld [vmem:[%s6184_s2 + $0x18] sm:$0xff] }
0x1004   :  { %4223 = vmatmul.msk.f32.gmra.mxu0 %vm173_vm1, %v4734_v35  ;;  %2712 = vmatpush.msra.mxu2 %v4232_v34 }
0x1005   :  { %2570 = vmatpush.msrb.mxu3 %v2557_v45 }
0x1007   :  { %2571 = vmatpush.msrb.mxu3 %v2556_v40 }
0x1009   :  { %2572 = vmatpush.msrb.mxu3 %v2555_v50 }
0x100b   :  { %2573 = vmatpush.msrb.mxu3 %v2554_v49 }
0x100c   :  { %4208 = vmatmul.msk.f32.vlgmr.msrb.gmra.mxu3 %vm173_vm1, %v4735_v24  ;;  %4224 = vmatmul.msk.f32.gmra.mxu0 %vm173_vm1, %v4736_v55 }
0x1014   :  { %4209 = vmatmul.msk.f32.gmra.mxu3 %vm173_vm1, %v4737_v5  ;;  %4225 = vmatmul.msk.f32.gmra.mxu0 %vm173_vm1, %v4738_v31 }
0x101c   :  { %4210 = vmatmul.msk.f32.gmra.mxu3 %vm173_vm1, %v4739_v51  ;;  %4226 = vmatmul.msk.f32.gmra.mxu0 %vm173_vm1, %v4740_v43 }
0x1024   :  { %4211 = vmatmul.msk.f32.gmra.mxu3 %vm173_vm1, %v4741_v39  ;;  %4227 = vmatmul.msk.f32.gmra.mxu0 %vm173_vm1, %v4742_v52 }
0x102c   :  { %4212 = vmatmul.msk.f32.gmra.mxu3 %vm173_vm1, %v4743_v53 }
0x1034   :  { %4213 = vmatmul.msk.f32.gmra.mxu3 %vm173_vm1, %v4744_v21 }
0x103c   :  { %4214 = vmatmul.msk.f32.gmra.mxu3 %vm173_vm1, %v4745_v56 }
0x1044   :  { %4215 = vmatmul.msk.f32.gmra.mxu3 %vm173_vm1, %v4746_v58 }
0x106f   :  { %v2627_v0 = vpop.f32.mrf.mxu0 }
0x1081   :  { %v2630_v15 = vpop.f32.mrf.mxu0 }
0x1089   :  { %v2633_v9 = vpop.f32.mrf.mxu0 }
0x108f   :  { %v2575_v33 = vpop.f32.mrf.mxu3 }
0x1090   :  { %v2645_v6 = vmul.f32 %v2621_v59, %v2575_v33 }
0x1091   :  { %v2636_v18 = vpop.f32.mrf.mxu0 }
0x1097   :  { %v2578_v62 = vpop.f32.mrf.mxu3 }
0x1098   :  { %v2646_v25 = vmul.f32 %v2624_v61, %v2578_v62 }
0x1099   :  { %v2639_v13 = vpop.f32.mrf.mxu0 }
0x109f   :  { %v2581_v32 = vpop.f32.mrf.mxu3 }
0x10a0   :  { %v2647_v23 = vmul.f32 %v2627_v0, %v2581_v32 }
0x10a1   :  { %v2642_v54 = vpop.f32.mrf.mxu0 }
0x10a7   :  { %v2584_v47 = vpop.f32.mrf.mxu3 }
0x10a8   :  { %v2648_v22 = vmul.f32 %v2630_v15, %v2584_v47 }
0x10af   :  { %v2587_v42 = vpop.f32.mrf.mxu3 }
0x10b0   :  { %v2649_v17 = vmul.f32 %v2633_v9, %v2587_v42 }
0x10b7   :  { %v2590_v12 = vpop.f32.mrf.mxu3 }
0x10b8   :  { %v2650_v37 = vmul.f32 %v2636_v18, %v2590_v12 }
0x10bf   :  { %v2593_v57 = vpop.f32.mrf.mxu3 }
0x10c0   :  { %v2651_v63 = vmul.f32 %v2639_v13, %v2593_v57 }
0x10c7   :  { %v2596_v36 = vpop.f32.mrf.mxu3 }
0x10c8   :  { %v2652_v29 = vmul.f32 %v2642_v54, %v2596_v36 }
0x10ca   :  { %2661 = vmatpush.msrb.mxu1 %v2652_v29 }
0x10cc   :  { %2662 = vmatpush.msrb.mxu1 %v2651_v63 }
0x10ce   :  { %2663 = vmatpush.msrb.mxu1 %v2650_v37 }
0x10d0   :  { %2664 = vmatpush.msrb.mxu1 %v2649_v17 }
0x10d2   :  { %2665 = vmatpush.msrb.mxu1 %v2648_v22 }
0x10d4   :  { %2666 = vmatpush.msrb.mxu1 %v2647_v23 }
0x10d6   :  { %2667 = vmatpush.msrb.mxu1 %v2646_v25 }
0x10d8   :  { %2668 = vmatpush.msrb.mxu1 %v2645_v6 }
0x10d9   :  { %4228 = vmatmul.msk.f32.vlgmr.msrb.gmra.mxu1 %vm843_vm12, %v4747_v27 }
0x10da   :  { %2844 = vmatpush.msra.mxu1 %v2814_v4 }
0x10dc   :  { %2845 = vmatpush.msra.mxu1 %v2813_v46 }
0x10de   :  { %2846 = vmatpush.msra.mxu1 %v2812_v11 }
0x10e0   :  { %2847 = vmatpush.msra.mxu1 %v2811_v48 }
0x10e1   :  { %4229 = vmatmul.msk.f32.gmra.mxu1 %vm843_vm12, %v4748_v28 }
0x10e9   :  { %4230 = vmatmul.msk.f32.gmra.mxu1 %vm843_vm12, %v4749_v30 }
0x10f1   :  { %4231 = vmatmul.msk.f32.gmra.mxu1 %vm843_vm12, %v4750_v8 }
0x1156   :  { %v2670_v38 = vpop.f32.mrf.mxu1 }
0x1157   :  { %4234 = vmatmul.msk.f32.vlgmr.msra.gmra.mxu2 %vm887_vm15, %v2670_v38 }
0x115e   :  { %v2673_v41 = vpop.f32.mrf.mxu1 }
0x115f   :  { %4235 = vmatmul.msk.f32.gmra.mxu2 %vm887_vm15, %v2673_v41 }
0x1166   :  { %v2676_v44 = vpop.f32.mrf.mxu1 }
0x1167   :  { %4236 = vmatmul.msk.f32.gmra.mxu2 %vm887_vm15, %v2676_v44 }
0x116e   :  { %v2679_v45 = vpop.f32.mrf.mxu1 }
0x116f   :  { %4237 = vmatmul.msk.f32.gmra.mxu2 %vm887_vm15, %v2679_v45 }
0x11da   :  { %v2714_v40 = vpop.f32.mrf.mxu2 }
0x11db   :  { %v4238_v50 = vmul.f32 -1.442695, %v2714_v40 }
0x11dd   :  { %4582 = vpow2.f32 %v4238_v50 }
0x11e2   :  { %v2717_v49 = vpop.f32.mrf.mxu2 }
0x11e3   :  { %v4583_v35 = vpop.eup %4582  ;;  %v4239_v24 = vmul.f32 -1.442695, %v2717_v49 }
0x11e4   :  { %v2738_v55 = vadd.f32 1.0, %v4583_v35 }
0x11e5   :  { %4584 = vpow2.f32 %v4239_v24 }
0x11e6   :  { %4586 = vrcp.f32 %v2738_v55  ;;  %v2753_v21 = vand.u32 2147483648, %v2738_v55  ;;  %v2751_v58 = vand.u32 2147483647, %v2738_v55  ;;  %vm2747_vm15 = vweird.f32 %v2738_v55 }
0x11e8   :  { %v2754_v62 = vor.u32 1.1754944e-38, %v2753_v21  ;;  %vm2752_vm11 = vcmp.eq.f32.partialorder %v2751_v58, 8.507059e+37 }
0x11ea   :  { %v5854_v5 = vpop.f32.mrf.mxu2 }
0x11eb   :  { %v4585_v31 = vpop.eup %4584  ;;  %v4240_v51 = vmul.f32 -1.442695, %v5854_v5 }
0x11ec   :  { %v4587_v43 = vpop.eup %4586  ;;  %v2739_v39 = vadd.f32 1.0, %v4585_v31 }
0x11ed   :  { %v2743_v52 = vmul.f32 %v4587_v43, %v2738_v55  ;;  %4588 = vpow2.f32 %v4240_v51  ;;  %vm2748_vm12 = vweird.f32 %v4587_v43  ;;  %v2944_v51 = vld [vmem:[#allocation2 + $0x110] sm:$0xff] }
0x11ee   :  { %4590 = vrcp.f32 %v2739_v39  ;;  %vm2749_vm6 = vmor %vm2747_vm15, %vm2748_vm12  ;;  %v2768_v12 = vand.u32 2147483648, %v2739_v39  ;;  %v2766_v54 = vand.u32 2147483647, %v2739_v39  ;;  %vm2762_vm14 = vweird.f32 %v2739_v39 }
0x11ef   :  { %v2744_v53 = vsub.f32 1.0, %v2743_v52 }
0x11f0   :  { %v2769_v37 = vor.u32 1.1754944e-38, %v2768_v12  ;;  %vm2767_vm3 = vcmp.eq.f32.partialorder %v2766_v54, 8.507059e+37 }
0x11f1   :  { %v2745_v56 = vmul.f32 %v4587_v43, %v2744_v53  ;;  %v2942_v53 = vld [vmem:[#allocation2 + $0x100] sm:$0xff] }
0x11f2   :  { %v5857_v59 = vpop.f32.mrf.mxu2 }
0x11f3   :  { %v4589_v61 = vpop.eup %4588  ;;  %v2746_v33 = vadd.f32 %v4587_v43, %v2745_v56  ;;  %v4241_v6 = vmul.f32 -1.442695, %v5857_v59 }
0x11f4   :  { %v4591_v0 = vpop.eup %4590  ;;  %v2740_v15 = vadd.f32 1.0, %v4589_v61 }
0x11f5   :  { %v2750_v32 = vsel %vm2749_vm6, %v4587_v43, %v2746_v33  ;;  %v2758_v47 = vmul.f32 %v4591_v0, %v2739_v39  ;;  %4592 = vpow2.f32 %v4241_v6  ;;  %vm2763_vm13 = vweird.f32 %v4591_v0  ;;  %v4355_v43 = vld [vmem:[%s6162_s13 + $0x7] ss:$0 sm:$0xff]  ;;  %v2943_v39 = vld [vmem:[#allocation2 + $0x108] sm:$0xff] }
0x11f6   :  { %v2755_v9 = vsel %vm2752_vm11, %v2754_v62, %v2750_v32  ;;  %4594 = vrcp.f32 %v2740_v15  ;;  %vm2764_vm2 = vmor %vm2762_vm14, %vm2763_vm13  ;;  %v2783_v27 = vand.u32 2147483648, %v2740_v15  ;;  %v2781_v8 = vand.u32 2147483647, %v2740_v15 }
0x11f7   :  { %v2802_v42 = vmul.f32 %v2755_v9, %v2714_v40  ;;  %v2759_v18 = vsub.f32 1.0, %v2758_v47  ;;  %vm2777_vm5 = vweird.f32 %v2740_v15 }
0x11f8   :  { %v2784_v41 = vor.u32 1.1754944e-38, %v2783_v27  ;;  %vm2782_vm9 = vcmp.eq.f32.partialorder %v2781_v8, 8.507059e+37 }
0x11f9   :  { %v5861_v13 = vadd.f32 %v2802_v42, %v5651_v3  ;;  %v2760_v57 = vmul.f32 %v4591_v0, %v2759_v18 }
0x11fb   :  { %v4593_v36 = vpop.eup %4592  ;;  %v2761_v29 = vadd.f32 %v4591_v0, %v2760_v57  ;;  %4243 = vmatmul.msk.f32.vlgmr.msra.gmra.mxu1 %vm173_vm1, %v5861_v13 }
0x11fc   :  { %v4595_v63 = vpop.eup %4594  ;;  %v2741_v17 = vadd.f32 1.0, %v4593_v36 }
0x11fd   :  { %v2765_v22 = vsel %vm2764_vm2, %v4591_v0, %v2761_v29  ;;  %v2773_v60 = vmul.f32 %v4595_v63, %v2740_v15  ;;  %vm2778_vm4 = vweird.f32 %v4595_v63  ;;  %v3080_v29 = vld [vmem:[#allocation2 + $0x138] sm:$0xff] }
0x11fe   :  { %v2770_v23 = vsel %vm2767_vm3, %v2769_v37, %v2765_v22  ;;  %4596 = vrcp.f32 %v2741_v17  ;;  %vm2779_vm8 = vmor %vm2777_vm5, %vm2778_vm4  ;;  %v2796_v50 = vand.u32 2147483647, %v2741_v17  ;;  %vm2792_vm10 = vweird.f32 %v2741_v17  ;;  %3110 = vmatpush.msra.mxu3 %v3080_v29 }
0x11ff   :  { %v2803_v3 = vmul.f32 %v2770_v23, %v2717_v49  ;;  %v2774_v25 = vsub.f32 1.0, %v2773_v60 }
0x1200   :  { %vm2797_vm15 = vcmp.eq.f32.partialorder %v2796_v50, 8.507059e+37 }
0x1201   :  { %v5866_v28 = vadd.f32 %v2803_v3, %v5673_v10  ;;  %v2775_v30 = vmul.f32 %v4595_v63, %v2774_v25  ;;  %v2798_v10 = vand.u32 2147483648, %v2741_v17 }
0x1203   :  { %v2776_v34 = vadd.f32 %v4595_v63, %v2775_v30  ;;  %4244 = vmatmul.msk.f32.gmra.mxu1 %vm173_vm1, %v5866_v28  ;;  %v2799_v35 = vor.u32 1.1754944e-38, %v2798_v10 }
0x1204   :  { %v4597_v38 = vpop.eup %4596 }
0x1205   :  { %v2780_v44 = vsel %vm2779_vm8, %v4595_v63, %v2776_v34  ;;  %v2788_v45 = vmul.f32 %v4597_v38, %v2741_v17  ;;  %vm2793_vm7 = vweird.f32 %v4597_v38 }
0x1206   :  { %v2785_v4 = vsel %vm2782_vm9, %v2784_v41, %v2780_v44  ;;  %vm2794_vm12 = vmor %vm2792_vm10, %vm2793_vm7 }
0x1207   :  { %v2804_v46 = vmul.f32 %v2785_v4, %v5854_v5  ;;  %v2789_v11 = vsub.f32 1.0, %v2788_v45 }
0x1209   :  { %v5872_v40 = vadd.f32 %v2804_v46, %v5678_v2  ;;  %v2790_v48 = vmul.f32 %v4597_v38, %v2789_v11  ;;  %v2945_v2 = vld [vmem:[#allocation2 + $0x118] sm:$0xff] }
0x120a   :  { %2975 = vmatpush.msrb.mxu2 %v2945_v2 }
0x120b   :  { %v2791_v49 = vadd.f32 %v4597_v38, %v2790_v48  ;;  %4245 = vmatmul.msk.f32.gmra.mxu1 %vm173_vm1, %v5872_v40 }
0x120c   :  { %2976 = vmatpush.msrb.mxu2 %v2944_v51 }
0x120d   :  { %v2795_v24 = vsel %vm2794_vm12, %v4597_v38, %v2791_v49 }
0x120e   :  { %v2800_v55 = vsel %vm2797_vm15, %v2799_v35, %v2795_v24  ;;  %2977 = vmatpush.msrb.mxu2 %v2943_v39 }
0x120f   :  { %v2805_v5 = vmul.f32 %v2800_v55, %v5857_v59 }
0x1210   :  { %2978 = vmatpush.msrb.mxu2 %v2942_v53 }
0x1211   :  { %v5878_v31 = vadd.f32 %v2805_v5, %v5668_v7 }
0x1213   :  { %4246 = vmatmul.msk.f32.gmra.mxu1 %vm173_vm1, %v5878_v31 }
0x1278   :  { %v2849_v52 = vpop.f32.mrf.mxu1 }
0x1279   :  { %v2850_v21 = vadd.f32 %v4355_v43, %v2849_v52 }
0x127b   :  { %v4247_v56 = vmul.f32 -1.442695, %v2850_v21 }
0x127d   :  { %4598 = vpow2.f32 %v4247_v56 }
0x1280   :  { %v2852_v7 = vpop.f32.mrf.mxu1 }
0x1281   :  { %v2853_v58 = vadd.f32 %v4355_v43, %v2852_v7 }
0x1283   :  { %v4599_v59 = vpop.eup %4598  ;;  %v4248_v61 = vmul.f32 -1.442695, %v2853_v58 }
0x1284   :  { %v2873_v33 = vadd.f32 1.0, %v4599_v59 }
0x1285   :  { %4600 = vpow2.f32 %v4248_v61 }
0x1286   :  { %4602 = vrcp.f32 %v2873_v33  ;;  %v2888_v18 = vand.u32 2147483648, %v2873_v33  ;;  %v2886_v54 = vand.u32 2147483647, %v2873_v33  ;;  %vm2882_vm11 = vweird.f32 %v2873_v33 }
0x1288   :  { %v2855_v6 = vpop.f32.mrf.mxu1  ;;  %v2889_v60 = vor.u32 1.1754944e-38, %v2888_v18  ;;  %vm2887_vm14 = vcmp.eq.f32.partialorder %v2886_v54, 8.507059e+37  ;;  %v3077_v18 = vld [vmem:[#allocation2 + $0x120] sm:$0xff] }
0x1289   :  { %v5885_v0 = vadd.f32 %v4355_v43, %v2855_v6 }
0x128b   :  { %v4601_v62 = vpop.eup %4600  ;;  %v4249_v15 = vmul.f32 -1.442695, %v5885_v0 }
0x128c   :  { %v4603_v32 = vpop.eup %4602  ;;  %v2874_v47 = vadd.f32 1.0, %v4601_v62 }
0x128d   :  { %v2878_v9 = vmul.f32 %v4603_v32, %v2873_v33  ;;  %4604 = vpow2.f32 %v4249_v15  ;;  %vm2883_vm6 = vweird.f32 %v4603_v32 }
0x128e   :  { %4606 = vrcp.f32 %v2874_v47  ;;  %vm2884_vm13 = vmor %vm2882_vm11, %vm2883_vm6  ;;  %v2903_v34 = vand.u32 2147483648, %v2874_v47  ;;  %v2901_v41 = vand.u32 2147483647, %v2874_v47  ;;  %vm2897_vm3 = vweird.f32 %v2874_v47 }
0x128f   :  { %v2879_v42 = vsub.f32 1.0, %v2878_v9  ;;  %v3078_v9 = vld [vmem:[#allocation2 + $0x128] sm:$0xff] }
0x1290   :  { %v2858_v12 = vpop.f32.mrf.mxu1  ;;  %v2904_v46 = vor.u32 1.1754944e-38, %v2903_v34  ;;  %vm2902_vm5 = vcmp.eq.f32.partialorder %v2901_v41, 8.507059e+37 }
0x1291   :  { %v2880_v57 = vmul.f32 %v4603_v32, %v2879_v42  ;;  %v5888_v36 = vadd.f32 %v4355_v43, %v2858_v12 }
0x1293   :  { %v4605_v63 = vpop.eup %4604  ;;  %v2881_v37 = vadd.f32 %v4603_v32, %v2880_v57  ;;  %v4250_v17 = vmul.f32 -1.442695, %v5888_v36 }
0x1294   :  { %v4607_v22 = vpop.eup %4606  ;;  %v2875_v23 = vadd.f32 1.0, %v4605_v63 }
0x1295   :  { %v2885_v3 = vsel %vm2884_vm13, %v4603_v32, %v2881_v37  ;;  %v2893_v25 = vmul.f32 %v4607_v22, %v2874_v47  ;;  %4608 = vpow2.f32 %v4250_v17  ;;  %vm2898_vm2 = vweird.f32 %v4607_v22  ;;  %v3079_v32 = vld [vmem:[#allocation2 + $0x130] sm:$0xff] }
0x1296   :  { %v2890_v27 = vsel %vm2887_vm14, %v2889_v60, %v2885_v3  ;;  %4610 = vrcp.f32 %v2875_v23  ;;  %vm2899_vm4 = vmor %vm2897_vm3, %vm2898_vm2  ;;  %v2918_v24 = vand.u32 2147483648, %v2875_v23  ;;  %v2916_v5 = vand.u32 2147483647, %v2875_v23  ;;  %3111 = vmatpush.msra.mxu3 %v3079_v32 }
0x1297   :  { %v2937_v30 = vmul.f32 %v2890_v27, %v2850_v21  ;;  %v2894_v8 = vsub.f32 1.0, %v2893_v25  ;;  %vm2912_vm9 = vweird.f32 %v2875_v23 }
0x1298   :  { %v2919_v43 = vor.u32 1.1754944e-38, %v2918_v24  ;;  %vm2917_vm10 = vcmp.eq.f32.partialorder %v2916_v5, 8.507059e+37  ;;  %3112 = vmatpush.msra.mxu3 %v3078_v9 }
0x1299   :  { %v2895_v38 = vmul.f32 %v4607_v22, %v2894_v8  ;;  %4252 = vmatmul.msk.f32.vlgmr.msrb.gmra.mxu2 %vm173_vm1, %v2937_v30 }
0x129a   :  { %3113 = vmatpush.msra.mxu3 %v3077_v18 }
0x129b   :  { %v4609_v44 = vpop.eup %4608  ;;  %v2896_v45 = vadd.f32 %v4607_v22, %v2895_v38 }
0x129c   :  { %v4611_v4 = vpop.eup %4610  ;;  %v2876_v11 = vadd.f32 1.0, %v4609_v44 }
0x129d   :  { %v2900_v10 = vsel %vm2899_vm4, %v4607_v22, %v2896_v45  ;;  %v2908_v48 = vmul.f32 %v4611_v4, %v2875_v23  ;;  %vm2913_vm8 = vweird.f32 %v4611_v4 }
0x129e   :  { %v2905_v50 = vsel %vm2902_vm5, %v2904_v46, %v2900_v10  ;;  %4612 = vrcp.f32 %v2876_v11  ;;  %vm2914_vm7 = vmor %vm2912_vm9, %vm2913_vm8  ;;  %v2933_v7 = vand.u32 2147483648, %v2876_v11  ;;  %v2931_v59 = vand.u32 2147483647, %v2876_v11  ;;  %v3215_v46 = vld [vmem:[#allocation2 + $0x158] sm:$0xff] }
0x129f   :  { %v2938_v49 = vmul.f32 %v2905_v50, %v2853_v58  ;;  %v2909_v35 = vsub.f32 1.0, %v2908_v48  ;;  %vm2927_vm15 = vweird.f32 %v2876_v11  ;;  %3245 = vmatpush.msrb.mxu0 %v3215_v46 }
0x12a0   :  { %v2934_v33 = vor.u32 1.1754944e-38, %v2933_v7  ;;  %vm2932_vm11 = vcmp.eq.f32.partialorder %v2931_v59, 8.507059e+37 }
0x12a1   :  { %v2910_v55 = vmul.f32 %v4611_v4, %v2909_v35  ;;  %4253 = vmatmul.msk.f32.gmra.mxu2 %vm173_vm1, %v2938_v49 }
0x12a3   :  { %v2911_v2 = vadd.f32 %v4611_v4, %v2910_v55 }
0x12a4   :  { %v4613_v51 = vpop.eup %4612 }
0x12a5   :  { %v2915_v39 = vsel %vm2914_vm7, %v4611_v4, %v2911_v2  ;;  %v2923_v52 = vmul.f32 %v4613_v51, %v2876_v11  ;;  %vm2928_vm12 = vweird.f32 %v4613_v51 }
0x12a6   :  { %v2920_v53 = vsel %vm2917_vm10, %v2919_v43, %v2915_v39  ;;  %vm2929_vm6 = vmor %vm2927_vm15, %vm2928_vm12 }
0x12a7   :  { %v2939_v21 = vmul.f32 %v2920_v53, %v5885_v0  ;;  %v2924_v56 = vsub.f32 1.0, %v2923_v52  ;;  %v4356_v0 = vld [vmem:[%s6162_s13 + $0x8] ss:$0 sm:$0xff] }
0x12a9   :  { %v2925_v58 = vmul.f32 %v4613_v51, %v2924_v56  ;;  %4254 = vmatmul.msk.f32.gmra.mxu2 %vm173_vm1, %v2939_v21 }
0x12ab   :  { %v2926_v61 = vadd.f32 %v4613_v51, %v2925_v58 }
0x12ad   :  { %v2930_v6 = vsel %vm2929_vm6, %v4613_v51, %v2926_v61 }
0x12ae   :  { %v2935_v62 = vsel %vm2932_vm11, %v2934_v33, %v2930_v6 }
0x12af   :  { %v2940_v15 = vmul.f32 %v2935_v62, %v5888_v36 }
0x12b1   :  { %4255 = vmatmul.msk.f32.gmra.mxu2 %vm173_vm1, %v2940_v15 }
0x131c   :  { %v2980_v47 = vpop.f32.mrf.mxu2 }
0x131d   :  { %v2981_v42 = vadd.f32 %v4356_v0, %v2980_v47 }
0x131f   :  { %v4256_v12 = vmul.f32 -1.442695, %v2981_v42 }
0x1321   :  { %4614 = vpow2.f32 %v4256_v12 }
0x1324   :  { %v2983_v57 = vpop.f32.mrf.mxu2 }
0x1325   :  { %v2984_v54 = vadd.f32 %v4356_v0, %v2983_v57 }
0x1327   :  { %v4615_v29 = vpop.eup %4614  ;;  %v4257_v36 = vmul.f32 -1.442695, %v2984_v54 }
0x1328   :  { %v3004_v63 = vadd.f32 1.0, %v4615_v29 }
0x1329   :  { %4616 = vpow2.f32 %v4257_v36 }
0x132a   :  { %4618 = vrcp.f32 %v3004_v63  ;;  %v3019_v30 = vand.u32 2147483648, %v3004_v63  ;;  %v3017_v38 = vand.u32 2147483647, %v3004_v63  ;;  %vm3013_vm14 = vweird.f32 %v3004_v63 }
0x132c   :  { %v2986_v37 = vpop.f32.mrf.mxu2  ;;  %v3020_v10 = vor.u32 1.1754944e-38, %v3019_v30  ;;  %vm3018_vm3 = vcmp.eq.f32.partialorder %v3017_v38, 8.507059e+37 }
0x132d   :  { %v5900_v17 = vadd.f32 %v4356_v0, %v2986_v37 }
0x132f   :  { %v4617_v22 = vpop.eup %4616  ;;  %v4258_v60 = vmul.f32 -1.442695, %v5900_v17 }
0x1330   :  { %v4619_v23 = vpop.eup %4618  ;;  %v3005_v3 = vadd.f32 1.0, %v4617_v22 }
0x1331   :  { %v3009_v25 = vmul.f32 %v4619_v23, %v3004_v63  ;;  %4620 = vpow2.f32 %v4258_v60  ;;  %vm3014_vm13 = vweird.f32 %v4619_v23 }
0x1332   :  { %4622 = vrcp.f32 %v3005_v3  ;;  %vm3015_vm2 = vmor %vm3013_vm14, %vm3014_vm13  ;;  %v3034_v5 = vand.u32 2147483648, %v3005_v3  ;;  %v3032_v43 = vand.u32 2147483647, %v3005_v3  ;;  %vm3028_vm5 = vweird.f32 %v3005_v3 }
0x1333   :  { %v3010_v27 = vsub.f32 1.0, %v3009_v25 }
0x1334   :  { %v2989_v8 = vpop.f32.mrf.mxu2  ;;  %v3035_v21 = vor.u32 1.1754944e-38, %v3034_v5  ;;  %vm3033_vm9 = vcmp.eq.f32.partialorder %v3032_v43, 8.507059e+37 }
0x1335   :  { %v3011_v34 = vmul.f32 %v4619_v23, %v3010_v27  ;;  %v5903_v41 = vadd.f32 %v4356_v0, %v2989_v8  ;;  %v3213_v27 = vld [vmem:[#allocation2 + $0x148] sm:$0xff]  ;;  %v3212_v8 = vld [vmem:[#allocation2 + $0x140] sm:$0xff] }
0x1337   :  { %v4621_v44 = vpop.eup %4620  ;;  %v3012_v45 = vadd.f32 %v4619_v23, %v3011_v34  ;;  %v4259_v4 = vmul.f32 -1.442695, %v5903_v41 }
0x1338   :  { %v4623_v11 = vpop.eup %4622  ;;  %v3006_v48 = vadd.f32 1.0, %v4621_v44 }
0x1339   :  { %v3016_v50 = vsel %vm3015_vm2, %v4619_v23, %v3012_v45  ;;  %v3024_v49 = vmul.f32 %v4623_v11, %v3005_v3  ;;  %4624 = vpow2.f32 %v4259_v4  ;;  %vm3029_vm4 = vweird.f32 %v4623_v11  ;;  %v3214_v3 = vld [vmem:[#allocation2 + $0x150] sm:$0xff] }
0x133a   :  { %v3021_v35 = vsel %vm3018_vm3, %v3020_v10, %v3016_v50  ;;  %4626 = vrcp.f32 %v3006_v48  ;;  %vm3030_vm8 = vmor %vm3028_vm5, %vm3029_vm4  ;;  %v3047_v15 = vand.u32 2147483647, %v3006_v48  ;;  %vm3043_vm10 = vweird.f32 %v3006_v48  ;;  %3246 = vmatpush.msrb.mxu0 %v3214_v3 }
0x133b   :  { %v3068_v24 = vmul.f32 %v3021_v35, %v2981_v42  ;;  %v3025_v55 = vsub.f32 1.0, %v3024_v49 }
0x133c   :  { %vm3048_vm15 = vcmp.eq.f32.partialorder %v3047_v15, 8.507059e+37  ;;  %3247 = vmatpush.msrb.mxu0 %v3213_v27 }
0x133d   :  { %v3072_v2 = vadd.f32 %v3068_v24, %v5861_v13  ;;  %v3026_v51 = vmul.f32 %v4623_v11, %v3025_v55  ;;  %v3049_v13 = vand.u32 2147483648, %v3006_v48 }
0x133e   :  { %3248 = vmatpush.msrb.mxu0 %v3212_v8 }
0x133f   :  { %v4625_v39 = vpop.eup %4624  ;;  %v3027_v52 = vadd.f32 %v4623_v11, %v3026_v51  ;;  %4261 = vmatmul.msk.f32.vlgmr.msra.gmra.mxu3 %vm173_vm1, %v3072_v2  ;;  %v3050_v47 = vor.u32 1.1754944e-38, %v3049_v13 }
0x1340   :  { %v4627_v53 = vpop.eup %4626  ;;  %v3007_v56 = vadd.f32 1.0, %v4625_v39 }
0x1341   :  { %v3031_v7 = vsel %vm3030_vm8, %v4623_v11, %v3027_v52  ;;  %v3039_v58 = vmul.f32 %v4627_v53, %v3006_v48  ;;  %vm3044_vm7 = vweird.f32 %v4627_v53 }
0x1342   :  { %v3036_v59 = vsel %vm3033_vm9, %v3035_v21, %v3031_v7  ;;  %4628 = vrcp.f32 %v3007_v56  ;;  %vm3045_vm12 = vmor %vm3043_vm10, %vm3044_vm7  ;;  %v3062_v36 = vand.u32 2147483647, %v3007_v56  ;;  %vm3058_vm11 = vweird.f32 %v3007_v56 }
0x1343   :  { %v3069_v61 = vmul.f32 %v3036_v59, %v2984_v54  ;;  %v3040_v33 = vsub.f32 1.0, %v3039_v58  ;;  %v3064_v54 = vand.u32 2147483648, %v3007_v56 }
0x1344   :  { %vm3063_vm14 = vcmp.eq.f32.partialorder %v3062_v36, 8.507059e+37 }
0x1345   :  { %v3073_v6 = vadd.f32 %v3069_v61, %v5866_v28  ;;  %v3041_v62 = vmul.f32 %v4627_v53, %v3040_v33  ;;  %v3065_v37 = vor.u32 1.1754944e-38, %v3064_v54 }
0x1347   :  { %v3042_v0 = vadd.f32 %v4627_v53, %v3041_v62  ;;  %4262 = vmatmul.msk.f32.gmra.mxu3 %vm173_vm1, %v3073_v6 }
0x1348   :  { %v4629_v32 = vpop.eup %4628 }
0x1349   :  { %v3046_v9 = vsel %vm3045_vm12, %v4627_v53, %v3042_v0  ;;  %v3054_v42 = vmul.f32 %v4629_v32, %v3007_v56  ;;  %vm3059_vm6 = vweird.f32 %v4629_v32 }
0x134a   :  { %v3051_v18 = vsel %vm3048_vm15, %v3050_v47, %v3046_v9  ;;  %vm3060_vm13 = vmor %vm3058_vm11, %vm3059_vm6 }
0x134b   :  { %v3070_v12 = vmul.f32 %v3051_v18, %v5900_v17  ;;  %v3055_v57 = vsub.f32 1.0, %v3054_v42 }
0x134d   :  { %v3074_v28 = vadd.f32 %v3070_v12, %v5872_v40  ;;  %v3056_v29 = vmul.f32 %v4629_v32, %v3055_v57  ;;  %v4357_v40 = vld [vmem:[%s6162_s13 + $0x9] ss:$0 sm:$0xff] }
0x134f   :  { %v3057_v63 = vadd.f32 %v4629_v32, %v3056_v29  ;;  %4263 = vmatmul.msk.f32.gmra.mxu3 %vm173_vm1, %v3074_v28 }
0x1351   :  { %v3061_v22 = vsel %vm3060_vm13, %v4629_v32, %v3057_v63 }
0x1352   :  { %v3066_v60 = vsel %vm3063_vm14, %v3065_v37, %v3061_v22 }
0x1353   :  { %v3071_v23 = vmul.f32 %v3066_v60, %v5903_v41 }
0x1355   :  { %v3075_v17 = vadd.f32 %v3071_v23, %v5878_v31 }
0x1357   :  { %4264 = vmatmul.msk.f32.gmra.mxu3 %vm173_vm1, %v3075_v17 }
0x13c2   :  { %v3115_v25 = vpop.f32.mrf.mxu3 }
0x13c3   :  { %v3116_v30 = vadd.f32 %v4357_v40, %v3115_v25 }
0x13c5   :  { %v4265_v34 = vmul.f32 -1.442695, %v3116_v30 }
0x13c7   :  { %4630 = vpow2.f32 %v4265_v34 }
0x13ca   :  { %v3118_v38 = vpop.f32.mrf.mxu3 }
0x13cb   :  { %v3119_v41 = vadd.f32 %v4357_v40, %v3118_v38 }
0x13cd   :  { %v4631_v44 = vpop.eup %4630  ;;  %v4266_v31 = vmul.f32 -1.442695, %v3119_v41 }
0x13ce   :  { %v3139_v45 = vadd.f32 1.0, %v4631_v44 }
0x13cf   :  { %4632 = vpow2.f32 %v4266_v31 }
0x13d0   :  { %4634 = vrcp.f32 %v3139_v45  ;;  %v3154_v24 = vand.u32 2147483648, %v3139_v45  ;;  %v3152_v2 = vand.u32 2147483647, %v3139_v45  ;;  %vm3148_vm3 = vweird.f32 %v3139_v45 }
0x13d2   :  { %v3121_v4 = vpop.f32.mrf.mxu3  ;;  %v3155_v21 = vor.u32 1.1754944e-38, %v3154_v24  ;;  %vm3153_vm5 = vcmp.eq.f32.partialorder %v3152_v2, 8.507059e+37 }
0x13d3   :  { %v5919_v46 = vadd.f32 %v4357_v40, %v3121_v4  ;;  %v3345_v4 = vld [vmem:[#allocation2 + $0x170] sm:$0xff] }
0x13d5   :  { %v4633_v11 = vpop.eup %4632  ;;  %v4267_v10 = vmul.f32 -1.442695, %v5919_v46 }
0x13d6   :  { %v4635_v48 = vpop.eup %4634  ;;  %v3140_v50 = vadd.f32 1.0, %v4633_v11  ;;  %v3344_v11 = vld [vmem:[#allocation2 + $0x168] sm:$0xff] }
0x13d7   :  { %v3144_v49 = vmul.f32 %v4635_v48, %v3139_v45  ;;  %4636 = vpow2.f32 %v4267_v10  ;;  %vm3149_vm2 = vweird.f32 %v4635_v48 }
0x13d8   :  { %4638 = vrcp.f32 %v3140_v50  ;;  %vm3150_vm4 = vmor %vm3148_vm3, %vm3149_vm2  ;;  %v3169_v13 = vand.u32 2147483648, %v3140_v50  ;;  %v3167_v15 = vand.u32 2147483647, %v3140_v50  ;;  %vm3163_vm9 = vweird.f32 %v3140_v50 }
0x13d9   :  { %v3145_v35 = vsub.f32 1.0, %v3144_v49 }
0x13da   :  { %v3124_v55 = vpop.f32.mrf.mxu3  ;;  %v3170_v9 = vor.u32 1.1754944e-38, %v3169_v13  ;;  %vm3168_vm10 = vcmp.eq.f32.partialorder %v3167_v15, 8.507059e+37 }
0x13db   :  { %v3146_v5 = vmul.f32 %v4635_v48, %v3145_v35  ;;  %v5922_v51 = vadd.f32 %v4357_v40, %v3124_v55 }
0x13dd   :  { %v4637_v43 = vpop.eup %4636  ;;  %v3147_v39 = vadd.f32 %v4635_v48, %v3146_v5  ;;  %v4268_v52 = vmul.f32 -1.442695, %v5922_v51 }
0x13de   :  { %v4639_v53 = vpop.eup %4638  ;;  %v3141_v56 = vadd.f32 1.0, %v4637_v43 }
0x13df   :  { %v3151_v7 = vsel %vm3150_vm4, %v4635_v48, %v3147_v39  ;;  %v3159_v58 = vmul.f32 %v4639_v53, %v3140_v50  ;;  %4640 = vpow2.f32 %v4268_v52  ;;  %vm3164_vm8 = vweird.f32 %v4639_v53  ;;  %v3343_v48 = vld [vmem:[#allocation2 + $0x160] sm:$0xff] }
0x13e0   :  { %v3156_v59 = vsel %vm3153_vm5, %v3155_v21, %v3151_v7  ;;  %4642 = vrcp.f32 %v3141_v56  ;;  %vm3165_vm7 = vmor %vm3163_vm9, %vm3164_vm8  ;;  %v3184_v28 = vand.u32 2147483648, %v3141_v56  ;;  %v3182_v63 = vand.u32 2147483647, %v3141_v56 }
0x13e1   :  { %v3203_v61 = vmul.f32 %v3156_v59, %v3116_v30  ;;  %v3160_v33 = vsub.f32 1.0, %v3159_v58  ;;  %vm3178_vm15 = vweird.f32 %v3141_v56 }
0x13e2   :  { %v3185_v60 = vor.u32 1.1754944e-38, %v3184_v28  ;;  %vm3183_vm11 = vcmp.eq.f32.partialorder %v3182_v63, 8.507059e+37 }
0x13e3   :  { %v5926_v6 = vadd.f32 %v3203_v61, %v5542_v20  ;;  %v3161_v62 = vmul.f32 %v4639_v53, %v3160_v33 }
0x13e5   :  { %v4641_v0 = vpop.eup %4640  ;;  %v3162_v32 = vadd.f32 %v4639_v53, %v3161_v62  ;;  %4270 = vmatmul.msk.f32.vlgmr.msrb.gmra.mxu0 %vm173_vm1, %v5926_v6 }
0x13e6   :  { %v4643_v47 = vpop.eup %4642  ;;  %v3142_v42 = vadd.f32 1.0, %v4641_v0 }
0x13e7   :  { %v3166_v18 = vsel %vm3165_vm7, %v4639_v53, %v3162_v32  ;;  %v3174_v12 = vmul.f32 %v4643_v47, %v3141_v56  ;;  %vm3179_vm12 = vweird.f32 %v4643_v47 }
0x13e8   :  { %v3171_v57 = vsel %vm3168_vm10, %v3170_v9, %v3166_v18  ;;  %4644 = vrcp.f32 %v3142_v42  ;;  %vm3180_vm6 = vmor %vm3178_vm15, %vm3179_vm12  ;;  %v3197_v8 = vand.u32 2147483647, %v3142_v42  ;;  %vm3193_vm14 = vweird.f32 %v3142_v42 }
0x13e9   :  { %v3204_v20 = vmul.f32 %v3171_v57, %v3119_v41  ;;  %v3175_v54 = vsub.f32 1.0, %v3174_v12 }
0x13ea   :  { %vm3198_vm3 = vcmp.eq.f32.partialorder %v3197_v8, 8.507059e+37 }
0x13eb   :  { %v5931_v29 = vadd.f32 %v3204_v20, %v5538_v19  ;;  %v3176_v36 = vmul.f32 %v4643_v47, %v3175_v54  ;;  %v3199_v19 = vand.u32 2147483648, %v3142_v42 }
0x13ed   :  { %v3177_v37 = vadd.f32 %v4643_v47, %v3176_v36  ;;  %4271 = vmatmul.msk.f32.gmra.mxu0 %vm173_vm1, %v5931_v29  ;;  %v3200_v38 = vor.u32 1.1754944e-38, %v3199_v19 }
0x13ee   :  { %v4645_v22 = vpop.eup %4644 }
0x13ef   :  { %v3181_v23 = vsel %vm3180_vm6, %v4643_v47, %v3177_v37  ;;  %v3189_v17 = vmul.f32 %v4645_v22, %v3142_v42  ;;  %vm3194_vm13 = vweird.f32 %v4645_v22 }
0x13f0   :  { %v3186_v40 = vsel %vm3183_vm11, %v3185_v60, %v3181_v23  ;;  %vm3195_vm2 = vmor %vm3193_vm14, %vm3194_vm13 }
0x13f1   :  { %v3205_v3 = vmul.f32 %v3186_v40, %v5919_v46  ;;  %v3190_v25 = vsub.f32 1.0, %v3189_v17  ;;  %v4358_v46 = vld [vmem:[%s6162_s13 + $0xa] ss:$0 sm:$0xff] }
0x13f3   :  { %v5937_v27 = vadd.f32 %v3205_v3, %v5532_v14  ;;  %v3191_v30 = vmul.f32 %v4645_v22, %v3190_v25  ;;  %v3346_v14 = vld [vmem:[#allocation2 + $0x178] sm:$0xff] }
0x13f4   :  { %3376 = vmatpush.msrb.mxu1 %v3346_v14 }
0x13f5   :  { %v3192_v34 = vadd.f32 %v4645_v22, %v3191_v30  ;;  %4272 = vmatmul.msk.f32.gmra.mxu0 %vm173_vm1, %v5937_v27 }
0x13f6   :  { %3377 = vmatpush.msrb.mxu1 %v3345_v4 }
0x13f7   :  { %v3196_v41 = vsel %vm3195_vm2, %v4645_v22, %v3192_v34 }
0x13f8   :  { %v3201_v44 = vsel %vm3198_vm3, %v3200_v38, %v3196_v41  ;;  %3378 = vmatpush.msrb.mxu1 %v3344_v11 }
0x13f9   :  { %v3206_v31 = vmul.f32 %v3201_v44, %v5922_v51 }
0x13fa   :  { %3379 = vmatpush.msrb.mxu1 %v3343_v48 }
0x13fb   :  { %v5943_v45 = vadd.f32 %v3206_v31, %v5535_v16 }
0x13fd   :  { %4273 = vmatmul.msk.f32.gmra.mxu0 %vm173_vm1, %v5943_v45 }
0x1462   :  { %v3250_v10 = vpop.f32.mrf.mxu0 }
0x1463   :  { %v3251_v50 = vadd.f32 %v4358_v46, %v3250_v10 }
0x1465   :  { %v4274_v49 = vmul.f32 -1.442695, %v3251_v50 }
0x1467   :  { %4646 = vpow2.f32 %v4274_v49 }
0x146a   :  { %v3253_v16 = vpop.f32.mrf.mxu0 }
0x146b   :  { %v3254_v35 = vadd.f32 %v4358_v46, %v3253_v16 }
0x146d   :  { %v4647_v24 = vpop.eup %4646  ;;  %v4275_v55 = vmul.f32 -1.442695, %v3254_v35 }
0x146e   :  { %v3274_v5 = vadd.f32 1.0, %v4647_v24 }
0x146f   :  { %4648 = vpow2.f32 %v4275_v55  ;;  %v3481_v55 = vld [vmem:[#allocation2 + $0x198] sm:$0xff] }
0x1470   :  { %4650 = vrcp.f32 %v3274_v5  ;;  %v3289_v7 = vand.u32 2147483648, %v3274_v5  ;;  %v3287_v61 = vand.u32 2147483647, %v3274_v5  ;;  %vm3283_vm5 = vweird.f32 %v3274_v5  ;;  %3511 = vmatpush.msra.mxu2 %v3481_v55 }
0x1472   :  { %v3256_v2 = vpop.f32.mrf.mxu0  ;;  %v3290_v32 = vor.u32 1.1754944e-38, %v3289_v7  ;;  %vm3288_vm9 = vcmp.eq.f32.partialorder %v3287_v61, 8.507059e+37 }
0x1473   :  { %v5950_v51 = vadd.f32 %v4358_v46, %v3256_v2  ;;  %v3480_v2 = vld [vmem:[#allocation2 + $0x190] sm:$0xff] }
0x1474   :  { %3512 = vmatpush.msra.mxu2 %v3480_v2 }
0x1475   :  { %v4649_v43 = vpop.eup %4648  ;;  %v4276_v39 = vmul.f32 -1.442695, %v5950_v51 }
0x1476   :  { %v4651_v52 = vpop.eup %4650  ;;  %v3275_v53 = vadd.f32 1.0, %v4649_v43  ;;  %v3479_v43 = vld [vmem:[#allocation2 + $0x188] sm:$0xff] }
0x1477   :  { %v3279_v21 = vmul.f32 %v4651_v52, %v3274_v5  ;;  %4652 = vpow2.f32 %v4276_v39  ;;  %vm3284_vm4 = vweird.f32 %v4651_v52  ;;  %v4359_v5 = vld [vmem:[%s6162_s13 + $0xb] ss:$0 sm:$0xff]  ;;  %3513 = vmatpush.msra.mxu2 %v3479_v43 }
0x1478   :  { %4654 = vrcp.f32 %v3275_v53  ;;  %vm3285_vm8 = vmor %vm3283_vm5, %vm3284_vm4  ;;  %v3304_v20 = vand.u32 2147483648, %v3275_v53  ;;  %v3302_v28 = vand.u32 2147483647, %v3275_v53  ;;  %vm3298_vm10 = vweird.f32 %v3275_v53 }
0x1479   :  { %v3280_v56 = vsub.f32 1.0, %v3279_v21 }
0x147a   :  { %v3259_v58 = vpop.f32.mrf.mxu0  ;;  %v3305_v22 = vor.u32 1.1754944e-38, %v3304_v20  ;;  %vm3303_vm15 = vcmp.eq.f32.partialorder %v3302_v28, 8.507059e+37 }
0x147b   :  { %v3281_v59 = vmul.f32 %v4651_v52, %v3280_v56  ;;  %v5953_v33 = vadd.f32 %v4358_v46, %v3259_v58 }
0x147d   :  { %v4653_v13 = vpop.eup %4652  ;;  %v3282_v62 = vadd.f32 %v4651_v52, %v3281_v59  ;;  %v4277_v15 = vmul.f32 -1.442695, %v5953_v33 }
0x147e   :  { %v4655_v0 = vpop.eup %4654  ;;  %v3276_v47 = vadd.f32 1.0, %v4653_v13 }
0x147f   :  { %v3286_v9 = vsel %vm3285_vm8, %v4651_v52, %v3282_v62  ;;  %v3294_v42 = vmul.f32 %v4655_v0, %v3275_v53  ;;  %4656 = vpow2.f32 %v4277_v15  ;;  %vm3299_vm7 = vweird.f32 %v4655_v0  ;;  %v3478_v52 = vld [vmem:[#allocation2 + $0x180] sm:$0xff] }
0x1480   :  { %v3291_v18 = vsel %vm3288_vm9, %v3290_v32, %v3286_v9  ;;  %4658 = vrcp.f32 %v3276_v47  ;;  %vm3300_vm12 = vmor %vm3298_vm10, %vm3299_vm7  ;;  %v3319_v19 = vand.u32 2147483648, %v3276_v47  ;;  %v3317_v8 = vand.u32 2147483647, %v3276_v47  ;;  %3514 = vmatpush.msra.mxu2 %v3478_v52 }
0x1481   :  { %v3338_v12 = vmul.f32 %v3291_v18, %v3251_v50  ;;  %v3295_v57 = vsub.f32 1.0, %v3294_v42  ;;  %vm3313_vm11 = vweird.f32 %v3276_v47 }
0x1482   :  { %v3320_v41 = vor.u32 1.1754944e-38, %v3319_v19  ;;  %vm3318_vm14 = vcmp.eq.f32.partialorder %v3317_v8, 8.507059e+37 }
0x1483   :  { %v3296_v54 = vmul.f32 %v4655_v0, %v3295_v57  ;;  %4279 = vmatmul.msk.f32.vlgmr.msrb.gmra.mxu1 %vm173_vm1, %v3338_v12 }
0x1485   :  { %v4657_v36 = vpop.eup %4656  ;;  %v3297_v63 = vadd.f32 %v4655_v0, %v3296_v54 }
0x1486   :  { %v4659_v37 = vpop.eup %4658  ;;  %v3277_v60 = vadd.f32 1.0, %v4657_v36 }
0x1487   :  { %v3301_v23 = vsel %vm3300_vm12, %v4655_v0, %v3297_v63  ;;  %v3309_v17 = vmul.f32 %v4659_v37, %v3276_v47  ;;  %vm3314_vm6 = vweird.f32 %v4659_v37 }
0x1488   :  { %v3306_v40 = vsel %vm3303_vm15, %v3305_v22, %v3301_v23  ;;  %4660 = vrcp.f32 %v3277_v60  ;;  %vm3315_vm13 = vmor %vm3313_vm11, %vm3314_vm6  ;;  %v3334_v11 = vand.u32 2147483648, %v3277_v60  ;;  %v3332_v48 = vand.u32 2147483647, %v3277_v60 }
0x1489   :  { %v3339_v3 = vmul.f32 %v3306_v40, %v3254_v35  ;;  %v3310_v25 = vsub.f32 1.0, %v3309_v17  ;;  %vm3328_vm3 = vweird.f32 %v3277_v60 }
0x148a   :  { %v3335_v49 = vor.u32 1.1754944e-38, %v3334_v11  ;;  %vm3333_vm5 = vcmp.eq.f32.partialorder %v3332_v48, 8.507059e+37 }
0x148b   :  { %v3311_v30 = vmul.f32 %v4659_v37, %v3310_v25  ;;  %4280 = vmatmul.msk.f32.gmra.mxu1 %vm173_vm1, %v3339_v3 }
0x148d   :  { %v3312_v34 = vadd.f32 %v4659_v37, %v3311_v30 }
0x148e   :  { %v4661_v38 = vpop.eup %4660 }
0x148f   :  { %v3316_v44 = vsel %vm3315_vm13, %v4659_v37, %v3312_v34  ;;  %v3324_v31 = vmul.f32 %v4661_v38, %v3277_v60  ;;  %vm3329_vm2 = vweird.f32 %v4661_v38 }
0x1490   :  { %v3321_v14 = vsel %vm3318_vm14, %v3320_v41, %v3316_v44  ;;  %vm3330_vm4 = vmor %vm3328_vm3, %vm3329_vm2 }
0x1491   :  { %v3340_v4 = vmul.f32 %v3321_v14, %v5950_v51  ;;  %v3325_v46 = vsub.f32 1.0, %v3324_v31 }
0x1493   :  { %v3326_v10 = vmul.f32 %v4661_v38, %v3325_v46  ;;  %4281 = vmatmul.msk.f32.gmra.mxu1 %vm173_vm1, %v3340_v4 }
0x1495   :  { %v3327_v50 = vadd.f32 %v4661_v38, %v3326_v10 }
0x1497   :  { %v3331_v16 = vsel %vm3330_vm4, %v4661_v38, %v3327_v50 }
0x1498   :  { %v3336_v35 = vsel %vm3333_vm5, %v3335_v49, %v3331_v16 }
0x1499   :  { %v3341_v24 = vmul.f32 %v3336_v35, %v5953_v33 }
0x149b   :  { %4282 = vmatmul.msk.f32.gmra.mxu1 %vm173_vm1, %v3341_v24 }
0x1500   :  { %v3381_v51 = vpop.f32.mrf.mxu1 }
0x1501   :  { %v3382_v39 = vadd.f32 %v4359_v5, %v3381_v51 }
0x1503   :  { %v4283_v53 = vmul.f32 -1.442695, %v3382_v39 }
0x1505   :  { %4662 = vpow2.f32 %v4283_v53 }
0x1508   :  { %v3384_v21 = vpop.f32.mrf.mxu1 }
0x1509   :  { %v3385_v56 = vadd.f32 %v4359_v5, %v3384_v21 }
0x150b   :  { %v4663_v7 = vpop.eup %4662  ;;  %v4284_v58 = vmul.f32 -1.442695, %v3385_v56 }
0x150c   :  { %v3405_v59 = vadd.f32 1.0, %v4663_v7 }
0x150d   :  { %4664 = vpow2.f32 %v4284_v58 }
0x150e   :  { %4666 = vrcp.f32 %v3405_v59  ;;  %v3420_v9 = vand.u32 2147483648, %v3405_v59  ;;  %v3418_v12 = vand.u32 2147483647, %v3405_v59  ;;  %vm3414_vm9 = vweird.f32 %v3405_v59 }
0x1510   :  { %v3387_v61 = vpop.f32.mrf.mxu1  ;;  %v3421_v63 = vor.u32 1.1754944e-38, %v3420_v9  ;;  %vm3419_vm10 = vcmp.eq.f32.partialorder %v3418_v12, 8.507059e+37 }
0x1511   :  { %v5965_v33 = vadd.f32 %v4359_v5, %v3387_v61  ;;  %v3611_v61 = vld [vmem:[#allocation2 + $0x1b0] sm:$0xff] }
0x1513   :  { %v4665_v13 = vpop.eup %4664  ;;  %v4285_v62 = vmul.f32 -1.442695, %v5965_v33 }
0x1514   :  { %v4667_v15 = vpop.eup %4666  ;;  %v3406_v0 = vadd.f32 1.0, %v4665_v13  ;;  %v3610_v13 = vld [vmem:[#allocation2 + $0x1a8] sm:$0xff] }
0x1515   :  { %v3410_v32 = vmul.f32 %v4667_v15, %v3405_v59  ;;  %4668 = vpow2.f32 %v4285_v62  ;;  %vm3415_vm8 = vweird.f32 %v4667_v15 }
0x1516   :  { %4670 = vrcp.f32 %v3406_v0  ;;  %vm3416_vm7 = vmor %vm3414_vm9, %vm3415_vm8  ;;  %v3435_v3 = vand.u32 2147483648, %v3406_v0  ;;  %v3433_v30 = vand.u32 2147483647, %v3406_v0  ;;  %vm3429_vm15 = vweird.f32 %v3406_v0 }
0x1517   :  { %v3411_v47 = vsub.f32 1.0, %v3410_v32 }
0x1518   :  { %v3390_v42 = vpop.f32.mrf.mxu1  ;;  %v3436_v41 = vor.u32 1.1754944e-38, %v3435_v3  ;;  %vm3434_vm11 = vcmp.eq.f32.partialorder %v3433_v30, 8.507059e+37  ;;  %v4305_v3 = vld [vmem:[%s6163_s14 + $0x10] sm:$0xff] }
0x1519   :  { %v3412_v18 = vmul.f32 %v4667_v15, %v3411_v47  ;;  %v5968_v57 = vadd.f32 %v4359_v5, %v3390_v42  ;;  %3760 = vmatpush.msra.mxu0 %v4305_v3 }
0x151b   :  { %v4669_v20 = vpop.eup %4668  ;;  %v3413_v54 = vadd.f32 %v4667_v15, %v3412_v18  ;;  %v4286_v28 = vmul.f32 -1.442695, %v5968_v57 }
0x151c   :  { %v4671_v36 = vpop.eup %4670  ;;  %v3407_v37 = vadd.f32 1.0, %v4669_v20 }
0x151d   :  { %v3417_v22 = vsel %vm3416_vm7, %v4667_v15, %v3413_v54  ;;  %v3425_v60 = vmul.f32 %v4671_v36, %v3406_v0  ;;  %4672 = vpow2.f32 %v4286_v28  ;;  %vm3430_vm12 = vweird.f32 %v4671_v36  ;;  %v3609_v15 = vld [vmem:[#allocation2 + $0x1a0] sm:$0xff] }
0x151e   :  { %v3422_v23 = vsel %vm3419_vm10, %v3421_v63, %v3417_v22  ;;  %4674 = vrcp.f32 %v3407_v37  ;;  %vm3431_vm6 = vmor %vm3429_vm15, %vm3430_vm12  ;;  %v3450_v11 = vand.u32 2147483648, %v3407_v37  ;;  %v3448_v50 = vand.u32 2147483647, %v3407_v37 }
0x151f   :  { %v3469_v17 = vmul.f32 %v3422_v23, %v3382_v39  ;;  %v3426_v40 = vsub.f32 1.0, %v3425_v60  ;;  %vm3444_vm14 = vweird.f32 %v3407_v37 }
0x1520   :  { %v3451_v35 = vor.u32 1.1754944e-38, %v3450_v11  ;;  %vm3449_vm3 = vcmp.eq.f32.partialorder %v3448_v50, 8.507059e+37 }
0x1521   :  { %v5972_v25 = vadd.f32 %v3469_v17, %v5926_v6  ;;  %v3427_v19 = vmul.f32 %v4671_v36, %v3426_v40 }
0x1523   :  { %v4673_v8 = vpop.eup %4672  ;;  %v3428_v34 = vadd.f32 %v4671_v36, %v3427_v19  ;;  %4288 = vmatmul.msk.f32.vlgmr.msra.gmra.mxu2 %vm173_vm1, %v5972_v25 }
0x1524   :  { %v4675_v38 = vpop.eup %4674  ;;  %v3408_v44 = vadd.f32 1.0, %v4673_v8 }
0x1525   :  { %v3432_v31 = vsel %vm3431_vm6, %v4671_v36, %v3428_v34  ;;  %v3440_v14 = vmul.f32 %v4675_v38, %v3407_v37  ;;  %vm3445_vm13 = vweird.f32 %v4675_v38  ;;  %v4751_v34 = vld [vmem:[%s6180_s17] sm:$0xff] }
0x1526   :  { %v3437_v4 = vsel %vm3434_vm11, %v3436_v41, %v3432_v31  ;;  %4676 = vrcp.f32 %v3408_v44  ;;  %vm3446_vm2 = vmor %vm3444_vm14, %vm3445_vm13  ;;  %v3463_v52 = vand.u32 2147483647, %v3408_v44  ;;  %vm3459_vm5 = vweird.f32 %v3408_v44  ;;  %4306 = vmatmul.msk.f32.vlgmr.msra.gmra.mxu0 %vm127_vm0, %v4751_v34 }
0x1527   :  { %v3470_v6 = vmul.f32 %v3437_v4, %v3385_v56  ;;  %v3441_v46 = vsub.f32 1.0, %v3440_v14 }
0x1528   :  { %vm3464_vm9 = vcmp.eq.f32.partialorder %v3463_v52, 8.507059e+37 }
0x1529   :  { %v5977_v10 = vadd.f32 %v3470_v6, %v5931_v29  ;;  %v3442_v48 = vmul.f32 %v4675_v38, %v3441_v46  ;;  %v3465_v29 = vand.u32 2147483648, %v3408_v44 }
0x152b   :  { %v3443_v49 = vadd.f32 %v4675_v38, %v3442_v48  ;;  %4289 = vmatmul.msk.f32.gmra.mxu2 %vm173_vm1, %v5977_v10  ;;  %v3466_v21 = vor.u32 1.1754944e-38, %v3465_v29 }
0x152c   :  { %v4677_v16 = vpop.eup %4676 }
0x152d   :  { %v3447_v24 = vsel %vm3446_vm2, %v4675_v38, %v3443_v49  ;;  %v3455_v55 = vmul.f32 %v4677_v16, %v3408_v44  ;;  %vm3460_vm4 = vweird.f32 %v4677_v16 }
0x152e   :  { %v3452_v5 = vsel %vm3449_vm3, %v3451_v35, %v3447_v24  ;;  %vm3461_vm8 = vmor %vm3459_vm5, %vm3460_vm4  ;;  %v4752_v35 = vld [vmem:[%s6180_s17 + $0x8] sm:$0xff] }
0x152f   :  { %v3471_v2 = vmul.f32 %v3452_v5, %v5965_v33  ;;  %v3456_v51 = vsub.f32 1.0, %v3455_v55  ;;  %v4360_v33 = vld [vmem:[%s6162_s13 + $0xc] ss:$0 sm:$0xff]  ;;  %4307 = vmatmul.msk.f32.gmra.mxu0 %vm127_vm0, %v4752_v35  ;;  %v4314_v35 = vld [vmem:[%s6164_s15 + $0x58] sm:$0xff] }
0x1530   :  { %3823 = vmatpush.msrb.mxu2 %v4314_v35 }
0x1531   :  { %v5983_v43 = vadd.f32 %v3471_v2, %v5937_v27  ;;  %v3457_v39 = vmul.f32 %v4677_v16, %v3456_v51  ;;  %v3612_v27 = vld [vmem:[#allocation2 + $0x1b8] sm:$0xff] }
0x1532   :  { %3642 = vmatpush.msrb.mxu3 %v3612_v27 }
0x1533   :  { %v3458_v53 = vadd.f32 %v4677_v16, %v3457_v39  ;;  %4290 = vmatmul.msk.f32.gmra.mxu2 %vm173_vm1, %v5983_v43 }
0x1534   :  { %3643 = vmatpush.msrb.mxu3 %v3611_v61 }
0x1535   :  { %v3462_v56 = vsel %vm3461_vm8, %v4677_v16, %v3458_v53 }
0x1536   :  { %v3467_v7 = vsel %vm3464_vm9, %v3466_v21, %v3462_v56  ;;  %3644 = vmatpush.msrb.mxu3 %v3610_v13 }
0x1537   :  { %v3472_v58 = vmul.f32 %v3467_v7, %v5968_v57 }
0x1538   :  { %3645 = vmatpush.msrb.mxu3 %v3609_v15 }
0x1539   :  { %v5989_v59 = vadd.f32 %v3472_v58, %v5943_v45  ;;  %v4753_v58 = vld [vmem:[%s6180_s17 + $0x10] sm:$0xff] }
0x153a   :  { %4308 = vmatmul.msk.f32.gmra.mxu0 %vm127_vm0, %v4753_v58 }
0x153b   :  { %4291 = vmatmul.msk.f32.gmra.mxu2 %vm173_vm1, %v5989_v59 }
0x15a6   :  { %v3516_v62 = vpop.f32.mrf.mxu2 }
0x15a7   :  { %v3517_v0 = vadd.f32 %v4360_v33, %v3516_v62 }
0x15a9   :  { %v4292_v32 = vmul.f32 -1.442695, %v3517_v0 }
0x15ab   :  { %4678 = vpow2.f32 %v4292_v32 }
0x15ae   :  { %v3519_v45 = vpop.f32.mrf.mxu2 }
0x15af   :  { %v3520_v47 = vadd.f32 %v4360_v33, %v3519_v45 }
0x15b1   :  { %v4679_v9 = vpop.eup %4678  ;;  %v4293_v42 = vmul.f32 -1.442695, %v3520_v47 }
0x15b2   :  { %v3540_v18 = vadd.f32 1.0, %v4679_v9 }
0x15b3   :  { %4680 = vpow2.f32 %v4293_v42  ;;  %v4754_v42 = vld [vmem:[%s6180_s17 + $0x18] sm:$0xff] }
0x15b4   :  { %4682 = vrcp.f32 %v3540_v18  ;;  %v3555_v22 = vand.u32 2147483648, %v3540_v18  ;;  %v3553_v17 = vand.u32 2147483647, %v3540_v18  ;;  %vm3549_vm10 = vweird.f32 %v3540_v18  ;;  %4309 = vmatmul.msk.f32.gmra.mxu0 %vm127_vm0, %v4754_v42  ;;  %v3940_v42 = vld [vmem:[#allocation4 + $0x110] sm:$0xff] }
0x15b6   :  { %v3522_v12 = vpop.f32.mrf.mxu2  ;;  %v3556_v41 = vor.u32 1.1754944e-38, %v3555_v22  ;;  %vm3554_vm15 = vcmp.eq.f32.partialorder %v3553_v17, 8.507059e+37 }
0x15b7   :  { %v5996_v57 = vadd.f32 %v4360_v33, %v3522_v12 }
0x15b9   :  { %v4681_v20 = vpop.eup %4680  ;;  %v4294_v54 = vmul.f32 -1.442695, %v5996_v57 }
0x15ba   :  { %v4683_v28 = vpop.eup %4682  ;;  %v3541_v36 = vadd.f32 1.0, %v4681_v20 }
0x15bb   :  { %v3545_v63 = vmul.f32 %v4683_v28, %v3540_v18  ;;  %4684 = vpow2.f32 %v4294_v54  ;;  %vm3550_vm7 = vweird.f32 %v4683_v28  ;;  %v4361_v54 = vld [vmem:[%s6162_s13 + $0xd] ss:$0 sm:$0xff] }
0x15bc   :  { %4686 = vrcp.f32 %v3541_v36  ;;  %vm3551_vm12 = vmor %vm3549_vm10, %vm3550_vm7  ;;  %v3570_v11 = vand.u32 2147483648, %v3541_v36  ;;  %v3568_v50 = vand.u32 2147483647, %v3541_v36  ;;  %vm3564_vm11 = vweird.f32 %v3541_v36 }
0x15bd   :  { %v3546_v37 = vsub.f32 1.0, %v3545_v63 }
0x15be   :  { %v3525_v60 = vpop.f32.mrf.mxu2  ;;  %v3571_v55 = vor.u32 1.1754944e-38, %v3570_v11  ;;  %vm3569_vm14 = vcmp.eq.f32.partialorder %v3568_v50, 8.507059e+37 }
0x15bf   :  { %v3547_v23 = vmul.f32 %v4683_v28, %v3546_v37  ;;  %v5999_v40 = vadd.f32 %v4360_v33, %v3525_v60 }
0x15c1   :  { %v4685_v19 = vpop.eup %4684  ;;  %v3548_v30 = vadd.f32 %v4683_v28, %v3547_v23  ;;  %v4295_v8 = vmul.f32 -1.442695, %v5999_v40 }
0x15c2   :  { %v4687_v38 = vpop.eup %4686  ;;  %v3542_v44 = vadd.f32 1.0, %v4685_v19 }
0x15c3   :  { %v3552_v31 = vsel %vm3551_vm12, %v4683_v28, %v3548_v30  ;;  %v3560_v14 = vmul.f32 %v4687_v38, %v3541_v36  ;;  %4688 = vpow2.f32 %v4295_v8  ;;  %vm3565_vm6 = vweird.f32 %v4687_v38 }
0x15c4   :  { %v3557_v4 = vsel %vm3554_vm15, %v3556_v41, %v3552_v31  ;;  %4690 = vrcp.f32 %v3542_v44  ;;  %vm3566_vm13 = vmor %vm3564_vm11, %vm3565_vm6  ;;  %v3585_v53 = vand.u32 2147483648, %v3542_v44  ;;  %v3583_v56 = vand.u32 2147483647, %v3542_v44  ;;  %v6047_v41 = vpop.f32.mrf.mxu0 }
0x15c5   :  { %v3604_v6 = vmul.f32 %v3557_v4, %v3517_v0  ;;  %v3561_v46 = vsub.f32 1.0, %v3560_v14  ;;  %vm3579_vm3 = vweird.f32 %v3542_v44 }
0x15c6   :  { %v3586_v61 = vor.u32 1.1754944e-38, %v3585_v53  ;;  %vm3584_vm5 = vcmp.eq.f32.partialorder %v3583_v56, 8.507059e+37 }
0x15c7   :  { %v3562_v48 = vmul.f32 %v4687_v38, %v3561_v46  ;;  %4297 = vmatmul.msk.f32.vlgmr.msrb.gmra.mxu3 %vm173_vm1, %v3604_v6 }
0x15c9   :  { %v4689_v49 = vpop.eup %4688  ;;  %v3563_v16 = vadd.f32 %v4687_v38, %v3562_v48 }
0x15ca   :  { %v4691_v24 = vpop.eup %4690  ;;  %v3543_v5 = vadd.f32 1.0, %v4689_v49 }
0x15cb   :  { %v3567_v2 = vsel %vm3566_vm13, %v4687_v38, %v3563_v16  ;;  %v3575_v51 = vmul.f32 %v4691_v24, %v3542_v44  ;;  %vm3580_vm2 = vweird.f32 %v4691_v24 }
0x15cc   :  { %v3572_v29 = vsel %vm3569_vm14, %v3571_v55, %v3567_v2  ;;  %4692 = vrcp.f32 %v3543_v5  ;;  %vm3581_vm4 = vmor %vm3579_vm3, %vm3580_vm2  ;;  %v3600_v32 = vand.u32 2147483648, %v3543_v5  ;;  %vm3594_vm9 = vweird.f32 %v3543_v5  ;;  %v6055_v16 = vpop.f32.mrf.mxu0  ;;  %v4312_v2 = vld [vmem:[%s6164_s15 + $0x48] sm:$0xff] }
0x15cd   :  { %v3605_v39 = vmul.f32 %v3572_v29, %v3520_v47  ;;  %v3576_v52 = vsub.f32 1.0, %v3575_v51  ;;  %v3598_v47 = vand.u32 2147483647, %v3543_v5 }
0x15ce   :  { %v3601_v18 = vor.u32 1.1754944e-38, %v3600_v32 }
0x15cf   :  { %v3577_v21 = vmul.f32 %v4691_v24, %v3576_v52  ;;  %4298 = vmatmul.msk.f32.gmra.mxu3 %vm173_vm1, %v3605_v39  ;;  %vm3599_vm10 = vcmp.eq.f32.partialorder %v3598_v47, 8.507059e+37 }
0x15d1   :  { %v3578_v7 = vadd.f32 %v4691_v24, %v3577_v21 }
0x15d2   :  { %v4693_v27 = vpop.eup %4692 }
0x15d3   :  { %v3582_v33 = vsel %vm3581_vm4, %v4691_v24, %v3578_v7  ;;  %v3590_v13 = vmul.f32 %v4693_v27, %v3543_v5  ;;  %vm3595_vm8 = vweird.f32 %v4693_v27  ;;  %v4313_v24 = vld [vmem:[%s6164_s15 + $0x50] sm:$0xff] }
0x15d4   :  { %v3587_v62 = vsel %vm3584_vm5, %v3586_v61, %v3582_v33  ;;  %vm3596_vm7 = vmor %vm3594_vm9, %vm3595_vm8  ;;  %3824 = vmatpush.msrb.mxu2 %v4313_v24 }
0x15d5   :  { %v3606_v15 = vmul.f32 %v3587_v62, %v5996_v57  ;;  %v3591_v0 = vsub.f32 1.0, %v3590_v13 }
0x15d6   :  { %3825 = vmatpush.msrb.mxu2 %v4312_v2  ;;  %v3887_v2 = vld [vmem:[#allocation4 + $0xf0] sm:$0xff] }
0x15d7   :  { %v3592_v45 = vmul.f32 %v4693_v27, %v3591_v0  ;;  %4299 = vmatmul.msk.f32.gmra.mxu3 %vm173_vm1, %v3606_v15  ;;  %v3768_v15 = vpop.f32.mrf.mxu0 }
0x15d9   :  { %v3593_v9 = vadd.f32 %v4693_v27, %v3592_v45 }
0x15db   :  { %v3597_v12 = vsel %vm3596_vm7, %v4693_v27, %v3593_v9 }
0x15dc   :  { %v3602_v57 = vsel %vm3599_vm10, %v3601_v18, %v3597_v12 }
0x15dd   :  { %v3607_v20 = vmul.f32 %v3602_v57, %v5999_v40 }
0x15df   :  { %4300 = vmatmul.msk.f32.gmra.mxu3 %vm173_vm1, %v3607_v20 }
0x164a   :  { %v3647_v28 = vpop.f32.mrf.mxu3 }
0x164b   :  { %v6030_v36 = vadd.f32 %v4361_v54, %v3647_v28 }
0x164d   :  { %v4301_v63 = vmul.f32 -1.442695, %v6030_v36 }
0x164f   :  { %4694 = vpow2.f32 %v4301_v63 }
0x1652   :  { %v3650_v37 = vpop.f32.mrf.mxu3 }
0x1653   :  { %v6033_v22 = vadd.f32 %v4361_v54, %v3650_v37 }
0x1655   :  { %v4302_v60 = vmul.f32 -1.442695, %v6033_v22  ;;  %v4695_v40 = vpop.eup %4694 }
0x1656   :  { %v6041_v8 = vadd.f32 1.0, %v4695_v40 }
0x1657   :  { %4696 = vpow2.f32 %v4302_v60 }
0x1658   :  { %vm3680_vm12 = vweird.f32 %v6041_v8  ;;  %v3684_v33 = vand.u32 2147483647, %v6041_v8  ;;  %v3686_v9 = vand.u32 2147483648, %v6041_v8 }
0x165a   :  { %v3653_v23 = vpop.f32.mrf.mxu3  ;;  %v3687_v40 = vor.u32 1.1754944e-38, %v3686_v9  ;;  %vm3685_vm10 = vcmp.eq.f32.partialorder %v3684_v33, 8.507059e+37  ;;  %v3941_v9 = vld [vmem:[#allocation4 + $0x118] sm:$0xff] }
0x165b   :  { %v6036_v17 = vadd.f32 %v4361_v54, %v3653_v23 }
0x165d   :  { %v4697_v3 = vpop.eup %4696  ;;  %v4303_v19 = vmul.f32 -1.442695, %v6036_v17 }
0x165e   :  { %v6039_v30 = vadd.f32 1.0, %v4697_v3 }
0x165f   :  { %4698 = vpow2.f32 %v4303_v19 }
0x1660   :  { %4700 = vrcp.f32 %v6039_v30  ;;  %vm3695_vm13 = vweird.f32 %v6039_v30  ;;  %v3701_v13 = vand.u32 2147483648, %v6039_v30  ;;  %v3699_v32 = vand.u32 2147483647, %v6039_v30 }
0x1661   :  { %4702 = vrcp.f32 %v6041_v8 }
0x1662   :  { %v3656_v34 = vpop.f32.mrf.mxu3  ;;  %v3702_v63 = vor.u32 1.1754944e-38, %v3701_v13  ;;  %vm3700_vm8 = vcmp.eq.f32.partialorder %v3699_v32, 8.507059e+37 }
0x1663   :  { %v6044_v38 = vadd.f32 %v4361_v54, %v3656_v34 }
0x1665   :  { %v4699_v44 = vpop.eup %4698  ;;  %v4304_v31 = vmul.f32 -1.442695, %v6044_v38 }
0x1666   :  { %v3673_v14 = vadd.f32 1.0, %v4699_v44  ;;  %v4701_v4 = vpop.eup %4700 }
0x1667   :  { %4704 = vpow2.f32 %v4304_v31  ;;  %v6050_v6 = vpop.eup %4702  ;;  %v3691_v46 = vmul.f32 %v4701_v4, %v6039_v30  ;;  %vm3696_vm15 = vweird.f32 %v4701_v4 }
0x1668   :  { %4706 = vrcp.f32 %v3673_v14  ;;  %v3676_v48 = vmul.f32 %v6050_v6, %v6041_v8  ;;  %v3714_v7 = vand.u32 2147483647, %v3673_v14  ;;  %v3716_v58 = vand.u32 2147483648, %v3673_v14  ;;  %vm6081_vm2 = vmor %vm3695_vm13, %vm3696_vm15 }
0x1669   :  { %v3692_v55 = vsub.f32 1.0, %v3691_v46  ;;  %vm3710_vm6 = vweird.f32 %v3673_v14  ;;  %vm3681_vm11 = vweird.f32 %v6050_v6 }
0x166a   :  { %v3677_v51 = vsub.f32 1.0, %v3676_v48  ;;  %vm3715_vm3 = vcmp.eq.f32.partialorder %v3714_v7, 8.507059e+37  ;;  %v3717_v18 = vor.u32 1.1754944e-38, %v3716_v58  ;;  %vm6091_vm5 = vmor %vm3680_vm12, %vm3681_vm11 }
0x166b   :  { %v3693_v39 = vmul.f32 %v4701_v4, %v3692_v55 }
0x166c   :  { %v3678_v53 = vmul.f32 %v6050_v6, %v3677_v51  ;;  %v4363_v51 = vld [vmem:[%s6167_s18 + $0x6] ss:$0 sm:$0xff] }
0x166d   :  { %v4705_v11 = vpop.eup %4704  ;;  %v3694_v27 = vadd.f32 %v4701_v4, %v3693_v39  ;;  %v3885_v39 = vld [vmem:[#allocation4 + $0xe0] sm:$0xff] }
0x166e   :  { %v4707_v50 = vpop.eup %4706  ;;  %v3674_v49 = vadd.f32 1.0, %v4705_v11  ;;  %v3679_v0 = vadd.f32 %v6050_v6, %v3678_v53 }
0x166f   :  { %v3706_v5 = vmul.f32 %v4707_v50, %v3673_v14  ;;  %vm3711_vm0 = vweird.f32 %v4707_v50  ;;  %v3698_v57 = vsel %vm6081_vm2, %v4701_v4, %v3694_v27  ;;  %v3771_v4 = vpop.f32.mrf.mxu0 }
0x1670   :  { %4708 = vrcp.f32 %v3674_v49  ;;  %vm6072_vm14 = vmor %vm3710_vm6, %vm3711_vm0  ;;  %v3731_v12 = vand.u32 2147483648, %v3674_v49  ;;  %v3729_v54 = vand.u32 2147483647, %v3674_v49  ;;  %v3683_v60 = vsel %vm6091_vm5, %v6050_v6, %v3679_v0 }
0x1671   :  { %v3707_v29 = vsub.f32 1.0, %v3706_v5  ;;  %vm3725_vm9 = vweird.f32 %v3674_v49  ;;  %v3703_v3 = vsel %vm3700_vm8, %v3702_v63, %v3698_v57  ;;  %v3688_v34 = vsel %vm3685_vm10, %v3687_v40, %v3683_v60  ;;  %v3888_v5 = vld [vmem:[#allocation4 + $0xf8] sm:$0xff]  ;;  %v3938_v57 = vld [vmem:[#allocation4 + $0x100] sm:$0xff] }
0x1672   :  { %v3732_v19 = vor.u32 1.1754944e-38, %v3731_v12  ;;  %vm3730_vm0 = vcmp.eq.f32.partialorder %v3729_v54, 8.507059e+37  ;;  %v3736_v31 = vmul.f32 %v3703_v3, %v6033_v22  ;;  %v3735_v6 = vmul.f32 %v3688_v34, %v6030_v36  ;;  %v3939_v12 = vld [vmem:[#allocation4 + $0x108] sm:$0xff] }
0x1673   :  { %v3708_v52 = vmul.f32 %v4707_v50, %v3707_v29  ;;  %v3886_v29 = vld [vmem:[#allocation4 + $0xe8] sm:$0xff] }
0x1674   :  { %v3740_v48 = vadd.f32 %v3736_v31, %v5977_v10  ;;  %v4311_v10 = vld [vmem:[%s6164_s15 + $0x40] sm:$0xff] }
0x1675   :  { %v3709_v21 = vadd.f32 %v4707_v50, %v3708_v52  ;;  %3826 = vmatpush.msrb.mxu2 %v4311_v10 }
0x1676   :  { %v4709_v56 = vpop.eup %4708  ;;  %v3775_v35 = vmul.f32 %v6055_v16, %v3740_v48  ;;  %v4362_v16 = vld [vmem:[%s6165_s16 + $0x2] ss:$0 sm:$0xff] }
0x1677   :  { %v3721_v61 = vmul.f32 %v4709_v56, %v3674_v49  ;;  %v3713_v45 = vsel %vm6072_vm14, %v4707_v50, %v3709_v21  ;;  %vm3726_vm4 = vweird.f32 %v4709_v56  ;;  %3962 = vmatpush.msra.mxu2 %v3941_v9  ;;  %v4326_v48 = vld [vmem:[%s6168_s19 + $0x40] sm:$0xff] }
0x1678   :  { %v3718_v37 = vsel %vm3715_vm3, %v3717_v18, %v3713_v45  ;;  %vm3727_vm7 = vmor %vm3725_vm9, %vm3726_vm4  ;;  %v4364_v18 = vld [vmem:[%s6167_s18 + $0x7] ss:$0 sm:$0xff] }
0x1679   :  { %v3722_v47 = vsub.f32 1.0, %v3721_v61  ;;  %v3737_v30 = vmul.f32 %v3718_v37, %v6036_v17  ;;  %v3739_v17 = vadd.f32 %v3735_v6, %v5972_v25  ;;  %v3835_v25 = vld [vmem:[#allocation4 + $0xd8] sm:$0xff]  ;;  %3963 = vmatpush.msra.mxu2 %v3940_v42  ;;  %v4328_v6 = vld [vmem:[%s6168_s19 + $0x50] sm:$0xff] }
0x167a   :  { %3856 = vmatpush.msra.mxu3 %v3835_v25 }
0x167b   :  { %v3723_v20 = vmul.f32 %v4709_v56, %v3722_v47  ;;  %v3741_v46 = vadd.f32 %v3737_v30, %v5983_v43  ;;  %v3774_v22 = vmul.f32 %v6047_v41, %v3739_v17  ;;  %v4755_v43 = vld [vmem:[%s6154_s5] sm:$0xff]  ;;  %3964 = vmatpush.msra.mxu2 %v3939_v12 }
0x167c   :  { %v3832_v41 = vld [vmem:[#allocation4 + $0xc0] sm:$0xff] }
0x167d   :  { %v3724_v23 = vadd.f32 %v4709_v56, %v3723_v20  ;;  %v3776_v49 = vmul.f32 %v3768_v15, %v3741_v46  ;;  %3965 = vmatpush.msra.mxu2 %v3938_v57  ;;  %v4365_v46 = vld [vmem:[%s6167_s18 + $0x8] ss:$0 sm:$0xff] }
0x167f   :  { %v3728_v8 = vsel %vm3727_vm7, %v4709_v56, %v3724_v23  ;;  %vm4019_vm7 = vcmask 31744  }
0x1680   :  { %v3733_v44 = vsel %vm3730_vm0, %v3732_v19, %v3728_v8 }
0x1681   :  { %v3738_v14 = vmul.f32 %v3733_v44, %v6044_v38  ;;  %v3833_v38 = vld [vmem:[#allocation4 + $0xc8] sm:$0xff] }
0x1683   :  { %v3742_v11 = vadd.f32 %v3738_v14, %v5989_v59  ;;  %v3834_v59 = vld [vmem:[#allocation4 + $0xd0] sm:$0xff] }
0x1684   :  { %3857 = vmatpush.msra.mxu3 %v3834_v59 }
0x1685   :  { %v3777_v50 = vmul.f32 %v3771_v4, %v3742_v11  ;;  %v4329_v4 = vld [vmem:[%s6168_s19 + $0x58] sm:$0xff]  ;;  %v4327_v11 = vld [vmem:[%s6168_s19 + $0x48] sm:$0xff] }
0x1686   :  { %3858 = vmatpush.msra.mxu3 %v3833_v38 }
0x1687   :  { %3790 = vmatpush.msra.mxu1 %v3777_v50 }
0x1688   :  { %3859 = vmatpush.msra.mxu3 %v3832_v41 }
0x1689   :  { %3791 = vmatpush.msra.mxu1 %v3776_v49 }
0x168a   :  { %4010 = vmatpush.msrb.mxu3 %v4329_v4 }
0x168b   :  { %3792 = vmatpush.msra.mxu1 %v3775_v35 }
0x168c   :  { %4011 = vmatpush.msrb.mxu3 %v4328_v6 }
0x168d   :  { %3793 = vmatpush.msra.mxu1 %v3774_v22 }
0x168e   :  { %4310 = vmatmul.msk.f32.vlgmr.msra.gmra.mxu1 %vm173_vm1, %v4755_v43  ;;  %4012 = vmatpush.msrb.mxu3 %v4327_v11 }
0x168f   :  { %3909 = vmatpush.msrb.mxu1 %v3888_v5 }
0x1690   :  { %4013 = vmatpush.msrb.mxu3 %v4326_v48 }
0x1691   :  { %3910 = vmatpush.msrb.mxu1 %v3887_v2  ;;  %v2240_v2 = vadd.f32 %v5686_v26, %v5633_v1 }
0x1693   :  { %3911 = vmatpush.msrb.mxu1 %v3886_v29 }
0x1695   :  { %3912 = vmatpush.msrb.mxu1 %v3885_v39 }
0x170b   :  { %v3795_v36 = vpop.f32.mrf.mxu1 }
0x170c   :  { %4316 = vmatmul.msk.f32.vlgmr.msrb.gmra.mxu2 %vm173_vm1, %v3795_v36 }
0x178f   :  { %v3828_v24 = vpop.f32.mrf.mxu2 }
0x1790   :  { %v3829_v55 = vadd.f32 %v4362_v16, %v3828_v24 }
0x1792   :  { %4318 = vmatmul.msk.f32.vlgmr.msra.gmra.mxu3 %vm173_vm1, %v3829_v55 }
0x1815   :  { %v3861_v52 = vpop.f32.mrf.mxu3 }
0x1816   :  { %v3862_v53 = vadd.f32 %v4363_v51, %v3861_v52 }
0x1818   :  { %v4319_v21 = vmul.f32 -1.442695, %v3862_v53 }
0x181a   :  { %4710 = vpow2.f32 %v4319_v21 }
0x1820   :  { %v4711_v56 = vpop.eup %4710 }
0x1821   :  { %v3867_v7 = vadd.f32 1.0, %v4711_v56 }
0x1823   :  { %4712 = vrcp.f32 %v3867_v7  ;;  %v3879_v33 = vand.u32 2147483648, %v3867_v7  ;;  %v3877_v62 = vand.u32 2147483647, %v3867_v7  ;;  %vm3873_vm15 = vweird.f32 %v3867_v7 }
0x1825   :  { %v3880_v0 = vor.u32 1.1754944e-38, %v3879_v33  ;;  %vm3878_vm11 = vcmp.eq.f32.partialorder %v3877_v62, 8.507059e+37 }
0x1829   :  { %v4713_v58 = vpop.eup %4712 }
0x182a   :  { %v3869_v27 = vmul.f32 %v4713_v58, %v3867_v7  ;;  %vm3874_vm12 = vweird.f32 %v4713_v58 }
0x182b   :  { %vm3875_vm6 = vmor %vm3873_vm15, %vm3874_vm12 }
0x182c   :  { %v3870_v61 = vsub.f32 1.0, %v3869_v27 }
0x182e   :  { %v3871_v13 = vmul.f32 %v4713_v58, %v3870_v61 }
0x1830   :  { %v3872_v15 = vadd.f32 %v4713_v58, %v3871_v13 }
0x1832   :  { %v3876_v32 = vsel %vm3875_vm6, %v4713_v58, %v3872_v15 }
0x1833   :  { %v3881_v45 = vsel %vm3878_vm11, %v3880_v0, %v3876_v32 }
0x1834   :  { %v3883_v47 = vmul.f32 %v3881_v45, %v3862_v53 }
0x1836   :  { %4321 = vmatmul.msk.f32.vlgmr.msrb.gmra.mxu1 %vm173_vm1, %v3883_v47 }
0x18b3   :  { %v3914_v20 = vpop.f32.mrf.mxu1 }
0x18b4   :  { %v3915_v54 = vadd.f32 %v4364_v18, %v3914_v20 }
0x18b6   :  { %v4322_v28 = vmul.f32 -1.442695, %v3915_v54 }
0x18b8   :  { %4714 = vpow2.f32 %v4322_v28 }
0x18be   :  { %v4715_v63 = vpop.eup %4714 }
0x18bf   :  { %v3920_v37 = vadd.f32 1.0, %v4715_v63 }
0x18c1   :  { %4716 = vrcp.f32 %v3920_v37  ;;  %v3932_v3 = vand.u32 2147483648, %v3920_v37  ;;  %v3930_v30 = vand.u32 2147483647, %v3920_v37  ;;  %vm3926_vm14 = vweird.f32 %v3920_v37 }
0x18c3   :  { %v3933_v34 = vor.u32 1.1754944e-38, %v3932_v3  ;;  %vm3931_vm3 = vcmp.eq.f32.partialorder %v3930_v30, 8.507059e+37 }
0x18c7   :  { %v4717_v60 = vpop.eup %4716 }
0x18c8   :  { %v3922_v23 = vmul.f32 %v4717_v60, %v3920_v37  ;;  %vm3927_vm13 = vweird.f32 %v4717_v60 }
0x18c9   :  { %vm3928_vm2 = vmor %vm3926_vm14, %vm3927_vm13 }
0x18ca   :  { %v3923_v40 = vsub.f32 1.0, %v3922_v23 }
0x18cc   :  { %v3924_v19 = vmul.f32 %v4717_v60, %v3923_v40 }
0x18ce   :  { %v3925_v8 = vadd.f32 %v4717_v60, %v3924_v19 }
0x18d0   :  { %v3929_v44 = vsel %vm3928_vm2, %v4717_v60, %v3925_v8 }
0x18d1   :  { %v3934_v31 = vsel %vm3931_vm3, %v3933_v34, %v3929_v44 }
0x18d2   :  { %v3936_v14 = vmul.f32 %v3934_v31, %v3915_v54 }
0x18d4   :  { %4324 = vmatmul.msk.f32.vlgmr.msra.gmra.mxu2 %vm173_vm1, %v3936_v14 }
0x1957   :  { %v3967_v50 = vpop.f32.mrf.mxu2 }
0x1958   :  { %v3968_v17 = vadd.f32 %v4365_v46, %v3967_v50 }
0x195a   :  { %v4325_v49 = vmul.f32 -1.442695, %v3968_v17 }
0x195c   :  { %4718 = vpow2.f32 %v4325_v49 }
0x1962   :  { %v4719_v35 = vpop.eup %4718 }
0x1963   :  { %v3973_v22 = vadd.f32 1.0, %v4719_v35 }
0x1965   :  { %4720 = vrcp.f32 %v3973_v22  ;;  %v3985_v59 = vand.u32 2147483648, %v3973_v22  ;;  %v3983_v38 = vand.u32 2147483647, %v3973_v22  ;;  %vm3979_vm5 = vweird.f32 %v3973_v22 }
0x1967   :  { %v3986_v16 = vor.u32 1.1754944e-38, %v3985_v59  ;;  %vm3984_vm9 = vcmp.eq.f32.partialorder %v3983_v38, 8.507059e+37 }
0x196b   :  { %v4721_v43 = vpop.eup %4720 }
0x196c   :  { %v3975_v10 = vmul.f32 %v4721_v43, %v3973_v22  ;;  %vm3980_vm4 = vweird.f32 %v4721_v43 }
0x196d   :  { %vm3981_vm8 = vmor %vm3979_vm5, %vm3980_vm4 }
0x196e   :  { %v3976_v25 = vsub.f32 1.0, %v3975_v10 }
0x1970   :  { %v3977_v36 = vmul.f32 %v4721_v43, %v3976_v25 }
0x1972   :  { %v3978_v41 = vadd.f32 %v4721_v43, %v3977_v36 }
0x1974   :  { %v3982_v24 = vsel %vm3981_vm8, %v4721_v43, %v3978_v41 }
0x1975   :  { %v3987_v55 = vsel %vm3984_vm9, %v3986_v16, %v3982_v24 }
0x1976   :  { %v3989_v5 = vmul.f32 %v3987_v55, %v3968_v17 }
0x1978   :  { %4330 = vmatmul.msk.f32.vlgmr.msrb.gmra.mxu3 %vm173_vm1, %v3989_v5 }
0x19fb   :  { %v4015_v51 = vpop.f32.mrf.mxu3 }
0x19fc   :  { %v4018_v29 = vadd.f32 %v4015_v51, %v2240_v2 }
0x19fe   :  { %4020 = vst.msk [vmem:[%s6169_s20] sm:$0xff] %vm4019_vm7, %v4018_v29 }
0x19ff   :  { %4025 = vsyncpa [#allocation3], 1 }
0x1a00   :  { %4026 = vsyncpa [#allocation5], 1 }

</bundles_post_ra>
